<compile_context>
chip_gen: v7x
topology: tpu7x:2x2x1
jax: 0.10.0
libtpu: 0.0.40
codegen_flags: <defaults>
</compile_context>

<pallas_src>
import jax
import jax.numpy as jnp
from jax.experimental import pallas as pl
from jax.experimental.pallas import tpu as pltpu

# ----------------------------------------------------------------------------
# Synthetic cfg (what parse_cfg(cfgfile) would return)
# ----------------------------------------------------------------------------
CFG_BLOCKS = [
    {"type": "net", "width": 16, "height": 16, "channels": 3},
    {"type": "convolutional", "batch_normalize": 1, "filters": 8, "size": 3,
     "stride": 1, "pad": 1, "activation": "leaky"},
    {"type": "maxpool", "size": 2, "stride": 2},
    {"type": "convolutional", "batch_normalize": 1, "filters": 16, "size": 3,
     "stride": 1, "pad": 1, "activation": "leaky"},
    {"type": "maxpool", "size": 2, "stride": 1},          # -> MaxPoolStride1
    {"type": "convolutional", "batch_normalize": 0, "filters": 20, "size": 1,
     "stride": 1, "pad": 0, "activation": "linear"},      # region head: 2*(5+5)=20
    {"type": "region", "anchors": "1.0,1.0,2.0,2.0", "classes": 5, "num": 2,
     "object_scale": 5.0, "noobject_scale": 1.0, "class_scale": 1.0,
     "coord_scale": 1.0},
]

_DATA_COL = 8      # sublane-aligned column offset of valid data in padded scratch
_LANES = 128       # lane-dense channel width (all channel dims padded to this)


# ----------------------------------------------------------------------------
# Fused network kernel (one grid step == one batch image)
# ----------------------------------------------------------------------------
def _darknet_fused_kernel(x_ref, w1_ref, b1_ref, w2_ref, b2_ref, w3_ref, b3_ref,
                          o_ref,
                          pad1_ref, poolh_ref, pad2_ref, padp_ref):
    """Entire Darknet forward for one image, all intermediates in VMEM.

    x_ref:  (H, W, 128)        NHWC input, channels zero-padded to 128 lanes
    w1_ref: (3, 3, 128, 128)   conv1 weights (BN scale folded, zero-padded)
    w2_ref: (3, 3, 128, 128)   conv2 weights
    w3_ref: (128, 128)         1x1 conv3 weights
    b*_ref: (1, 128)           biases
    o_ref:  (H//2, W//2, 128)

    pad1_ref:  (H+2,  _DATA_COL+W+8,  128)   zero-padded conv1 input
    poolh_ref: (H//2, W,              128)   height-pooled conv1 output
    pad2_ref:  (H//2+2, _DATA_COL+W//2+8, 128) zero-padded conv2 input
    padp_ref:  (H//2+1, W//2+1, 128)         replicate-padded MaxPoolStride1 input
    """
    f32 = jnp.float32
    H1, W1, C = x_ref.shape
    H2, W2 = H1 // 2, W1 // 2
    WP1 = pad1_ref.shape[1]
    WP2 = pad2_ref.shape[1]

    def leaky(v):
        return jnp.maximum(v, 0.1 * v)                     # LeakyReLU(0.1)

    def conv3x3(pad_ref, w_ref, b_ref, h, w):
        m = h * w
        acc = None
        for ky in range(3):
            for kx in range(3):
                base = _DATA_COL - 1 + kx                  # pad = 1
                patch = pad_ref[ky:ky + h, base:base + w, :].reshape(m, C)
                d = jnp.dot(patch, w_ref[ky, kx], preferred_element_type=f32)
                acc = d if acc is None else acc + d        # first-tap init
        return leaky(acc + b_ref[...])

    # ---------------- conv1: 3x3, zero-pad 1, stride 1, BN(folded) + leaky ---
    # Halo-only zero fill: aligned 8-wide column strips + top/bottom rows.
    pad1_ref[:, 0:_DATA_COL, :] = jnp.zeros((H1 + 2, _DATA_COL, C), f32)
    pad1_ref[:, _DATA_COL + W1:WP1, :] = (
        jnp.zeros((H1 + 2, WP1 - _DATA_COL - W1, C), f32))
    pad1_ref[0:1, _DATA_COL:_DATA_COL + W1, :] = jnp.zeros((1, W1, C), f32)
    pad1_ref[H1 + 1:H1 + 2, _DATA_COL:_DATA_COL + W1, :] = jnp.zeros((1, W1, C), f32)
    pad1_ref[1:1 + H1, _DATA_COL:_DATA_COL + W1, :] = x_ref[...]
    y1 = conv3x3(pad1_ref, w1_ref, b1_ref, H1, W1)         # (H1*W1, C)

    # ---------------- maxpool 2x2 / stride 2 ---------------------------------
    # Height pairing in-register (free major-dim reshape + max); width pairing
    # via a strided sublane read of the half-size VMEM buffer.
    yh = jnp.max(y1.reshape(H2, 2, W1, C), axis=1)          # (H2, W1, C)
    poolh_ref[...] = yh
    p1 = jnp.maximum(poolh_ref[:, pl.ds(0, W2, stride=2), :],
                     poolh_ref[:, pl.ds(1, W2, stride=2), :])   # (H2, W2, C)

    # ---------------- conv2: 3x3, zero-pad 1, stride 1, BN(folded) + leaky ---
    pad2_ref[:, 0:_DATA_COL, :] = jnp.zeros((H2 + 2, _DATA_COL, C), f32)
    pad2_ref[:, _DATA_COL + W2:WP2, :] = (
        jnp.zeros((H2 + 2, WP2 - _DATA_COL - W2, C), f32))
    pad2_ref[0:1, _DATA_COL:_DATA_COL + W2, :] = jnp.zeros((1, W2, C), f32)
    pad2_ref[H2 + 1:H2 + 2, _DATA_COL:_DATA_COL + W2, :] = jnp.zeros((1, W2, C), f32)
    pad2_ref[1:1 + H2, _DATA_COL:_DATA_COL + W2, :] = p1
    y2 = conv3x3(pad2_ref, w2_ref, b2_ref, H2, W2).reshape(H2, W2, C)

    # ---------------- MaxPoolStride1: replicate pad (right/bottom) -----------
    padp_ref[0:H2, 0:W2, :] = y2
    padp_ref[0:H2, W2:W2 + 1, :] = y2[:, W2 - 1:W2, :]       # last column
    padp_ref[H2:H2 + 1, :, :] = padp_ref[H2 - 1:H2, :, :]    # last row (+corner)
    a = padp_ref[0:H2, 0:W2, :]
    b = padp_ref[0:H2, 1:W2 + 1, :]
    c = padp_ref[1:H2 + 1, 0:W2, :]
    d = padp_ref[1:H2 + 1, 1:W2 + 1, :]
    p2 = jnp.maximum(jnp.maximum(a, b), jnp.maximum(c, d))   # (H2, W2, C)

    # ---------------- conv3: 1x1, bias, linear --------------------------------
    z = jnp.dot(p2.reshape(H2 * W2, C), w3_ref[...], preferred_element_type=f32)
    o_ref[...] = (z + b3_ref[...]).reshape(H2, W2, C)


# ----------------------------------------------------------------------------
# Wrapper (single pallas_call for the whole network, grid over batch)
# ----------------------------------------------------------------------------
def darknet_forward(x_nchw, params):
    """Forward pass of the synthesized cfg network.  x_nchw: (N, 3, H, W)."""
    x = jnp.transpose(x_nchw, (0, 2, 3, 1)).astype(jnp.float32)   # NCHW -> NHWC
    N, H, W, C_in = x.shape
    H2, W2 = H // 2, W // 2
    C = _LANES

    # Lane-dense input: pad channels 3 -> 128 (layout plumbing, zero compute).
    xp = jnp.zeros((N, H, W, C), jnp.float32).at[..., :C_in].set(x)

    p1, p2, p3 = params

    def fold_pad_conv(p, kh, kw):
        # Fold BN scale into the conv weights, zero-pad Cin/Cout to 128 lanes.
        w = p["w"] * p["scale"].reshape(1, 1, 1, -1)
        ci, co = w.shape[2], w.shape[3]
        wp = jnp.zeros((kh, kw, C, C), jnp.float32).at[:, :, :ci, :co].set(w)
        bp = jnp.zeros((1, C), jnp.float32).at[:, :co].set(p["bias"])
        return wp, bp, co

    w1p, b1p, _ = fold_pad_conv(p1, 3, 3)
    w2p, b2p, _ = fold_pad_conv(p2, 3, 3)
    w3 = (p3["w"] * p3["scale"].reshape(1, 1, 1, -1)).reshape(
        p3["w"].shape[2], p3["w"].shape[3])
    c3 = w3.shape[1]
    w3p = jnp.zeros((C, C), jnp.float32).at[:w3.shape[0], :c3].set(w3)
    b3p = jnp.zeros((1, C), jnp.float32).at[:, :c3].set(p3["bias"])

    wp1 = _DATA_COL + W + 8                                   # padded scratch widths
    wp2 = _DATA_COL + W2 + 8

    out = pl.pallas_call(
        _darknet_fused_kernel,
        out_shape=jax.ShapeDtypeStruct((N, H2, W2, C), jnp.float32),
        grid=(N,),
        in_specs=[
            pl.BlockSpec((None, H, W, C), lambda n: (n, 0, 0, 0)),
            pl.BlockSpec((3, 3, C, C), lambda n: (0, 0, 0, 0)),
            pl.BlockSpec((1, C), lambda n: (0, 0)),
            pl.BlockSpec((3, 3, C, C), lambda n: (0, 0, 0, 0)),
            pl.BlockSpec((1, C), lambda n: (0, 0)),
            pl.BlockSpec((C, C), lambda n: (0, 0)),
            pl.BlockSpec((1, C), lambda n: (0, 0)),
        ],
        out_specs=pl.BlockSpec((None, H2, W2, C), lambda n: (n, 0, 0, 0)),
        scratch_shapes=[
            pltpu.VMEM((H + 2, wp1, C), jnp.float32),         # padded conv1 input
            pltpu.VMEM((H2, W, C), jnp.float32),              # height-pooled conv1
            pltpu.VMEM((H2 + 2, wp2, C), jnp.float32),        # padded conv2 input
            pltpu.VMEM((H2 + 1, W2 + 1, C), jnp.float32),     # replicate-padded
        ],
        compiler_params=pltpu.CompilerParams(
            dimension_semantics=("parallel",),                # both v7x TCs
            vmem_limit_bytes=32 * 1024 * 1024),
    )(xp, w1p, b1p, w2p, b2p, w3p, b3p)

    out = out[..., :c3]                                       # drop lane padding
    return jnp.transpose(out, (0, 3, 1, 2))                   # back to NCHW


# ----------------------------------------------------------------------------
# Parameter construction (deterministic, mirrors Darknet.create_network shapes)
# ----------------------------------------------------------------------------
def create_params(blocks, key):
    params = []
    prev_filters = int(blocks[0]["channels"])
    for blk in blocks:
        if blk["type"] != "convolutional":
            continue
        filters = int(blk["filters"])
        ksize = int(blk["size"])
        bn = int(blk["batch_normalize"])
        key, kw, k1, k2, k3, k4 = jax.random.split(key, 6)
        w = 0.1 * jax.random.normal(kw, (ksize, ksize, prev_filters, filters),
                                    jnp.float32)
        if bn:
            gamma = 1.0 + 0.1 * jax.random.normal(k1, (filters,), jnp.float32)
            beta = 0.1 * jax.random.normal(k2, (filters,), jnp.float32)
            mean = 0.1 * jax.random.normal(k3, (filters,), jnp.float32)
            var = 0.5 + jnp.abs(jax.random.normal(k4, (filters,), jnp.float32))
            scale = gamma * jax.lax.rsqrt(var + 1e-5)
            bias = beta - mean * scale
        else:
            scale = jnp.ones((filters,), jnp.float32)
            bias = 0.1 * jax.random.normal(k1, (filters,), jnp.float32)  # conv bias
        params.append({"w": w,
                       "scale": scale.reshape(1, filters),
                       "bias": bias.reshape(1, filters)})
        prev_filters = filters
    return params


# ----------------------------------------------------------------------------
# Pure-JAX reference (XLA conv / reduce_window), for verification
# ----------------------------------------------------------------------------
def darknet_reference(x_nchw, params, blocks=CFG_BLOCKS):
    x = jnp.transpose(x_nchw, (0, 2, 3, 1)).astype(jnp.float32)
    ci = 0
    for blk in blocks:
        if blk["type"] == "convolutional":
            p = params[ci]; ci += 1
            ksize = int(blk["size"])
            pad = (ksize - 1) // 2 if int(blk["pad"]) else 0
            y = jax.lax.conv_general_dilated(
                x, p["w"], window_strides=(1, 1),
                padding=[(pad, pad), (pad, pad)],
                dimension_numbers=("NHWC", "HWIO", "NHWC"))
            y = y * p["scale"].reshape(1, 1, 1, -1) + p["bias"].reshape(1, 1, 1, -1)
            if blk["activation"] == "leaky":
                y = jnp.where(y > 0, y, 0.1 * y)
            x = y
        elif blk["type"] == "maxpool":
            if int(blk["stride"]) > 1:
                x = jax.lax.reduce_window(x, -jnp.inf, jax.lax.max,
                                          (1, 2, 2, 1), (1, 2, 2, 1), "VALID")
            else:
                xp = jnp.pad(x, ((0, 0), (0, 1), (0, 1), (0, 0)), mode="edge")
                x = jax.lax.reduce_window(xp, -jnp.inf, jax.lax.max,
                                          (1, 2, 2, 1), (1, 1, 1, 1), "VALID")
        # 'net' / 'region' blocks contribute no forward compute
    return jnp.transpose(x, (0, 3, 1, 2))


# ----------------------------------------------------------------------------
if __name__ == "__main__":
    key = jax.random.PRNGKey(0)
    kx, kp = jax.random.split(key)
    # NCHW input, matching the PyTorch module's expectation (channels=3, 16x16)
    x = jax.random.normal(kx, (2, 3, 16, 16), jnp.float32)
    params = create_params(CFG_BLOCKS, kp)

    fwd = jax.jit(darknet_forward)
    out = jax.block_until_ready(fwd(x, params))

    ref = jax.block_until_ready(darknet_reference(x, params))
    assert out.shape == (2, 20, 8, 8), out.shape
    assert jnp.allclose(out, ref, atol=1e-4, rtol=1e-4), float(
        jnp.max(jnp.abs(out - ref)))

    print("KERNEL_OK")
</pallas_src>

<mosaic_0001>
module attributes {stable_mosaic.version = 11 : i64} {
  func.func @_darknet_fused_kernel(%arg0: i32, %arg1: memref<1x16x16x128xf32, #tpu.memory_space<vmem>>, %arg2: memref<3x3x128x128xf32, #tpu.memory_space<vmem>>, %arg3: memref<1x128xf32, #tpu.memory_space<vmem>>, %arg4: memref<3x3x128x128xf32, #tpu.memory_space<vmem>>, %arg5: memref<1x128xf32, #tpu.memory_space<vmem>>, %arg6: memref<128x128xf32, #tpu.memory_space<vmem>>, %arg7: memref<1x128xf32, #tpu.memory_space<vmem>>, %arg8: memref<1x8x8x128xf32, #tpu.memory_space<vmem>>, %arg9: memref<18x32x128xf32, #tpu.memory_space<vmem>>, %arg10: memref<8x16x128xf32, #tpu.memory_space<vmem>>, %arg11: memref<10x24x128xf32, #tpu.memory_space<vmem>>, %arg12: memref<9x9x128xf32, #tpu.memory_space<vmem>>) attributes {dimension_semantics = [#tpu.dimension_semantics<parallel>], iteration_bounds = array<i64: 2>, scalar_prefetch = 0 : i64, scratch_operands = 4 : i64, tpu.core_type = #tpu.core_type<tc>, window_params = [{transform_indices = @transform_0, window_bounds = array<i64: 1, 16, 16, 128>}, {pipeline_mode = #tpu.pipeline_mode<synchronous>, transform_indices = @transform_1, window_bounds = array<i64: 3, 3, 128, 128>}, {pipeline_mode = #tpu.pipeline_mode<synchronous>, transform_indices = @transform_2, window_bounds = array<i64: 1, 128>}, {pipeline_mode = #tpu.pipeline_mode<synchronous>, transform_indices = @transform_3, window_bounds = array<i64: 3, 3, 128, 128>}, {pipeline_mode = #tpu.pipeline_mode<synchronous>, transform_indices = @transform_4, window_bounds = array<i64: 1, 128>}, {pipeline_mode = #tpu.pipeline_mode<synchronous>, transform_indices = @transform_5, window_bounds = array<i64: 128, 128>}, {pipeline_mode = #tpu.pipeline_mode<synchronous>, transform_indices = @transform_6, window_bounds = array<i64: 1, 128>}, {transform_indices = @transform_7, window_bounds = array<i64: 1, 8, 8, 128>}]} {
    %cst = arith.constant 0.000000e+00 : f32
    %0 = vector.broadcast %cst : f32 to vector<18x8x128xf32>
    %c0 = arith.constant 0 : index
    %c0_0 = arith.constant 0 : index
    %c0_1 = arith.constant 0 : index
    %1 = vector.load %arg9[%c0, %c0_0, %c0_1] : memref<18x32x128xf32, #tpu.memory_space<vmem>>, vector<18x8x128xf32>
    tpu.vector_store %arg9[%c0, %c0_0, %c0_1], %0 {strides = array<i32>} : memref<18x32x128xf32, #tpu.memory_space<vmem>>, vector<18x8x128xf32>,
    %cst_2 = arith.constant 0.000000e+00 : f32
    %2 = vector.broadcast %cst_2 : f32 to vector<18x8x128xf32>
    %c0_3 = arith.constant 0 : index
    %c24 = arith.constant 24 : index
    %c0_4 = arith.constant 0 : index
    %3 = vector.load %arg9[%c0_3, %c24, %c0_4] : memref<18x32x128xf32, #tpu.memory_space<vmem>>, vector<18x8x128xf32>
    tpu.vector_store %arg9[%c0_3, %c24, %c0_4], %2 {strides = array<i32>} : memref<18x32x128xf32, #tpu.memory_space<vmem>>, vector<18x8x128xf32>,
    %cst_5 = arith.constant 0.000000e+00 : f32
    %4 = vector.broadcast %cst_5 : f32 to vector<1x16x128xf32>
    %c0_6 = arith.constant 0 : index
    %c8 = arith.constant 8 : index
    %c0_7 = arith.constant 0 : index
    %5 = vector.load %arg9[%c0_6, %c8, %c0_7] : memref<18x32x128xf32, #tpu.memory_space<vmem>>, vector<1x16x128xf32>
    tpu.vector_store %arg9[%c0_6, %c8, %c0_7], %4 {strides = array<i32>} : memref<18x32x128xf32, #tpu.memory_space<vmem>>, vector<1x16x128xf32>,
    %cst_8 = arith.constant 0.000000e+00 : f32
    %6 = vector.broadcast %cst_8 : f32 to vector<1x16x128xf32>
    %c17 = arith.constant 17 : index
    %c8_9 = arith.constant 8 : index
    %c0_10 = arith.constant 0 : index
    %7 = vector.load %arg9[%c17, %c8_9, %c0_10] : memref<18x32x128xf32, #tpu.memory_space<vmem>>, vector<1x16x128xf32>
    tpu.vector_store %arg9[%c17, %c8_9, %c0_10], %6 {strides = array<i32>} : memref<18x32x128xf32, #tpu.memory_space<vmem>>, vector<1x16x128xf32>,
    %c0_11 = arith.constant 0 : index
    %c0_12 = arith.constant 0 : index
    %c0_13 = arith.constant 0 : index
    %c0_14 = arith.constant 0 : index
    %8 = vector.load %arg1[%c0_11, %c0_12, %c0_13, %c0_14] : memref<1x16x16x128xf32, #tpu.memory_space<vmem>>, vector<1x16x16x128xf32>
    %9 = vector.shape_cast %8 : vector<1x16x16x128xf32> to vector<16x16x128xf32>
    %c1 = arith.constant 1 : index
    %c8_15 = arith.constant 8 : index
    %c0_16 = arith.constant 0 : index
    %10 = vector.load %arg9[%c1, %c8_15, %c0_16] : memref<18x32x128xf32, #tpu.memory_space<vmem>>, vector<16x16x128xf32>
    tpu.vector_store %arg9[%c1, %c8_15, %c0_16], %9 {strides = array<i32>} : memref<18x32x128xf32, #tpu.memory_space<vmem>>, vector<16x16x128xf32>,
    %c0_17 = arith.constant 0 : index
    %c7 = arith.constant 7 : index
    %c0_18 = arith.constant 0 : index
    %11 = vector.load %arg9[%c0_17, %c7, %c0_18] : memref<18x32x128xf32, #tpu.memory_space<vmem>>, vector<16x16x128xf32>
    %12 = vector.shape_cast %11 : vector<16x16x128xf32> to vector<256x128xf32>
    %c0_19 = arith.constant 0 : index
    %c0_20 = arith.constant 0 : index
    %c0_21 = arith.constant 0 : index
    %c0_22 = arith.constant 0 : index
    %13 = vector.load %arg2[%c0_19, %c0_20, %c0_21, %c0_22] : memref<3x3x128x128xf32, #tpu.memory_space<vmem>>, vector<1x1x128x128xf32>
    %14 = vector.shape_cast %13 : vector<1x1x128x128xf32> to vector<128x128xf32>
    %cst_23 = arith.constant dense<0.000000e+00> : vector<256x128xf32>
    %15 = tpu.matmul %12, %14, %cst_23 {dimension_numbers = #tpu.dot_dimension_numbers<[1], [0], [0], [1], [0, 0, 1, 1], [], []>} : vector<256x128xf32>, vector<128x128xf32>, vector<256x128xf32> -> vector<256x128xf32>
    %c0_24 = arith.constant 0 : index
    %c8_25 = arith.constant 8 : index
    %c0_26 = arith.constant 0 : index
    %16 = vector.load %arg9[%c0_24, %c8_25, %c0_26] : memref<18x32x128xf32, #tpu.memory_space<vmem>>, vector<16x16x128xf32>
    %17 = vector.shape_cast %16 : vector<16x16x128xf32> to vector<256x128xf32>
    %c0_27 = arith.constant 0 : index
    %c1_28 = arith.constant 1 : index
    %c0_29 = arith.constant 0 : index
    %c0_30 = arith.constant 0 : index
    %18 = vector.load %arg2[%c0_27, %c1_28, %c0_29, %c0_30] : memref<3x3x128x128xf32, #tpu.memory_space<vmem>>, vector<1x1x128x128xf32>
    %19 = vector.shape_cast %18 : vector<1x1x128x128xf32> to vector<128x128xf32>
    %cst_31 = arith.constant dense<0.000000e+00> : vector<256x128xf32>
    %20 = tpu.matmul %17, %19, %cst_31 {dimension_numbers = #tpu.dot_dimension_numbers<[1], [0], [0], [1], [0, 0, 1, 1], [], []>} : vector<256x128xf32>, vector<128x128xf32>, vector<256x128xf32> -> vector<256x128xf32>
    %21 = arith.addf %15, %20 : vector<256x128xf32>
    %c0_32 = arith.constant 0 : index
    %c9 = arith.constant 9 : index
    %c0_33 = arith.constant 0 : index
    %22 = vector.load %arg9[%c0_32, %c9, %c0_33] : memref<18x32x128xf32, #tpu.memory_space<vmem>>, vector<16x16x128xf32>
    %23 = vector.shape_cast %22 : vector<16x16x128xf32> to vector<256x128xf32>
    %c0_34 = arith.constant 0 : index
    %c2 = arith.constant 2 : index
    %c0_35 = arith.constant 0 : index
    %c0_36 = arith.constant 0 : index
    %24 = vector.load %arg2[%c0_34, %c2, %c0_35, %c0_36] : memref<3x3x128x128xf32, #tpu.memory_space<vmem>>, vector<1x1x128x128xf32>
    %25 = vector.shape_cast %24 : vector<1x1x128x128xf32> to vector<128x128xf32>
    %cst_37 = arith.constant dense<0.000000e+00> : vector<256x128xf32>
    %26 = tpu.matmul %23, %25, %cst_37 {dimension_numbers = #tpu.dot_dimension_numbers<[1], [0], [0], [1], [0, 0, 1, 1], [], []>} : vector<256x128xf32>, vector<128x128xf32>, vector<256x128xf32> -> vector<256x128xf32>
    %27 = arith.addf %21, %26 : vector<256x128xf32>
    %c1_38 = arith.constant 1 : index
    %c7_39 = arith.constant 7 : index
    %c0_40 = arith.constant 0 : index
    %28 = vector.load %arg9[%c1_38, %c7_39, %c0_40] : memref<18x32x128xf32, #tpu.memory_space<vmem>>, vector<16x16x128xf32>
    %29 = vector.shape_cast %28 : vector<16x16x128xf32> to vector<256x128xf32>
    %c1_41 = arith.constant 1 : index
    %c0_42 = arith.constant 0 : index
    %c0_43 = arith.constant 0 : index
    %c0_44 = arith.constant 0 : index
    %30 = vector.load %arg2[%c1_41, %c0_42, %c0_43, %c0_44] : memref<3x3x128x128xf32, #tpu.memory_space<vmem>>, vector<1x1x128x128xf32>
    %31 = vector.shape_cast %30 : vector<1x1x128x128xf32> to vector<128x128xf32>
    %cst_45 = arith.constant dense<0.000000e+00> : vector<256x128xf32>
    %32 = tpu.matmul %29, %31, %cst_45 {dimension_numbers = #tpu.dot_dimension_numbers<[1], [0], [0], [1], [0, 0, 1, 1], [], []>} : vector<256x128xf32>, vector<128x128xf32>, vector<256x128xf32> -> vector<256x128xf32>
    %33 = arith.addf %27, %32 : vector<256x128xf32>
    %c1_46 = arith.constant 1 : index
    %c8_47 = arith.constant 8 : index
    %c0_48 = arith.constant 0 : index
    %34 = vector.load %arg9[%c1_46, %c8_47, %c0_48] : memref<18x32x128xf32, #tpu.memory_space<vmem>>, vector<16x16x128xf32>
    %35 = vector.shape_cast %34 : vector<16x16x128xf32> to vector<256x128xf32>
    %c1_49 = arith.constant 1 : index
    %c1_50 = arith.constant 1 : index
    %c0_51 = arith.constant 0 : index
    %c0_52 = arith.constant 0 : index
    %36 = vector.load %arg2[%c1_49, %c1_50, %c0_51, %c0_52] : memref<3x3x128x128xf32, #tpu.memory_space<vmem>>, vector<1x1x128x128xf32>
    %37 = vector.shape_cast %36 : vector<1x1x128x128xf32> to vector<128x128xf32>
    %cst_53 = arith.constant dense<0.000000e+00> : vector<256x128xf32>
    %38 = tpu.matmul %35, %37, %cst_53 {dimension_numbers = #tpu.dot_dimension_numbers<[1], [0], [0], [1], [0, 0, 1, 1], [], []>} : vector<256x128xf32>, vector<128x128xf32>, vector<256x128xf32> -> vector<256x128xf32>
    %39 = arith.addf %33, %38 : vector<256x128xf32>
    %c1_54 = arith.constant 1 : index
    %c9_55 = arith.constant 9 : index
    %c0_56 = arith.constant 0 : index
    %40 = vector.load %arg9[%c1_54, %c9_55, %c0_56] : memref<18x32x128xf32, #tpu.memory_space<vmem>>, vector<16x16x128xf32>
    %41 = vector.shape_cast %40 : vector<16x16x128xf32> to vector<256x128xf32>
    %c1_57 = arith.constant 1 : index
    %c2_58 = arith.constant 2 : index
    %c0_59 = arith.constant 0 : index
    %c0_60 = arith.constant 0 : index
    %42 = vector.load %arg2[%c1_57, %c2_58, %c0_59, %c0_60] : memref<3x3x128x128xf32, #tpu.memory_space<vmem>>, vector<1x1x128x128xf32>
    %43 = vector.shape_cast %42 : vector<1x1x128x128xf32> to vector<128x128xf32>
    %cst_61 = arith.constant dense<0.000000e+00> : vector<256x128xf32>
    %44 = tpu.matmul %41, %43, %cst_61 {dimension_numbers = #tpu.dot_dimension_numbers<[1], [0], [0], [1], [0, 0, 1, 1], [], []>} : vector<256x128xf32>, vector<128x128xf32>, vector<256x128xf32> -> vector<256x128xf32>
    %45 = arith.addf %39, %44 : vector<256x128xf32>
    %c2_62 = arith.constant 2 : index
    %c7_63 = arith.constant 7 : index
    %c0_64 = arith.constant 0 : index
    %46 = vector.load %arg9[%c2_62, %c7_63, %c0_64] : memref<18x32x128xf32, #tpu.memory_space<vmem>>, vector<16x16x128xf32>
    %47 = vector.shape_cast %46 : vector<16x16x128xf32> to vector<256x128xf32>
    %c2_65 = arith.constant 2 : index
    %c0_66 = arith.constant 0 : index
    %c0_67 = arith.constant 0 : index
    %c0_68 = arith.constant 0 : index
    %48 = vector.load %arg2[%c2_65, %c0_66, %c0_67, %c0_68] : memref<3x3x128x128xf32, #tpu.memory_space<vmem>>, vector<1x1x128x128xf32>
    %49 = vector.shape_cast %48 : vector<1x1x128x128xf32> to vector<128x128xf32>
    %cst_69 = arith.constant dense<0.000000e+00> : vector<256x128xf32>
    %50 = tpu.matmul %47, %49, %cst_69 {dimension_numbers = #tpu.dot_dimension_numbers<[1], [0], [0], [1], [0, 0, 1, 1], [], []>} : vector<256x128xf32>, vector<128x128xf32>, vector<256x128xf32> -> vector<256x128xf32>
    %51 = arith.addf %45, %50 : vector<256x128xf32>
    %c2_70 = arith.constant 2 : index
    %c8_71 = arith.constant 8 : index
    %c0_72 = arith.constant 0 : index
    %52 = vector.load %arg9[%c2_70, %c8_71, %c0_72] : memref<18x32x128xf32, #tpu.memory_space<vmem>>, vector<16x16x128xf32>
    %53 = vector.shape_cast %52 : vector<16x16x128xf32> to vector<256x128xf32>
    %c2_73 = arith.constant 2 : index
    %c1_74 = arith.constant 1 : index
    %c0_75 = arith.constant 0 : index
    %c0_76 = arith.constant 0 : index
    %54 = vector.load %arg2[%c2_73, %c1_74, %c0_75, %c0_76] : memref<3x3x128x128xf32, #tpu.memory_space<vmem>>, vector<1x1x128x128xf32>
    %55 = vector.shape_cast %54 : vector<1x1x128x128xf32> to vector<128x128xf32>
    %cst_77 = arith.constant dense<0.000000e+00> : vector<256x128xf32>
    %56 = tpu.matmul %53, %55, %cst_77 {dimension_numbers = #tpu.dot_dimension_numbers<[1], [0], [0], [1], [0, 0, 1, 1], [], []>} : vector<256x128xf32>, vector<128x128xf32>, vector<256x128xf32> -> vector<256x128xf32>
    %57 = arith.addf %51, %56 : vector<256x128xf32>
    %c2_78 = arith.constant 2 : index
    %c9_79 = arith.constant 9 : index
    %c0_80 = arith.constant 0 : index
    %58 = vector.load %arg9[%c2_78, %c9_79, %c0_80] : memref<18x32x128xf32, #tpu.memory_space<vmem>>, vector<16x16x128xf32>
    %59 = vector.shape_cast %58 : vector<16x16x128xf32> to vector<256x128xf32>
    %c2_81 = arith.constant 2 : index
    %c2_82 = arith.constant 2 : index
    %c0_83 = arith.constant 0 : index
    %c0_84 = arith.constant 0 : index
    %60 = vector.load %arg2[%c2_81, %c2_82, %c0_83, %c0_84] : memref<3x3x128x128xf32, #tpu.memory_space<vmem>>, vector<1x1x128x128xf32>
    %61 = vector.shape_cast %60 : vector<1x1x128x128xf32> to vector<128x128xf32>
    %cst_85 = arith.constant dense<0.000000e+00> : vector<256x128xf32>
    %62 = tpu.matmul %59, %61, %cst_85 {dimension_numbers = #tpu.dot_dimension_numbers<[1], [0], [0], [1], [0, 0, 1, 1], [], []>} : vector<256x128xf32>, vector<128x128xf32>, vector<256x128xf32> -> vector<256x128xf32>
    %63 = arith.addf %57, %62 : vector<256x128xf32>
    %c0_86 = arith.constant 0 : index
    %c0_87 = arith.constant 0 : index
    %64 = vector.load %arg3[%c0_86, %c0_87] : memref<1x128xf32, #tpu.memory_space<vmem>>, vector<1x128xf32>
    %65 = vector.broadcast %64 : vector<1x128xf32> to vector<256x128xf32>
    %66 = arith.addf %63, %65 : vector<256x128xf32>
    %cst_88 = arith.constant 1.000000e-01 : f32
    %67 = vector.broadcast %cst_88 : f32 to vector<256x128xf32>
    %68 = arith.mulf %67, %66 : vector<256x128xf32>
    %69 = arith.maximumf %66, %68 : vector<256x128xf32>
    %70 = vector.shape_cast %69 : vector<256x128xf32> to vector<8x2x16x128xf32>
    %cst_89 = arith.constant dense<0xFF800000> : vector<8x16x128xf32>
    %71 = vector.multi_reduction <maximumf>, %70, %cst_89 [1] : vector<8x2x16x128xf32> to vector<8x16x128xf32>
    %c0_90 = arith.constant 0 : index
    %c0_91 = arith.constant 0 : index
    %c0_92 = arith.constant 0 : index
    %72 = vector.load %arg10[%c0_90, %c0_91, %c0_92] : memref<8x16x128xf32, #tpu.memory_space<vmem>>, vector<8x16x128xf32>
    tpu.vector_store %arg10[%c0_90, %c0_91, %c0_92], %71 {strides = array<i32>} : memref<8x16x128xf32, #tpu.memory_space<vmem>>, vector<8x16x128xf32>,
    %c0_93 = arith.constant 0 : index
    %c0_94 = arith.constant 0 : index
    %c0_95 = arith.constant 0 : index
    %73 = tpu.strided_load %arg10[%c0_93, %c0_94, %c0_95] {strides = array<i32: 1, 2, 1>} : memref<8x16x128xf32, #tpu.memory_space<vmem>>, vector<8x8x128xf32>
    %c0_96 = arith.constant 0 : index
    %c1_97 = arith.constant 1 : index
    %c0_98 = arith.constant 0 : index
    %74 = tpu.strided_load %arg10[%c0_96, %c1_97, %c0_98] {strides = array<i32: 1, 2, 1>} : memref<8x16x128xf32, #tpu.memory_space<vmem>>, vector<8x8x128xf32>
    %75 = arith.maximumf %73, %74 : vector<8x8x128xf32>
    %cst_99 = arith.constant 0.000000e+00 : f32
    %76 = vector.broadcast %cst_99 : f32 to vector<10x8x128xf32>
    %c0_100 = arith.constant 0 : index
    %c0_101 = arith.constant 0 : index
    %c0_102 = arith.constant 0 : index
    %77 = vector.load %arg11[%c0_100, %c0_101, %c0_102] : memref<10x24x128xf32, #tpu.memory_space<vmem>>, vector<10x8x128xf32>
    tpu.vector_store %arg11[%c0_100, %c0_101, %c0_102], %76 {strides = array<i32>} : memref<10x24x128xf32, #tpu.memory_space<vmem>>, vector<10x8x128xf32>,
    %cst_103 = arith.constant 0.000000e+00 : f32
    %78 = vector.broadcast %cst_103 : f32 to vector<10x8x128xf32>
    %c0_104 = arith.constant 0 : index
    %c16 = arith.constant 16 : index
    %c0_105 = arith.constant 0 : index
    %79 = vector.load %arg11[%c0_104, %c16, %c0_105] : memref<10x24x128xf32, #tpu.memory_space<vmem>>, vector<10x8x128xf32>
    tpu.vector_store %arg11[%c0_104, %c16, %c0_105], %78 {strides = array<i32>} : memref<10x24x128xf32, #tpu.memory_space<vmem>>, vector<10x8x128xf32>,
    %cst_106 = arith.constant 0.000000e+00 : f32
    %80 = vector.broadcast %cst_106 : f32 to vector<1x8x128xf32>
    %c0_107 = arith.constant 0 : index
    %c8_108 = arith.constant 8 : index
    %c0_109 = arith.constant 0 : index
    %81 = vector.load %arg11[%c0_107, %c8_108, %c0_109] : memref<10x24x128xf32, #tpu.memory_space<vmem>>, vector<1x8x128xf32>
    tpu.vector_store %arg11[%c0_107, %c8_108, %c0_109], %80 {strides = array<i32>} : memref<10x24x128xf32, #tpu.memory_space<vmem>>, vector<1x8x128xf32>,
    %cst_110 = arith.constant 0.000000e+00 : f32
    %82 = vector.broadcast %cst_110 : f32 to vector<1x8x128xf32>
    %c9_111 = arith.constant 9 : index
    %c8_112 = arith.constant 8 : index
    %c0_113 = arith.constant 0 : index
    %83 = vector.load %arg11[%c9_111, %c8_112, %c0_113] : memref<10x24x128xf32, #tpu.memory_space<vmem>>, vector<1x8x128xf32>
    tpu.vector_store %arg11[%c9_111, %c8_112, %c0_113], %82 {strides = array<i32>} : memref<10x24x128xf32, #tpu.memory_space<vmem>>, vector<1x8x128xf32>,
    %c1_114 = arith.constant 1 : index
    %c8_115 = arith.constant 8 : index
    %c0_116 = arith.constant 0 : index
    %84 = vector.load %arg11[%c1_114, %c8_115, %c0_116] : memref<10x24x128xf32, #tpu.memory_space<vmem>>, vector<8x8x128xf32>
    tpu.vector_store %arg11[%c1_114, %c8_115, %c0_116], %75 {strides = array<i32>} : memref<10x24x128xf32, #tpu.memory_space<vmem>>, vector<8x8x128xf32>,
    %c0_117 = arith.constant 0 : index
    %c7_118 = arith.constant 7 : index
    %c0_119 = arith.constant 0 : index
    %85 = vector.load %arg11[%c0_117, %c7_118, %c0_119] : memref<10x24x128xf32, #tpu.memory_space<vmem>>, vector<8x8x128xf32>
    %86 = vector.shape_cast %85 : vector<8x8x128xf32> to vector<64x128xf32>
    %c0_120 = arith.constant 0 : index
    %c0_121 = arith.constant 0 : index
    %c0_122 = arith.constant 0 : index
    %c0_123 = arith.constant 0 : index
    %87 = vector.load %arg4[%c0_120, %c0_121, %c0_122, %c0_123] : memref<3x3x128x128xf32, #tpu.memory_space<vmem>>, vector<1x1x128x128xf32>
    %88 = vector.shape_cast %87 : vector<1x1x128x128xf32> to vector<128x128xf32>
    %cst_124 = arith.constant dense<0.000000e+00> : vector<64x128xf32>
    %89 = tpu.matmul %86, %88, %cst_124 {dimension_numbers = #tpu.dot_dimension_numbers<[1], [0], [0], [1], [0, 0, 1, 1], [], []>} : vector<64x128xf32>, vector<128x128xf32>, vector<64x128xf32> -> vector<64x128xf32>
    %c0_125 = arith.constant 0 : index
    %c8_126 = arith.constant 8 : index
    %c0_127 = arith.constant 0 : index
    %90 = vector.load %arg11[%c0_125, %c8_126, %c0_127] : memref<10x24x128xf32, #tpu.memory_space<vmem>>, vector<8x8x128xf32>
    %91 = vector.shape_cast %90 : vector<8x8x128xf32> to vector<64x128xf32>
    %c0_128 = arith.constant 0 : index
    %c1_129 = arith.constant 1 : index
    %c0_130 = arith.constant 0 : index
    %c0_131 = arith.constant 0 : index
    %92 = vector.load %arg4[%c0_128, %c1_129, %c0_130, %c0_131] : memref<3x3x128x128xf32, #tpu.memory_space<vmem>>, vector<1x1x128x128xf32>
    %93 = vector.shape_cast %92 : vector<1x1x128x128xf32> to vector<128x128xf32>
    %cst_132 = arith.constant dense<0.000000e+00> : vector<64x128xf32>
    %94 = tpu.matmul %91, %93, %cst_132 {dimension_numbers = #tpu.dot_dimension_numbers<[1], [0], [0], [1], [0, 0, 1, 1], [], []>} : vector<64x128xf32>, vector<128x128xf32>, vector<64x128xf32> -> vector<64x128xf32>
    %95 = arith.addf %89, %94 : vector<64x128xf32>
    %c0_133 = arith.constant 0 : index
    %c9_134 = arith.constant 9 : index
    %c0_135 = arith.constant 0 : index
    %96 = vector.load %arg11[%c0_133, %c9_134, %c0_135] : memref<10x24x128xf32, #tpu.memory_space<vmem>>, vector<8x8x128xf32>
    %97 = vector.shape_cast %96 : vector<8x8x128xf32> to vector<64x128xf32>
    %c0_136 = arith.constant 0 : index
    %c2_137 = arith.constant 2 : index
    %c0_138 = arith.constant 0 : index
    %c0_139 = arith.constant 0 : index
    %98 = vector.load %arg4[%c0_136, %c2_137, %c0_138, %c0_139] : memref<3x3x128x128xf32, #tpu.memory_space<vmem>>, vector<1x1x128x128xf32>
    %99 = vector.shape_cast %98 : vector<1x1x128x128xf32> to vector<128x128xf32>
    %cst_140 = arith.constant dense<0.000000e+00> : vector<64x128xf32>
    %100 = tpu.matmul %97, %99, %cst_140 {dimension_numbers = #tpu.dot_dimension_numbers<[1], [0], [0], [1], [0, 0, 1, 1], [], []>} : vector<64x128xf32>, vector<128x128xf32>, vector<64x128xf32> -> vector<64x128xf32>
    %101 = arith.addf %95, %100 : vector<64x128xf32>
    %c1_141 = arith.constant 1 : index
    %c7_142 = arith.constant 7 : index
    %c0_143 = arith.constant 0 : index
    %102 = vector.load %arg11[%c1_141, %c7_142, %c0_143] : memref<10x24x128xf32, #tpu.memory_space<vmem>>, vector<8x8x128xf32>
    %103 = vector.shape_cast %102 : vector<8x8x128xf32> to vector<64x128xf32>
    %c1_144 = arith.constant 1 : index
    %c0_145 = arith.constant 0 : index
    %c0_146 = arith.constant 0 : index
    %c0_147 = arith.constant 0 : index
    %104 = vector.load %arg4[%c1_144, %c0_145, %c0_146, %c0_147] : memref<3x3x128x128xf32, #tpu.memory_space<vmem>>, vector<1x1x128x128xf32>
    %105 = vector.shape_cast %104 : vector<1x1x128x128xf32> to vector<128x128xf32>
    %cst_148 = arith.constant dense<0.000000e+00> : vector<64x128xf32>
    %106 = tpu.matmul %103, %105, %cst_148 {dimension_numbers = #tpu.dot_dimension_numbers<[1], [0], [0], [1], [0, 0, 1, 1], [], []>} : vector<64x128xf32>, vector<128x128xf32>, vector<64x128xf32> -> vector<64x128xf32>
    %107 = arith.addf %101, %106 : vector<64x128xf32>
    %c1_149 = arith.constant 1 : index
    %c8_150 = arith.constant 8 : index
    %c0_151 = arith.constant 0 : index
    %108 = vector.load %arg11[%c1_149, %c8_150, %c0_151] : memref<10x24x128xf32, #tpu.memory_space<vmem>>, vector<8x8x128xf32>
    %109 = vector.shape_cast %108 : vector<8x8x128xf32> to vector<64x128xf32>
    %c1_152 = arith.constant 1 : index
    %c1_153 = arith.constant 1 : index
    %c0_154 = arith.constant 0 : index
    %c0_155 = arith.constant 0 : index
    %110 = vector.load %arg4[%c1_152, %c1_153, %c0_154, %c0_155] : memref<3x3x128x128xf32, #tpu.memory_space<vmem>>, vector<1x1x128x128xf32>
    %111 = vector.shape_cast %110 : vector<1x1x128x128xf32> to vector<128x128xf32>
    %cst_156 = arith.constant dense<0.000000e+00> : vector<64x128xf32>
    %112 = tpu.matmul %109, %111, %cst_156 {dimension_numbers = #tpu.dot_dimension_numbers<[1], [0], [0], [1], [0, 0, 1, 1], [], []>} : vector<64x128xf32>, vector<128x128xf32>, vector<64x128xf32> -> vector<64x128xf32>
    %113 = arith.addf %107, %112 : vector<64x128xf32>
    %c1_157 = arith.constant 1 : index
    %c9_158 = arith.constant 9 : index
    %c0_159 = arith.constant 0 : index
    %114 = vector.load %arg11[%c1_157, %c9_158, %c0_159] : memref<10x24x128xf32, #tpu.memory_space<vmem>>, vector<8x8x128xf32>
    %115 = vector.shape_cast %114 : vector<8x8x128xf32> to vector<64x128xf32>
    %c1_160 = arith.constant 1 : index
    %c2_161 = arith.constant 2 : index
    %c0_162 = arith.constant 0 : index
    %c0_163 = arith.constant 0 : index
    %116 = vector.load %arg4[%c1_160, %c2_161, %c0_162, %c0_163] : memref<3x3x128x128xf32, #tpu.memory_space<vmem>>, vector<1x1x128x128xf32>
    %117 = vector.shape_cast %116 : vector<1x1x128x128xf32> to vector<128x128xf32>
    %cst_164 = arith.constant dense<0.000000e+00> : vector<64x128xf32>
    %118 = tpu.matmul %115, %117, %cst_164 {dimension_numbers = #tpu.dot_dimension_numbers<[1], [0], [0], [1], [0, 0, 1, 1], [], []>} : vector<64x128xf32>, vector<128x128xf32>, vector<64x128xf32> -> vector<64x128xf32>
    %119 = arith.addf %113, %118 : vector<64x128xf32>
    %c2_165 = arith.constant 2 : index
    %c7_166 = arith.constant 7 : index
    %c0_167 = arith.constant 0 : index
    %120 = vector.load %arg11[%c2_165, %c7_166, %c0_167] : memref<10x24x128xf32, #tpu.memory_space<vmem>>, vector<8x8x128xf32>
    %121 = vector.shape_cast %120 : vector<8x8x128xf32> to vector<64x128xf32>
    %c2_168 = arith.constant 2 : index
    %c0_169 = arith.constant 0 : index
    %c0_170 = arith.constant 0 : index
    %c0_171 = arith.constant 0 : index
    %122 = vector.load %arg4[%c2_168, %c0_169, %c0_170, %c0_171] : memref<3x3x128x128xf32, #tpu.memory_space<vmem>>, vector<1x1x128x128xf32>
    %123 = vector.shape_cast %122 : vector<1x1x128x128xf32> to vector<128x128xf32>
    %cst_172 = arith.constant dense<0.000000e+00> : vector<64x128xf32>
    %124 = tpu.matmul %121, %123, %cst_172 {dimension_numbers = #tpu.dot_dimension_numbers<[1], [0], [0], [1], [0, 0, 1, 1], [], []>} : vector<64x128xf32>, vector<128x128xf32>, vector<64x128xf32> -> vector<64x128xf32>
    %125 = arith.addf %119, %124 : vector<64x128xf32>
    %c2_173 = arith.constant 2 : index
    %c8_174 = arith.constant 8 : index
    %c0_175 = arith.constant 0 : index
    %126 = vector.load %arg11[%c2_173, %c8_174, %c0_175] : memref<10x24x128xf32, #tpu.memory_space<vmem>>, vector<8x8x128xf32>
    %127 = vector.shape_cast %126 : vector<8x8x128xf32> to vector<64x128xf32>
    %c2_176 = arith.constant 2 : index
    %c1_177 = arith.constant 1 : index
    %c0_178 = arith.constant 0 : index
    %c0_179 = arith.constant 0 : index
    %128 = vector.load %arg4[%c2_176, %c1_177, %c0_178, %c0_179] : memref<3x3x128x128xf32, #tpu.memory_space<vmem>>, vector<1x1x128x128xf32>
    %129 = vector.shape_cast %128 : vector<1x1x128x128xf32> to vector<128x128xf32>
    %cst_180 = arith.constant dense<0.000000e+00> : vector<64x128xf32>
    %130 = tpu.matmul %127, %129, %cst_180 {dimension_numbers = #tpu.dot_dimension_numbers<[1], [0], [0], [1], [0, 0, 1, 1], [], []>} : vector<64x128xf32>, vector<128x128xf32>, vector<64x128xf32> -> vector<64x128xf32>
    %131 = arith.addf %125, %130 : vector<64x128xf32>
    %c2_181 = arith.constant 2 : index
    %c9_182 = arith.constant 9 : index
    %c0_183 = arith.constant 0 : index
    %132 = vector.load %arg11[%c2_181, %c9_182, %c0_183] : memref<10x24x128xf32, #tpu.memory_space<vmem>>, vector<8x8x128xf32>
    %133 = vector.shape_cast %132 : vector<8x8x128xf32> to vector<64x128xf32>
    %c2_184 = arith.constant 2 : index
    %c2_185 = arith.constant 2 : index
    %c0_186 = arith.constant 0 : index
    %c0_187 = arith.constant 0 : index
    %134 = vector.load %arg4[%c2_184, %c2_185, %c0_186, %c0_187] : memref<3x3x128x128xf32, #tpu.memory_space<vmem>>, vector<1x1x128x128xf32>
    %135 = vector.shape_cast %134 : vector<1x1x128x128xf32> to vector<128x128xf32>
    %cst_188 = arith.constant dense<0.000000e+00> : vector<64x128xf32>
    %136 = tpu.matmul %133, %135, %cst_188 {dimension_numbers = #tpu.dot_dimension_numbers<[1], [0], [0], [1], [0, 0, 1, 1], [], []>} : vector<64x128xf32>, vector<128x128xf32>, vector<64x128xf32> -> vector<64x128xf32>
    %137 = arith.addf %131, %136 : vector<64x128xf32>
    %c0_189 = arith.constant 0 : index
    %c0_190 = arith.constant 0 : index
    %138 = vector.load %arg5[%c0_189, %c0_190] : memref<1x128xf32, #tpu.memory_space<vmem>>, vector<1x128xf32>
    %139 = vector.broadcast %138 : vector<1x128xf32> to vector<64x128xf32>
    %140 = arith.addf %137, %139 : vector<64x128xf32>
    %cst_191 = arith.constant 1.000000e-01 : f32
    %141 = vector.broadcast %cst_191 : f32 to vector<64x128xf32>
    %142 = arith.mulf %141, %140 : vector<64x128xf32>
    %143 = arith.maximumf %140, %142 : vector<64x128xf32>
    %144 = vector.shape_cast %143 : vector<64x128xf32> to vector<8x8x128xf32>
    %c0_192 = arith.constant 0 : index
    %c0_193 = arith.constant 0 : index
    %c0_194 = arith.constant 0 : index
    %145 = vector.load %arg12[%c0_192, %c0_193, %c0_194] : memref<9x9x128xf32, #tpu.memory_space<vmem>>, vector<8x8x128xf32>
    tpu.vector_store %arg12[%c0_192, %c0_193, %c0_194], %144 {strides = array<i32>} : memref<9x9x128xf32, #tpu.memory_space<vmem>>, vector<8x8x128xf32>,
    %146 = vector.extract_strided_slice %144 {offsets = [0, 7, 0], sizes = [8, 1, 128], strides = [1, 1, 1]} : vector<8x8x128xf32> to vector<8x1x128xf32>
    %c0_195 = arith.constant 0 : index
    %c8_196 = arith.constant 8 : index
    %c0_197 = arith.constant 0 : index
    %147 = vector.load %arg12[%c0_195, %c8_196, %c0_197] : memref<9x9x128xf32, #tpu.memory_space<vmem>>, vector<8x1x128xf32>
    tpu.vector_store %arg12[%c0_195, %c8_196, %c0_197], %146 {strides = array<i32>} : memref<9x9x128xf32, #tpu.memory_space<vmem>>, vector<8x1x128xf32>,
    %c7_198 = arith.constant 7 : index
    %c0_199 = arith.constant 0 : index
    %c0_200 = arith.constant 0 : index
    %148 = vector.load %arg12[%c7_198, %c0_199, %c0_200] : memref<9x9x128xf32, #tpu.memory_space<vmem>>, vector<1x9x128xf32>
    %c8_201 = arith.constant 8 : index
    %c0_202 = arith.constant 0 : index
    %c0_203 = arith.constant 0 : index
    %149 = vector.load %arg12[%c8_201, %c0_202, %c0_203] : memref<9x9x128xf32, #tpu.memory_space<vmem>>, vector<1x9x128xf32>
    tpu.vector_store %arg12[%c8_201, %c0_202, %c0_203], %148 {strides = array<i32>} : memref<9x9x128xf32, #tpu.memory_space<vmem>>, vector<1x9x128xf32>,
    %c0_204 = arith.constant 0 : index
    %c0_205 = arith.constant 0 : index
    %c0_206 = arith.constant 0 : index
    %150 = vector.load %arg12[%c0_204, %c0_205, %c0_206] : memref<9x9x128xf32, #tpu.memory_space<vmem>>, vector<8x8x128xf32>
    %c0_207 = arith.constant 0 : index
    %c1_208 = arith.constant 1 : index
    %c0_209 = arith.constant 0 : index
    %151 = vector.load %arg12[%c0_207, %c1_208, %c0_209] : memref<9x9x128xf32, #tpu.memory_space<vmem>>, vector<8x8x128xf32>
    %c1_210 = arith.constant 1 : index
    %c0_211 = arith.constant 0 : index
    %c0_212 = arith.constant 0 : index
    %152 = vector.load %arg12[%c1_210, %c0_211, %c0_212] : memref<9x9x128xf32, #tpu.memory_space<vmem>>, vector<8x8x128xf32>
    %c1_213 = arith.constant 1 : index
    %c1_214 = arith.constant 1 : index
    %c0_215 = arith.constant 0 : index
    %153 = vector.load %arg12[%c1_213, %c1_214, %c0_215] : memref<9x9x128xf32, #tpu.memory_space<vmem>>, vector<8x8x128xf32>
    %154 = arith.maximumf %150, %151 : vector<8x8x128xf32>
    %155 = arith.maximumf %152, %153 : vector<8x8x128xf32>
    %156 = arith.maximumf %154, %155 : vector<8x8x128xf32>
    %157 = vector.shape_cast %156 : vector<8x8x128xf32> to vector<64x128xf32>
    %c0_216 = arith.constant 0 : index
    %c0_217 = arith.constant 0 : index
    %158 = vector.load %arg6[%c0_216, %c0_217] : memref<128x128xf32, #tpu.memory_space<vmem>>, vector<128x128xf32>
    %cst_218 = arith.constant dense<0.000000e+00> : vector<64x128xf32>
    %159 = tpu.matmul %157, %158, %cst_218 {dimension_numbers = #tpu.dot_dimension_numbers<[1], [0], [0], [1], [0, 0, 1, 1], [], []>} : vector<64x128xf32>, vector<128x128xf32>, vector<64x128xf32> -> vector<64x128xf32>
    %c0_219 = arith.constant 0 : index
    %c0_220 = arith.constant 0 : index
    %160 = vector.load %arg7[%c0_219, %c0_220] : memref<1x128xf32, #tpu.memory_space<vmem>>, vector<1x128xf32>
    %161 = vector.broadcast %160 : vector<1x128xf32> to vector<64x128xf32>
    %162 = arith.addf %159, %161 : vector<64x128xf32>
    %163 = vector.shape_cast %162 : vector<64x128xf32> to vector<8x8x128xf32>
    %c0_221 = arith.constant 0 : index
    %c0_222 = arith.constant 0 : index
    %c0_223 = arith.constant 0 : index
    %c0_224 = arith.constant 0 : index
    %164 = vector.load %arg8[%c0_221, %c0_222, %c0_223, %c0_224] : memref<1x8x8x128xf32, #tpu.memory_space<vmem>>, vector<1x8x8x128xf32>
    %165 = vector.shape_cast %164 : vector<1x8x8x128xf32> to vector<8x8x128xf32>
    %166 = vector.shape_cast %163 : vector<8x8x128xf32> to vector<1x8x8x128xf32>
    tpu.vector_store %arg8[%c0_221, %c0_222, %c0_223, %c0_224], %166 {strides = array<i32>} : memref<1x8x8x128xf32, #tpu.memory_space<vmem>>, vector<1x8x8x128xf32>,
    return
  }
  func.func @transform_0(%arg0: i32) -> (i32, i32, i32, i32) {
    %c0_i32 = arith.constant 0 : i32
    %c0_i32_0 = arith.constant 0 : i32
    %c0_i32_1 = arith.constant 0 : i32
    %c0_i32_2 = arith.constant 0 : i32
    return %arg0, %c0_i32, %c0_i32_0, %c0_i32_1 : i32, i32, i32, i32
  }
  func.func @transform_1(%arg0: i32) -> (i32, i32, i32, i32) {
    %c0_i32 = arith.constant 0 : i32
    %c0_i32_0 = arith.constant 0 : i32
    %c0_i32_1 = arith.constant 0 : i32
    %c0_i32_2 = arith.constant 0 : i32
    %c0_i32_3 = arith.constant 0 : i32
    return %c0_i32, %c0_i32_0, %c0_i32_1, %c0_i32_2 : i32, i32, i32, i32
  }
  func.func @transform_2(%arg0: i32) -> (i32, i32) {
    %c0_i32 = arith.constant 0 : i32
    %c0_i32_0 = arith.constant 0 : i32
    %c0_i32_1 = arith.constant 0 : i32
    return %c0_i32, %c0_i32_0 : i32, i32
  }
  func.func @transform_3(%arg0: i32) -> (i32, i32, i32, i32) {
    %c0_i32 = arith.constant 0 : i32
    %c0_i32_0 = arith.constant 0 : i32
    %c0_i32_1 = arith.constant 0 : i32
    %c0_i32_2 = arith.constant 0 : i32
    %c0_i32_3 = arith.constant 0 : i32
    return %c0_i32, %c0_i32_0, %c0_i32_1, %c0_i32_2 : i32, i32, i32, i32
  }
  func.func @transform_4(%arg0: i32) -> (i32, i32) {
    %c0_i32 = arith.constant 0 : i32
    %c0_i32_0 = arith.constant 0 : i32
    %c0_i32_1 = arith.constant 0 : i32
    return %c0_i32, %c0_i32_0 : i32, i32
  }
  func.func @transform_5(%arg0: i32) -> (i32, i32) {
    %c0_i32 = arith.constant 0 : i32
    %c0_i32_0 = arith.constant 0 : i32
    %c0_i32_1 = arith.constant 0 : i32
    return %c0_i32, %c0_i32_0 : i32, i32
  }
  func.func @transform_6(%arg0: i32) -> (i32, i32) {
    %c0_i32 = arith.constant 0 : i32
    %c0_i32_0 = arith.constant 0 : i32
    %c0_i32_1 = arith.constant 0 : i32
    return %c0_i32, %c0_i32_0 : i32, i32
  }
  func.func @transform_7(%arg0: i32) -> (i32, i32, i32, i32) {
    %c0_i32 = arith.constant 0 : i32
    %c0_i32_0 = arith.constant 0 : i32
    %c0_i32_1 = arith.constant 0 : i32
    %c0_i32_2 = arith.constant 0 : i32
    return %arg0, %c0_i32, %c0_i32_0, %c0_i32_1 : i32, i32, i32, i32
  }
}

</mosaic_0001>

<bundles_post_ra>
// kernel: darknet_forward.1
= control target key start
LH: loop header
LB: loop body
LE: loop exit
PB: predicated region body
PF: predicated region fallthrough
CT: control target
= control target key end

     0   :  { %s7900_s24 = smov 0   ;;  %s9725_s0 = inlined_call_operand.vmem [shape: f32[2,16,16,128], index: 0, kind: input, shape index: {}]   ;;  %s9726_s1 = inlined_call_operand.vmem [shape: f32[3,3,128,128], index: 1, kind: input, shape index: {}]   ;;  %s9727_s2 = inlined_call_operand.vmem [shape: f32[1,128], index: 2, kind: input, shape index: {}]   ;;  %s9728_s3 = inlined_call_operand.vmem [shape: f32[3,3,128,128], index: 3, kind: input, shape index: {}]   ;;  %s9729_s4 = inlined_call_operand.vmem [shape: f32[1,128], index: 4, kind: input, shape index: {}]   ;;  %s9730_s5 = inlined_call_operand.vmem [shape: f32[128,128], index: 5, kind: input, shape index: {}]   ;;  %s9731_s6 = inlined_call_operand.vmem [shape: f32[1,128], index: 6, kind: input, shape index: {}]   ;;  %s9732_s7 = inlined_call_operand.vmem [shape: f32[2,8,8,128], index: 7, kind: output, shape index: {}]  }
   0x1 LB: > { %s4808_s25 = sadd.s32 4294967295, %s7857_s24   ;;  %p4812_p0 = scmp.ge.s32.totalorder %s7857_s24, 1  ;;  %s7857_s24 = sphi %s7900_s24, %s17_s24  }
   0x2   : > { %p237_p1 = scmp.lt.s32.totalorder %s7857_s24, 3 }
   0x4   : > { %p238_p2 = pnand %p4812_p0, %p237_p1 }
   0x6   : > { %241 = sbr.rel (%p238_p2) target bundleno = 1413 (0x585), region = 48 }
   0xd   : > { %v4833_v0 = vld [vmem:[%s9726_s1 + $0x100] sm:$0xff]  ;;  %v4834_v1 = vld [vmem:[%s9726_s1 + $0x108] sm:$0xff]  ;;  %v7917_v2 = vld [vmem:[%s9726_s1 + $0x110] sm:$0xff]  ;;  %p7921_p3 = scmp.lt.s32.totalorder %s4808_s25, 1  ;;  %v9733_v5 = vmov 0.0  }
   0xe   : > { %v7925_v3 = vpack.c.bf16 %v4834_v1, %v4833_v0  ;;  %v7930_v4 = vld [vmem:[%s9726_s1 + $0x118] sm:$0xff]  ;;  %315 = vst [vmem:[#allocation2 + $0x8] sm:$0xff] %v9733_v5  ;;  %316 = vst [vmem:[#allocation2 + $0x10] sm:$0xff] %v9733_v5  ;;  %5784 = vmatprep.mubr.f32.mxu1 %v9733_v5  ;;  %v4837_v7 = vld [vmem:[%s9726_s1 + $0x120] sm:$0xff] }
   0xf   : > { %279 = vst [vmem:[#allocation2] sm:$0xff] %v9733_v5  ;;  %280 = vst [vmem:[#allocation2 + $0x20] sm:$0xff] %v9733_v5  ;;  %v6980_v6 = vpack.c.bf16 %v7930_v4, %v7917_v2  ;;  %v4838_v8 = vld [vmem:[%s9726_s1 + $0x128] sm:$0xff]  ;;  %s9848_s25 = smov (!%p7921_p3, %s4808_s25), 1  ;;  %v4839_v10 = vld [vmem:[%s9726_s1 + $0x130] sm:$0xff] }
  0x10   : > { %281 = vst [vmem:[#allocation2 + $0x40] sm:$0xff] %v9733_v5  ;;  %282 = vst [vmem:[#allocation2 + $0x60] sm:$0xff] %v9733_v5  ;;  %6977 = vmatprep.subr.bf16.mxu0 %v7925_v3  ;;  %s5078_s16 = sshll.u32 %s9848_s25, 8  ;;  %v6984_v9 = vpack.c.bf16 %v4838_v8, %v4837_v7  ;;  %v4840_v11 = vld [vmem:[%s9726_s1 + $0x138] sm:$0xff]  ;;  %v4841_v22 = vld [vmem:[%s9726_s1 + $0x140] sm:$0xff]  ;;  %s5079_s12 = sshll.u32 %s9848_s25, 6 }
  0x11   : > { %283 = vst [vmem:[#allocation2 + $0x80] sm:$0xff] %v9733_v5  ;;  %284 = vst [vmem:[#allocation2 + $0xa0] sm:$0xff] %v9733_v5  ;;  %6979 = vmatpush3.bf16.msra.mxu0 %v7925_v3  ;;  %s8021_s23 = scalar_lea.vmem %s9725_s0, %s5078_s16  ;;  %v6988_v18 = vpack.c.bf16 %v4840_v11, %v4839_v10  ;;  %v4842_v23 = vld [vmem:[%s9726_s1 + $0x148] sm:$0xff]  ;;  %v4843_v33 = vld [vmem:[%s9726_s1 + $0x150] sm:$0xff]  ;;  %s278_s17 = scalar_lea.vmem %s9732_s7, %s5079_s12 }
  0x12   : > { %285 = vst [vmem:[#allocation2 + $0xc0] sm:$0xff] %v9733_v5  ;;  %286 = vst [vmem:[#allocation2 + $0xe0] sm:$0xff] %v9733_v5  ;;  %6981 = vmatprep.subr.bf16.mxu0 %v6980_v6  ;;  %v8024_v12 = vld [vmem:[%s8021_s23] sm:$0xff]  ;;  %v8027_v13 = vld [vmem:[%s8021_s23 + $0x8] sm:$0xff]  ;;  %v6992_v29 = vpack.c.bf16 %v4842_v23, %v4841_v22 }
  0x13   : > { %287 = vst [vmem:[#allocation2 + $0x100] sm:$0xff] %v9733_v5  ;;  %288 = vst [vmem:[#allocation2 + $0x120] sm:$0xff] %v9733_v5  ;;  %v8030_v14 = vld [vmem:[%s8021_s23 + $0x10] sm:$0xff]  ;;  %v8035_v15 = vld [vmem:[%s8021_s23 + $0x18] sm:$0xff] }
  0x14   : > { %289 = vst [vmem:[#allocation2 + $0x140] sm:$0xff] %v9733_v5  ;;  %290 = vst [vmem:[#allocation2 + $0x160] sm:$0xff] %v9733_v5  ;;  %v8040_v17 = vld [vmem:[%s8021_s23 + $0x20] sm:$0xff]  ;;  %v8043_v19 = vld [vmem:[%s8021_s23 + $0x28] sm:$0xff] }
  0x15   : > { %291 = vst [vmem:[#allocation2 + $0x180] sm:$0xff] %v9733_v5  ;;  %292 = vst [vmem:[#allocation2 + $0x1a0] sm:$0xff] %v9733_v5  ;;  %6983 = vmatpush3.bf16.msra.mxu0 %v6980_v6  ;;  %v932_v16 = vld [vmem:[#allocation2 + $0x9] sm:$0xff]  ;;  %v8050_v21 = vld [vmem:[%s8021_s23 + $0x38] sm:$0xff] }
  0x16   : > { %293 = vst [vmem:[#allocation2 + $0x1c0] sm:$0xff] %v9733_v5  ;;  %294 = vst [vmem:[#allocation2 + $0x1e0] sm:$0xff] %v9733_v5  ;;  %6985 = vmatprep.subr.bf16.mxu0 %v6984_v9  ;;  %5944 = vmatprep.mubr.f32.mxu0 %v932_v16  ;;  %v8047_v20 = vld [vmem:[%s8021_s23 + $0x30] sm:$0xff]  ;;  %v8062_v24 = vld [vmem:[%s8021_s23 + $0x40] sm:$0xff] }
  0x17   : > { %295 = vst [vmem:[#allocation2 + $0x200] sm:$0xff] %v9733_v5  ;;  %296 = vst [vmem:[#allocation2 + $0x220] sm:$0xff] %v9733_v5  ;;  %v8065_v25 = vld [vmem:[%s8021_s23 + $0x48] sm:$0xff]  ;;  %v8069_v26 = vld [vmem:[%s8021_s23 + $0x50] sm:$0xff] }
  0x18   : > { %297 = vst [vmem:[#allocation2 + $0x18] sm:$0xff] %v9733_v5  ;;  %298 = vst [vmem:[#allocation2 + $0x38] sm:$0xff] %v9733_v5  ;;  %v8072_v27 = vld [vmem:[%s8021_s23 + $0x58] sm:$0xff]  ;;  %v8078_v28 = vld [vmem:[%s8021_s23 + $0x60] sm:$0xff] }
  0x19   : > { %299 = vst [vmem:[#allocation2 + $0x58] sm:$0xff] %v9733_v5  ;;  %300 = vst [vmem:[#allocation2 + $0x78] sm:$0xff] %v9733_v5  ;;  %6987 = vmatpush3.bf16.msra.mxu0 %v6984_v9  ;;  %v8081_v30 = vld [vmem:[%s8021_s23 + $0x68] sm:$0xff]  ;;  %v8085_v31 = vld [vmem:[%s8021_s23 + $0x70] sm:$0xff] }
  0x1a   : > { %301 = vst [vmem:[#allocation2 + $0x98] sm:$0xff] %v9733_v5  ;;  %302 = vst [vmem:[#allocation2 + $0xb8] sm:$0xff] %v9733_v5  ;;  %6989 = vmatprep.subr.bf16.mxu0 %v6988_v18  ;;  %v8088_v32 = vld [vmem:[%s8021_s23 + $0x78] sm:$0xff]  ;;  %v8100_v35 = vld [vmem:[%s8021_s23 + $0x80] sm:$0xff] }
  0x1b   : > { %303 = vst [vmem:[#allocation2 + $0xd8] sm:$0xff] %v9733_v5  ;;  %304 = vst [vmem:[#allocation2 + $0xf8] sm:$0xff] %v9733_v5  ;;  %v4844_v34 = vld [vmem:[%s9726_s1 + $0x158] sm:$0xff]  ;;  %v8103_v36 = vld [vmem:[%s8021_s23 + $0x88] sm:$0xff] }
  0x1c   : > { %305 = vst [vmem:[#allocation2 + $0x118] sm:$0xff] %v9733_v5  ;;  %306 = vst [vmem:[#allocation2 + $0x138] sm:$0xff] %v9733_v5  ;;  %v8106_v37 = vld [vmem:[%s8021_s23 + $0x90] sm:$0xff]  ;;  %v6996_v38 = vpack.c.bf16 %v4844_v34, %v4843_v33  ;;  %v4845_v39 = vld [vmem:[%s9726_s1 + $0x160] sm:$0xff] }
  0x1d   : > { %307 = vst [vmem:[#allocation2 + $0x158] sm:$0xff] %v9733_v5  ;;  %308 = vst [vmem:[#allocation2 + $0x178] sm:$0xff] %v9733_v5  ;;  %6991 = vmatpush3.bf16.msra.mxu0 %v6988_v18  ;;  %v4846_v40 = vld [vmem:[%s9726_s1 + $0x168] sm:$0xff]  ;;  %v8118_v41 = vld [vmem:[%s8021_s23 + $0x98] sm:$0xff] }
  0x1e   : > { %309 = vst [vmem:[#allocation2 + $0x198] sm:$0xff] %v9733_v5  ;;  %310 = vst [vmem:[#allocation2 + $0x1b8] sm:$0xff] %v9733_v5  ;;  %6993 = vmatprep.subr.bf16.mxu0 %v6992_v29  ;;  %v8122_v42 = vld [vmem:[%s8021_s23 + $0xa0] sm:$0xff]  ;;  %v7000_v43 = vpack.c.bf16 %v4846_v40, %v4845_v39  ;;  %v4847_v44 = vld [vmem:[%s9726_s1 + $0x170] sm:$0xff] }
  0x1f   : > { %311 = vst [vmem:[#allocation2 + $0x1d8] sm:$0xff] %v9733_v5  ;;  %312 = vst [vmem:[#allocation2 + $0x1f8] sm:$0xff] %v9733_v5  ;;  %v4848_v45 = vld [vmem:[%s9726_s1 + $0x178] sm:$0xff]  ;;  %v8132_v46 = vld [vmem:[%s8021_s23 + $0xa8] sm:$0xff] }
  0x20   : > { %313 = vst [vmem:[#allocation2 + $0x218] sm:$0xff] %v9733_v5  ;;  %314 = vst [vmem:[#allocation2 + $0x238] sm:$0xff] %v9733_v5  ;;  %v8135_v47 = vld [vmem:[%s8021_s23 + $0xb0] sm:$0xff]  ;;  %v8139_v48 = vld [vmem:[%s8021_s23 + $0xb8] sm:$0xff]  ;;  %v7004_v50 = vpack.c.bf16 %v4848_v45, %v4847_v44 }
  0x21   : > { %318 = vst [vmem:[#allocation2 + $0x228] sm:$0xff] %v9733_v5  ;;  %319 = vst [vmem:[#allocation2 + $0x230] sm:$0xff] %v9733_v5  ;;  %6995 = vmatpush3.bf16.msra.mxu0 %v6992_v29  ;;  %v8144_v49 = vld [vmem:[%s8021_s23 + $0xc0] sm:$0xff]  ;;  %v8147_v51 = vld [vmem:[%s8021_s23 + $0xc8] sm:$0xff] }
  0x22   : > { %3249 = vst [vmem:[#allocation4] sm:$0xff] %v9733_v5  ;;  %3250 = vst [vmem:[#allocation4 + $0x18] sm:$0xff] %v9733_v5  ;;  %6997 = vmatprep.subr.bf16.mxu0 %v6996_v38  ;;  %v8151_v52 = vld [vmem:[%s8021_s23 + $0xd0] sm:$0xff]  ;;  %v8154_v53 = vld [vmem:[%s8021_s23 + $0xd8] sm:$0xff] }
  0x23   : > { %3251 = vst [vmem:[#allocation4 + $0x30] sm:$0xff] %v9733_v5  ;;  %3252 = vst [vmem:[#allocation4 + $0x48] sm:$0xff] %v9733_v5  ;;  %v4849_v54 = vld [vmem:[%s9726_s1 + $0x180] sm:$0xff]  ;;  %v4850_v55 = vld [vmem:[%s9726_s1 + $0x188] sm:$0xff] }
  0x24   : > { %3253 = vst [vmem:[#allocation4 + $0x60] sm:$0xff] %v9733_v5  ;;  %3254 = vst [vmem:[#allocation4 + $0x78] sm:$0xff] %v9733_v5  ;;  %v8166_v56 = vld [vmem:[%s8021_s23 + $0xe0] sm:$0xff]  ;;  %v8169_v57 = vld [vmem:[%s8021_s23 + $0xe8] sm:$0xff]  ;;  %v7008_v58 = vpack.c.bf16 %v4850_v55, %v4849_v54 }
  0x25   : > { %3255 = vst [vmem:[#allocation4 + $0x90] sm:$0xff] %v9733_v5  ;;  %3256 = vst [vmem:[#allocation4 + $0xa8] sm:$0xff] %v9733_v5  ;;  %6999 = vmatpush3.bf16.msra.mxu0 %v6996_v38  ;;  %v4851_v59 = vld [vmem:[%s9726_s1 + $0x190] sm:$0xff]  ;;  %v4852_v60 = vld [vmem:[%s9726_s1 + $0x198] sm:$0xff] }
  0x26   : > { %3257 = vst [vmem:[#allocation4 + $0xc0] sm:$0xff] %v9733_v5  ;;  %3258 = vst [vmem:[#allocation4 + $0xd8] sm:$0xff] %v9733_v5  ;;  %7001 = vmatprep.subr.bf16.mxu0 %v7000_v43  ;;  %v933_v61 = vld [vmem:[#allocation2 + $0x11] sm:$0xff]  ;;  %v7012_v63 = vpack.c.bf16 %v4852_v60, %v4851_v59  ;;  %v4853_v0 = vld [vmem:[%s9726_s1 + $0x1a0] sm:$0xff] }
  0x27   : > { %3259 = vst [vmem:[#allocation4 + $0x10] sm:$0xff] %v9733_v5  ;;  %3260 = vst [vmem:[#allocation4 + $0x28] sm:$0xff] %v9733_v5  ;;  %v4854_v1 = vld [vmem:[%s9726_s1 + $0x1a8] sm:$0xff]  ;;  %v4855_v6 = vld [vmem:[%s9726_s1 + $0x1b0] sm:$0xff] }
  0x28   : > { %3261 = vst [vmem:[#allocation4 + $0x40] sm:$0xff] %v9733_v5  ;;  %3262 = vst [vmem:[#allocation4 + $0x58] sm:$0xff] %v9733_v5  ;;  %v7016_v4 = vpack.c.bf16 %v4854_v1, %v4853_v0  ;;  %v4856_v7 = vld [vmem:[%s9726_s1 + $0x1b8] sm:$0xff]  ;;  %v4857_v11 = vld [vmem:[%s9726_s1 + $0x1c0] sm:$0xff] }
  0x29   : > { %3263 = vst [vmem:[#allocation4 + $0x70] sm:$0xff] %v9733_v5  ;;  %3264 = vst [vmem:[#allocation4 + $0x88] sm:$0xff] %v9733_v5  ;;  %7003 = vmatpush3.bf16.msra.mxu0 %v7000_v43  ;;  %v7020_v10 = vpack.c.bf16 %v4856_v7, %v4855_v6  ;;  %v4858_v16 = vld [vmem:[%s9726_s1 + $0x1c8] sm:$0xff]  ;;  %v4859_v29 = vld [vmem:[%s9726_s1 + $0x1d0] sm:$0xff] }
  0x2a   : > { %3265 = vst [vmem:[#allocation4 + $0xa0] sm:$0xff] %v9733_v5  ;;  %3266 = vst [vmem:[#allocation4 + $0xb8] sm:$0xff] %v9733_v5  ;;  %7005 = vmatprep.subr.bf16.mxu0 %v7004_v50  ;;  %v7024_v23 = vpack.c.bf16 %v4858_v16, %v4857_v11  ;;  %v4860_v33 = vld [vmem:[%s9726_s1 + $0x1d8] sm:$0xff]  ;;  %v8223_v34 = vld [vmem:[%s8021_s23 + $0xf0] sm:$0xff] }
  0x2b   : > { %3267 = vst [vmem:[#allocation4 + $0xd0] sm:$0xff] %v9733_v5  ;;  %3268 = vst [vmem:[#allocation4 + $0xe8] sm:$0xff] %v9733_v5  ;;  %v8228_v38 = vld [vmem:[%s8021_s23 + $0xf8] sm:$0xff]  ;;  %v7028_v43 = vpack.c.bf16 %v4860_v33, %v4859_v29  ;;  %v4861_v44 = vld [vmem:[%s9726_s1 + $0x1e0] sm:$0xff] }
  0x2c   : > { %3269 = vst [vmem:[#allocation4 + $0x8] sm:$0xff] %v9733_v5  ;;  %3271 = vst [vmem:[#allocation4 + $0xe0] sm:$0xff] %v9733_v5  ;;  %v4862_v45 = vld [vmem:[%s9726_s1 + $0x1e8] sm:$0xff]  ;;  %v4864_v59 = vld [vmem:[%s9726_s1 + $0x1f8] sm:$0xff] }
  0x2d   : > { %353 = vst [vmem:[#allocation2 + $0x28] sm:$0xff] %v8024_v12  ;;  %354 = vst [vmem:[#allocation2 + $0x30] sm:$0xff] %v8027_v13  ;;  %7007 = vmatpush3.bf16.msra.mxu0 %v7004_v50  ;;  %v7032_v55 = vpack.c.bf16 %v4862_v45, %v4861_v44  ;;  %v4865_v0 = vld [vmem:[%s9726_s1 + $0x200] sm:$0xff]  ;;  %v4866_v1 = vld [vmem:[%s9726_s1 + $0x208] sm:$0xff] }
  0x2e   : > { %355 = vst [vmem:[#allocation2 + $0x48] sm:$0xff] %v8030_v14  ;;  %356 = vst [vmem:[#allocation2 + $0x50] sm:$0xff] %v8035_v15  ;;  %7009 = vmatprep.subr.bf16.mxu0 %v7008_v58  ;;  %v7040_v7 = vpack.c.bf16 %v4866_v1, %v4865_v0 }
  0x2f   : > { %357 = vst [vmem:[#allocation2 + $0x68] sm:$0xff] %v8040_v17  ;;  %358 = vst [vmem:[#allocation2 + $0x70] sm:$0xff] %v8043_v19 }
  0x30   : > { %359 = vst [vmem:[#allocation2 + $0x88] sm:$0xff] %v8047_v20  ;;  %360 = vst [vmem:[#allocation2 + $0x90] sm:$0xff] %v8050_v21  ;;  %5945 = vmatmul.mubr.f32.vlgmr.msra.gmra.mrb[0].mxu0 %v933_v61 }
  0x31   : > { %361 = vst [vmem:[#allocation2 + $0xa8] sm:$0xff] %v8062_v24  ;;  %362 = vst [vmem:[#allocation2 + $0xb0] sm:$0xff] %v8065_v25  ;;  %7011 = vmatpush3.bf16.msra.mxu0 %v7008_v58  ;;  %v4863_v58 = vld [vmem:[%s9726_s1 + $0x1f0] sm:$0xff] }
  0x32   : > { %363 = vst [vmem:[#allocation2 + $0xc8] sm:$0xff] %v8069_v26  ;;  %364 = vst [vmem:[#allocation2 + $0xd0] sm:$0xff] %v8072_v27  ;;  %7013 = vmatprep.subr.bf16.mxu0 %v7012_v63 }
  0x33   : > { %365 = vst [vmem:[#allocation2 + $0xe8] sm:$0xff] %v8078_v28  ;;  %366 = vst [vmem:[#allocation2 + $0xf0] sm:$0xff] %v8081_v30 }
  0x34   : > { %367 = vst [vmem:[#allocation2 + $0x108] sm:$0xff] %v8085_v31  ;;  %368 = vst [vmem:[#allocation2 + $0x110] sm:$0xff] %v8088_v32  ;;  %v8179_v62 = vld [vmem:[#allocation2 + $0x29] sm:$0xff]  ;;  %v8188_v2 = vld [vmem:[#allocation2 + $0x31] sm:$0xff] }
  0x35   : > { %369 = vst [vmem:[#allocation2 + $0x128] sm:$0xff] %v8100_v35  ;;  %370 = vst [vmem:[#allocation2 + $0x130] sm:$0xff] %v8103_v36  ;;  %5947 = vmatprep.mubr.f32.mxu0 %v8179_v62  ;;  %v8190_v3 = vld [vmem:[#allocation2 + $0x49] sm:$0xff]  ;;  %v8200_v8 = vld [vmem:[#allocation2 + $0x51] sm:$0xff]  ;;  %7015 = vmatpush3.bf16.msra.mxu0 %v7012_v63  ;;  %v7036_v63 = vpack.c.bf16 %v4864_v59, %v4863_v58 }
  0x36   : > { %371 = vst [vmem:[#allocation2 + $0x148] sm:$0xff] %v8106_v37  ;;  %372 = vst [vmem:[#allocation2 + $0x150] sm:$0xff] %v8118_v41  ;;  %5948 = vmatmul.mubr.f32.gmra.mrb[2].mxu0 %v8188_v2  ;;  %v8202_v9 = vld [vmem:[#allocation2 + $0x69] sm:$0xff]  ;;  %7017 = vmatprep.subr.bf16.mxu0 %v7016_v4  ;;  %v8212_v18 = vld [vmem:[#allocation2 + $0x71] sm:$0xff] }
  0x37   : > { %373 = vst [vmem:[#allocation2 + $0x168] sm:$0xff] %v8122_v42  ;;  %374 = vst [vmem:[#allocation2 + $0x170] sm:$0xff] %v8132_v46  ;;  %5950 = vmatprep.mubr.f32.mxu0 %v8190_v3  ;;  %v8214_v22 = vld [vmem:[#allocation2 + $0x89] sm:$0xff]  ;;  %v8231_v39 = vld [vmem:[#allocation2 + $0x91] sm:$0xff] }
  0x38   : > { %375 = vst [vmem:[#allocation2 + $0x188] sm:$0xff] %v8135_v47  ;;  %376 = vst [vmem:[#allocation2 + $0x190] sm:$0xff] %v8139_v48  ;;  %v8234_v40 = vld [vmem:[#allocation2 + $0xa9] sm:$0xff]  ;;  %v8244_v50 = vld [vmem:[#allocation2 + $0xb1] sm:$0xff] }
  0x39   : > { %377 = vst [vmem:[#allocation2 + $0x1a8] sm:$0xff] %v8144_v49  ;;  %378 = vst [vmem:[#allocation2 + $0x1b0] sm:$0xff] %v8147_v51  ;;  %7019 = vmatpush3.bf16.msra.mxu0 %v7016_v4  ;;  %v8246_v54 = vld [vmem:[#allocation2 + $0xc9] sm:$0xff]  ;;  %v8256_v60 = vld [vmem:[#allocation2 + $0xd1] sm:$0xff] }
  0x3a   : > { %379 = vst [vmem:[#allocation2 + $0x1c8] sm:$0xff] %v8151_v52  ;;  %380 = vst [vmem:[#allocation2 + $0x1d0] sm:$0xff] %v8154_v53  ;;  %5951 = vmatmul.mubr.f32.gmra.mrb[4].mxu0 %v8200_v8  ;;  %7021 = vmatprep.subr.bf16.mxu0 %v7020_v10  ;;  %v8258_v61 = vld [vmem:[#allocation2 + $0xe9] sm:$0xff]  ;;  %v8268_v4 = vld [vmem:[#allocation2 + $0xf1] sm:$0xff] }
  0x3b   : > { %381 = vst [vmem:[#allocation2 + $0x1e8] sm:$0xff] %v8166_v56  ;;  %382 = vst [vmem:[#allocation2 + $0x1f0] sm:$0xff] %v8169_v57  ;;  %5953 = vmatprep.mubr.f32.mxu0 %v8202_v9  ;;  %v8270_v6 = vld [vmem:[#allocation2 + $0x109] sm:$0xff] }
  0x3c   : > { %383 = vst [vmem:[#allocation2 + $0x208] sm:$0xff] %v8223_v34  ;;  %384 = vst [vmem:[#allocation2 + $0x210] sm:$0xff] %v8228_v38  ;;  %v8276_v11 = vld [vmem:[#allocation2 + $0x129] sm:$0xff]  ;;  %v8280_v16 = vld [vmem:[#allocation2 + $0x131] sm:$0xff] }
  0x3d   : > { %7023 = vmatpush3.bf16.msra.mxu0 %v7020_v10  ;;  %v8274_v10 = vld [vmem:[#allocation2 + $0x111] sm:$0xff]  ;;  %v1238_v5 = vld [vmem:[#allocation2 + $0x27] sm:$0xff] }
  0x3e   : > { %5954 = vmatmul.mubr.f32.gmra.mrb[6].mxu0 %v8212_v18  ;;  %7025 = vmatprep.subr.bf16.mxu0 %v7024_v23  ;;  %v8286_v29 = vld [vmem:[#allocation2 + $0x151] sm:$0xff]  ;;  %v8288_v33 = vld [vmem:[#allocation2 + $0x169] sm:$0xff] }
  0x3f   : > { %5956 = vmatprep.mubr.f32.mxu0 %v8214_v22  ;;  %v8294_v44 = vld [vmem:[#allocation2 + $0x189] sm:$0xff]  ;;  %v8298_v45 = vld [vmem:[#allocation2 + $0x191] sm:$0xff] }
  0x40   : > { %9773 = vst [vmem:[#allocation7_spill] sm:$0xff] %v8294_v44  ;;  %9774 = vst [vmem:[#allocation8_spill] sm:$0xff] %v8298_v45  ;;  %v8304_v58 = vld [vmem:[#allocation2 + $0x1b1] sm:$0xff] }
  0x41   : > { %7027 = vmatpush3.bf16.msra.mxu0 %v7024_v23  ;;  %v8282_v23 = vld [vmem:[#allocation2 + $0x149] sm:$0xff]  ;;  %9776 = vst [vmem:[#allocation10_spill] sm:$0xff] %v8304_v58 }
  0x42   : > { %5957 = vmatmul.mubr.f32.gmra.mrb[8].mxu0 %v8231_v39  ;;  %7029 = vmatprep.subr.bf16.mxu0 %v7028_v43  ;;  %v8306_v59 = vld [vmem:[#allocation2 + $0x1c9] sm:$0xff]  ;;  %v8316_v1 = vld [vmem:[#allocation2 + $0x1f1] sm:$0xff] }
  0x43   : > { %5959 = vmatprep.mubr.f32.mxu0 %v8234_v40  ;;  %9777 = vst [vmem:[#allocation11_spill] sm:$0xff] %v8306_v59  ;;  %v8312_v0 = vld [vmem:[#allocation2 + $0x1e9] sm:$0xff]  ;;  %9780 = vst [vmem:[#allocation14_spill] sm:$0xff] %v8316_v1 }
  0x44   : > { %9779 = vst [vmem:[#allocation13_spill] sm:$0xff] %v8312_v0 }
  0x45   : > { %7031 = vmatpush3.bf16.msra.mxu0 %v7028_v43  ;;  %v8292_v43 = vld [vmem:[#allocation2 + $0x171] sm:$0xff] }
  0x46   : > { %5960 = vmatmul.mubr.f32.gmra.mrb[10].mxu0 %v8244_v50  ;;  %7033 = vmatprep.subr.bf16.mxu0 %v7032_v55  ;;  %9772 = vst [vmem:[#allocation6_spill] sm:$0xff] %v8292_v43 }
  0x47   : > { %5962 = vmatprep.mubr.f32.mxu0 %v8246_v54 }
  0x49   : > { %7035 = vmatpush3.bf16.msra.mxu0 %v7032_v55  ;;  %v8300_v55 = vld [vmem:[#allocation2 + $0x1a9] sm:$0xff] }
  0x4a   : > { %5963 = vmatmul.mubr.f32.gmra.mrb[12].mxu0 %v8256_v60  ;;  %7037 = vmatprep.subr.bf16.mxu0 %v7036_v63  ;;  %9775 = vst [vmem:[#allocation9_spill] sm:$0xff] %v8300_v55 }
  0x4b   : > { %5965 = vmatprep.mubr.f32.mxu0 %v8258_v61 }
  0x4d   : > { %7039 = vmatpush3.bf16.msra.mxu0 %v7036_v63  ;;  %v8310_v63 = vld [vmem:[#allocation2 + $0x1d1] sm:$0xff] }
  0x4e   : > { %5966 = vmatmul.mubr.f32.gmra.mrb[14].mxu0 %v8268_v4  ;;  %7041 = vmatprep.subr.bf16.mxu0 %v7040_v7  ;;  %9778 = vst [vmem:[#allocation12_spill] sm:$0xff] %v8310_v63 }
  0x4f   : > { %5968 = vmatprep.mubr.f32.mxu0 %v8270_v6 }
  0x52   : > { %5969 = vmatmul.mubr.f32.gmra.mrb[16].mxu0 %v8274_v10 }
  0x53   : > { %5971 = vmatprep.mubr.f32.mxu0 %v8276_v11 }
  0x56   : > { %5972 = vmatmul.mubr.f32.gmra.mrb[18].mxu0 %v8280_v16 }
  0x57   : > { %5974 = vmatprep.mubr.f32.mxu0 %v8282_v23 }
  0x5a   : > { %5975 = vmatmul.mubr.f32.gmra.mrb[20].mxu0 %v8286_v29 }
  0x5b   : > { %5977 = vmatprep.mubr.f32.mxu0 %v8288_v33 }
  0x5e   : > { %5978 = vmatmul.mubr.f32.gmra.mrb[22].mxu0 %v8292_v43  ;;  %v8334_v43 = vld [vmem:[#allocation2 + $0x4f] sm:$0xff] }
  0x5f   : > { %5980 = vmatprep.mubr.f32.mxu0 %v8294_v44  ;;  %v4870_v44 = vld [vmem:[%s9726_s1 + $0x228] sm:$0xff]  ;;  %9782 = vst [vmem:[#allocation16_spill] sm:$0xff] %v8334_v43 }
  0x62   : > { %5981 = vmatmul.mubr.f32.gmra.mrb[24].mxu0 %v8298_v45  ;;  %v8325_v45 = vld [vmem:[#allocation2 + $0x47] sm:$0xff] }
  0x63   : > { %5983 = vmatprep.mubr.f32.mxu0 %v8300_v55  ;;  %v4867_v55 = vld [vmem:[%s9726_s1 + $0x210] sm:$0xff]  ;;  %9781 = vst [vmem:[#allocation15_spill] sm:$0xff] %v8325_v45 }
  0x66   : > { %5984 = vmatmul.mubr.f32.gmra.mrb[26].mxu0 %v8304_v58  ;;  %v4868_v58 = vld [vmem:[%s9726_s1 + $0x218] sm:$0xff] }
  0x67   : > { %5986 = vmatprep.mubr.f32.mxu0 %v8306_v59  ;;  %v1239_v59 = vld [vmem:[#allocation2 + $0x2f] sm:$0xff] }
  0x6a   : > { %5987 = vmatmul.mubr.f32.gmra.mrb[28].mxu0 %v8310_v63  ;;  %v7044_v63 = vpack.c.bf16 %v4868_v58, %v4867_v55  ;;  %v4871_v55 = vld [vmem:[%s9726_s1 + $0x230] sm:$0xff]  ;;  %v4872_v58 = vld [vmem:[%s9726_s1 + $0x238] sm:$0xff] }
  0x6b   : > { %5989 = vmatprep.mubr.f32.mxu0 %v8312_v0  ;;  %v4869_v0 = vld [vmem:[%s9726_s1 + $0x220] sm:$0xff] }
  0x6e   : > { %5990 = vmatmul.mubr.f32.gmra.mrb[30].mxu0 %v8316_v1  ;;  %v8336_v1 = vld [vmem:[#allocation2 + $0x67] sm:$0xff] }
  0x6f   : > { %6024 = vmatprep.mubr.f32.mxu0 %v1238_v5  ;;  %9783 = vst [vmem:[#allocation17_spill] sm:$0xff] %v8336_v1  ;;  %v7048_v5 = vpack.c.bf16 %v4870_v44, %v4869_v0  ;;  %v4873_v44 = vld [vmem:[%s9726_s1 + $0x240] sm:$0xff]  ;;  %v4874_v0 = vld [vmem:[%s9726_s1 + $0x248] sm:$0xff] }
  0x72   : > { %6025 = vmatmul.mubr.f32.vlgmr.msra.gmra.mrb[0].mxu0 %v1239_v59  ;;  %v8348_v59 = vld [vmem:[#allocation2 + $0x87] sm:$0xff] }
  0x73   : > { %7043 = vmatpush3.bf16.msra.mxu0 %v7040_v7  ;;  %6027 = vmatprep.mubr.f32.mxu0 %v8325_v45  ;;  %v8346_v7 = vld [vmem:[#allocation2 + $0x6f] sm:$0xff]  ;;  %9785 = vst [vmem:[#allocation19_spill] sm:$0xff] %v8348_v59  ;;  %v7052_v45 = vpack.c.bf16 %v4872_v58, %v4871_v55  ;;  %v4876_v58 = vld [vmem:[%s9726_s1 + $0x258] sm:$0xff] }
  0x74   : > { %7045 = vmatprep.subr.bf16.mxu0 %v7044_v63  ;;  %9784 = vst [vmem:[#allocation18_spill] sm:$0xff] %v8346_v7  ;;  %v4875_v55 = vld [vmem:[%s9726_s1 + $0x250] sm:$0xff] }
  0x76   : > { %6028 = vmatmul.mubr.f32.gmra.mrb[2].mxu0 %v8334_v43  ;;  %v7056_v43 = vpack.c.bf16 %v4874_v0, %v4873_v44  ;;  %v4877_v44 = vld [vmem:[%s9726_s1 + $0x260] sm:$0xff]  ;;  %v4878_v0 = vld [vmem:[%s9726_s1 + $0x268] sm:$0xff] }
  0x77   : > { %6030 = vmatprep.mubr.f32.mxu0 %v8336_v1  ;;  %7047 = vmatpush3.bf16.msra.mxu0 %v7044_v63  ;;  %v8358_v1 = vld [vmem:[#allocation2 + $0x8f] sm:$0xff]  ;;  %v8360_v63 = vld [vmem:[#allocation2 + $0xa7] sm:$0xff] }
  0x78   : > { %7049 = vmatprep.subr.bf16.mxu0 %v7048_v5  ;;  %9786 = vst [vmem:[#allocation20_spill] sm:$0xff] %v8358_v1  ;;  %9787 = vst [vmem:[#allocation21_spill] sm:$0xff] %v8360_v63 }
  0x7a   : > { %6031 = vmatmul.mubr.f32.gmra.mrb[4].mxu0 %v8346_v7  ;;  %v7060_v7 = vpack.c.bf16 %v4876_v58, %v4875_v55  ;;  %v4879_v55 = vld [vmem:[%s9726_s1 + $0x270] sm:$0xff]  ;;  %v4880_v58 = vld [vmem:[%s9726_s1 + $0x278] sm:$0xff] }
  0x7b   : > { %6033 = vmatprep.mubr.f32.mxu0 %v8348_v59  ;;  %7051 = vmatpush3.bf16.msra.mxu0 %v7048_v5  ;;  %v8370_v59 = vld [vmem:[#allocation2 + $0xaf] sm:$0xff]  ;;  %v8372_v5 = vld [vmem:[#allocation2 + $0xc7] sm:$0xff] }
  0x7c   : > { %7053 = vmatprep.subr.bf16.mxu0 %v7052_v45  ;;  %9788 = vst [vmem:[#allocation22_spill] sm:$0xff] %v8370_v59  ;;  %9789 = vst [vmem:[#allocation23_spill] sm:$0xff] %v8372_v5 }
  0x7e   : > { %6034 = vmatmul.mubr.f32.gmra.mrb[6].mxu0 %v8358_v1  ;;  %v7064_v1 = vpack.c.bf16 %v4878_v0, %v4877_v44  ;;  %v4881_v44 = vld [vmem:[%s9726_s1 + $0x280] sm:$0xff]  ;;  %v4882_v0 = vld [vmem:[%s9726_s1 + $0x288] sm:$0xff] }
  0x7f   : > { %6036 = vmatprep.mubr.f32.mxu0 %v8360_v63  ;;  %7055 = vmatpush3.bf16.msra.mxu0 %v7052_v45  ;;  %v8382_v63 = vld [vmem:[#allocation2 + $0xcf] sm:$0xff]  ;;  %v8384_v45 = vld [vmem:[#allocation2 + $0xe7] sm:$0xff] }
  0x80   : > { %7057 = vmatprep.subr.bf16.mxu0 %v7056_v43  ;;  %9790 = vst [vmem:[#allocation24_spill] sm:$0xff] %v8382_v63  ;;  %9791 = vst [vmem:[#allocation25_spill] sm:$0xff] %v8384_v45 }
  0x82   : > { %6037 = vmatmul.mubr.f32.gmra.mrb[8].mxu0 %v8370_v59  ;;  %v7068_v59 = vpack.c.bf16 %v4880_v58, %v4879_v55  ;;  %v4817_v55 = vld [vmem:[%s9726_s1 + $0x80] sm:$0xff]  ;;  %v4818_v58 = vld [vmem:[%s9726_s1 + $0x88] sm:$0xff] }
  0x83   : > { %6039 = vmatprep.mubr.f32.mxu0 %v8372_v5  ;;  %7059 = vmatpush3.bf16.msra.mxu0 %v7056_v43  ;;  %v8394_v5 = vld [vmem:[#allocation2 + $0xef] sm:$0xff]  ;;  %v8396_v43 = vld [vmem:[#allocation2 + $0x107] sm:$0xff] }
  0x84   : > { %7061 = vmatprep.subr.bf16.mxu0 %v7060_v7  ;;  %9792 = vst [vmem:[#allocation26_spill] sm:$0xff] %v8394_v5  ;;  %9793 = vst [vmem:[#allocation27_spill] sm:$0xff] %v8396_v43 }
  0x86   : > { %6040 = vmatmul.mubr.f32.gmra.mrb[10].mxu0 %v8382_v63  ;;  %v8410_v63 = vpack.c.bf16 %v4882_v0, %v4881_v44  ;;  %v4819_v44 = vld [vmem:[%s9726_s1 + $0x90] sm:$0xff] }
  0x87   : > { %6042 = vmatprep.mubr.f32.mxu0 %v8384_v45  ;;  %7063 = vmatpush3.bf16.msra.mxu0 %v7060_v7  ;;  %v8406_v45 = vld [vmem:[#allocation2 + $0x10f] sm:$0xff]  ;;  %v8408_v7 = vld [vmem:[#allocation2 + $0x127] sm:$0xff] }
  0x88   : > { %7065 = vmatprep.subr.bf16.mxu0 %v7064_v1  ;;  %9794 = vst [vmem:[#allocation28_spill] sm:$0xff] %v8406_v45  ;;  %9795 = vst [vmem:[#allocation29_spill] sm:$0xff] %v8408_v7  ;;  %v8430_v0 = vld [vmem:[#allocation2 + $0x14f] sm:$0xff] }
  0x89   : > { %9798 = vst [vmem:[#allocation32_spill] sm:$0xff] %v8430_v0 }
  0x8a   : > { %6043 = vmatmul.mubr.f32.gmra.mrb[12].mxu0 %v8394_v5  ;;  %v8422_v5 = vld [vmem:[#allocation2 + $0x147] sm:$0xff] }
  0x8b   : > { %6045 = vmatprep.mubr.f32.mxu0 %v8396_v43  ;;  %7067 = vmatpush3.bf16.msra.mxu0 %v7064_v1  ;;  %v8420_v43 = vld [vmem:[#allocation2 + $0x12f] sm:$0xff]  ;;  %v6912_v1 = vpack.c.bf16 %v4818_v58, %v4817_v55  ;;  %9797 = vst [vmem:[#allocation31_spill] sm:$0xff] %v8422_v5  ;;  %v8435_v55 = vld [vmem:[#allocation2 + $0x167] sm:$0xff] }
  0x8c   : > { %7069 = vmatprep.subr.bf16.mxu0 %v7068_v59  ;;  %9796 = vst [vmem:[#allocation30_spill] sm:$0xff] %v8420_v43  ;;  %9799 = vst [vmem:[#allocation33_spill] sm:$0xff] %v8435_v55 }
  0x8d   : > { %6913 = vmatprep.subr.bf16.mxu1 %v6912_v1 }
  0x8e   : > { %6046 = vmatmul.mubr.f32.gmra.mrb[14].mxu0 %v8406_v45  ;;  %6915 = vmatpush3.bf16.msra.mxu1 %v6912_v1  ;;  %v4821_v1 = vld [vmem:[%s9726_s1 + $0xa0] sm:$0xff] }
  0x8f   : > { %6048 = vmatprep.mubr.f32.mxu0 %v8408_v7  ;;  %7071 = vmatpush3.bf16.msra.mxu0 %v7068_v59  ;;  %v4820_v59 = vld [vmem:[%s9726_s1 + $0x98] sm:$0xff]  ;;  %v8447_v45 = vld [vmem:[#allocation2 + $0x187] sm:$0xff] }
  0x90   : > { %7073 = vmatprep.subr.bf16.mxu0 %v8410_v63  ;;  %v6916_v58 = vpack.c.bf16 %v4820_v59, %v4819_v44  ;;  %9801 = vst [vmem:[#allocation35_spill] sm:$0xff] %v8447_v45  ;;  %v4823_v44 = vld [vmem:[%s9726_s1 + $0xb0] sm:$0xff] }
  0x91   : > { %v8454_v59 = vld [vmem:[#allocation2 + $0x18f] sm:$0xff] }
  0x92   : > { %6049 = vmatmul.mubr.f32.gmra.mrb[16].mxu0 %v8420_v43  ;;  %6917 = vmatprep.subr.bf16.mxu1 %v6916_v58  ;;  %v8445_v43 = vld [vmem:[#allocation2 + $0x16f] sm:$0xff]  ;;  %9802 = vst [vmem:[#allocation36_spill] sm:$0xff] %v8454_v59 }
  0x93   : > { %6051 = vmatprep.mubr.f32.mxu0 %v8422_v5  ;;  %v4822_v5 = vld [vmem:[%s9726_s1 + $0xa8] sm:$0xff]  ;;  %9800 = vst [vmem:[#allocation34_spill] sm:$0xff] %v8445_v43  ;;  %6919 = vmatpush3.bf16.msra.mxu1 %v6916_v58 }
  0x94   : > { %v6920_v7 = vpack.c.bf16 %v4822_v5, %v4821_v1  ;;  %v8459_v58 = vld [vmem:[#allocation2 + $0x1a7] sm:$0xff] }
  0x95   : > { %9803 = vst [vmem:[#allocation37_spill] sm:$0xff] %v8459_v58  ;;  %v4825_v1 = vld [vmem:[%s9726_s1 + $0xc0] sm:$0xff] }
  0x96   : > { %6052 = vmatmul.mubr.f32.gmra.mrb[18].mxu0 %v8430_v0  ;;  %6921 = vmatprep.subr.bf16.mxu1 %v6920_v7  ;;  %v8471_v0 = vld [vmem:[#allocation2 + $0x1c7] sm:$0xff] }
  0x97   : > { %6054 = vmatprep.mubr.f32.mxu0 %v8435_v55  ;;  %6923 = vmatpush3.bf16.msra.mxu1 %v6920_v7  ;;  %v4824_v55 = vld [vmem:[%s9726_s1 + $0xb8] sm:$0xff]  ;;  %v8469_v7 = vld [vmem:[#allocation2 + $0x1af] sm:$0xff]  ;;  %9805 = vst [vmem:[#allocation39_spill] sm:$0xff] %v8471_v0 }
  0x98   : > { %v6924_v5 = vpack.c.bf16 %v4824_v55, %v4823_v44  ;;  %9804 = vst [vmem:[#allocation38_spill] sm:$0xff] %v8469_v7  ;;  %v4827_v55 = vld [vmem:[%s9726_s1 + $0xd0] sm:$0xff] }
  0x99   : > { %v8478_v44 = vld [vmem:[#allocation2 + $0x1cf] sm:$0xff] }
  0x9a   : > { %6055 = vmatmul.mubr.f32.gmra.mrb[20].mxu0 %v8445_v43  ;;  %6925 = vmatprep.subr.bf16.mxu1 %v6924_v5 }
  0x9b   : > { %6057 = vmatprep.mubr.f32.mxu0 %v8447_v45  ;;  %v4826_v45 = vld [vmem:[%s9726_s1 + $0xc8] sm:$0xff]  ;;  %6927 = vmatpush3.bf16.msra.mxu1 %v6924_v5 }
  0x9c   : > { %v6928_v43 = vpack.c.bf16 %v4826_v45, %v4825_v1  ;;  %v8483_v5 = vld [vmem:[#allocation2 + $0x1e7] sm:$0xff] }
  0x9d   : > { %9806 = vst [vmem:[#allocation40_spill] sm:$0xff] %v8483_v5  ;;  %v4829_v1 = vld [vmem:[%s9726_s1 + $0xe0] sm:$0xff] }
  0x9e   : > { %6058 = vmatmul.mubr.f32.gmra.mrb[22].mxu0 %v8454_v59  ;;  %6929 = vmatprep.subr.bf16.mxu1 %v6928_v43  ;;  %v8495_v59 = vld [vmem:[#allocation2 + $0x207] sm:$0xff] }
  0x9f   : > { %6060 = vmatprep.mubr.f32.mxu0 %v8459_v58  ;;  %6931 = vmatpush3.bf16.msra.mxu1 %v6928_v43  ;;  %v4828_v58 = vld [vmem:[%s9726_s1 + $0xd8] sm:$0xff]  ;;  %v8493_v43 = vld [vmem:[#allocation2 + $0x1ef] sm:$0xff]  ;;  %9807 = vst [vmem:[#allocation41_spill] sm:$0xff] %v8495_v59 }
  0xa0   : > { %v6932_v45 = vpack.c.bf16 %v4828_v58, %v4827_v55  ;;  %v8499_v58 = vld [vmem:[#allocation2 + $0x20f] sm:$0xff] }
  0xa1   : > { %9808 = vst [vmem:[#allocation42_spill] sm:$0xff] %v8499_v58  ;;  %v4831_v55 = vld [vmem:[%s9726_s1 + $0xf0] sm:$0xff] }
  0xa2   : > { %6061 = vmatmul.mubr.f32.gmra.mrb[24].mxu0 %v8469_v7  ;;  %6933 = vmatprep.subr.bf16.mxu1 %v6932_v45 }
  0xa3   : > { %6063 = vmatprep.mubr.f32.mxu0 %v8471_v0  ;;  %v4830_v0 = vld [vmem:[%s9726_s1 + $0xe8] sm:$0xff]  ;;  %6935 = vmatpush3.bf16.msra.mxu1 %v6932_v45 }
  0xa4   : > { %v6936_v7 = vpack.c.bf16 %v4830_v0, %v4829_v1  ;;  %v4883_v0 = vld [vmem:[%s9726_s1 + $0x290] sm:$0xff]  ;;  %v4884_v1 = vld [vmem:[%s9726_s1 + $0x298] sm:$0xff] }
  0xa6   : > { %6064 = vmatmul.mubr.f32.gmra.mrb[26].mxu0 %v8478_v44  ;;  %6937 = vmatprep.subr.bf16.mxu1 %v6936_v7 }
  0xa7   : > { %6066 = vmatprep.mubr.f32.mxu0 %v8483_v5  ;;  %6939 = vmatpush3.bf16.msra.mxu1 %v6936_v7  ;;  %v4832_v5 = vld [vmem:[%s9726_s1 + $0xf8] sm:$0xff]  ;;  %v7076_v7 = vpack.c.bf16 %v4884_v1, %v4883_v0  ;;  %v4887_v0 = vld [vmem:[%s9726_s1 + $0x2b0] sm:$0xff] }
  0xa8   : > { %v6940_v45 = vpack.c.bf16 %v4832_v5, %v4831_v55  ;;  %v4886_v5 = vld [vmem:[%s9726_s1 + $0x2a8] sm:$0xff]  ;;  %v9809_v55 = vmov 0.0   ;;  %v4888_v1 = vld [vmem:[%s9726_s1 + $0x2b8] sm:$0xff] }
  0xaa   : > { %6067 = vmatmul.mubr.f32.gmra.mrb[28].mxu0 %v8493_v43  ;;  %6941 = vmatprep.subr.bf16.mxu1 %v6940_v45 }
  0xab   : > { %6069 = vmatprep.mubr.f32.mxu0 %v8495_v59  ;;  %6943 = vmatpush3.bf16.msra.mxu1 %v6940_v45  ;;  %v4885_v59 = vld [vmem:[%s9726_s1 + $0x2a0] sm:$0xff] }
  0xac   : > { %v7080_v45 = vpack.c.bf16 %v4886_v5, %v4885_v59  ;;  %v4889_v59 = vld [vmem:[%s9726_s1 + $0x2c0] sm:$0xff]  ;;  %v4891_v5 = vld [vmem:[%s9726_s1 + $0x2d0] sm:$0xff] }
  0xae   : > { %6070 = vmatmul.mubr.f32.gmra.mrb[30].mxu0 %v8499_v58  ;;  %5785 = vmatmul.mubr.f32.vlgmr.msra.gmra.mrb[0].mxu1 %v9809_v55  ;;  %v435_v58 = vld [vmem:[#allocation2 + $0x28] sm:$0xff]  ;;  %v8563_v55 = vld [vmem:[#allocation2 + $0x90] sm:$0xff] }
  0xaf   : > { %6104 = vmatprep.mubr.f32.mxu0 %v8024_v12  ;;  %v436_v12 = vld [vmem:[#allocation2 + $0x30] sm:$0xff]  ;;  %5787 = vmatprep.mubr.f32.mxu1 %v435_v58 }
  0xb0   : > { %v8549_v58 = vld [vmem:[#allocation2 + $0x70] sm:$0xff] }
  0xb2   : > { %6105 = vmatmul.mubr.f32.vlgmr.msra.gmra.mrb[0].mxu0 %v8027_v13  ;;  %5788 = vmatmul.mubr.f32.gmra.mrb[2].mxu1 %v436_v12  ;;  %v8532_v13 = vld [vmem:[#allocation2 + $0x48] sm:$0xff] }
  0xb3   : > { %7075 = vmatpush3.bf16.msra.mxu0 %v8410_v63  ;;  %6107 = vmatprep.mubr.f32.mxu0 %v8030_v14  ;;  %v8535_v14 = vld [vmem:[#allocation2 + $0x50] sm:$0xff]  ;;  %v7084_v63 = vpack.c.bf16 %v4888_v1, %v4887_v0 }
  0xb4   : > { %7077 = vmatprep.subr.bf16.mxu0 %v7076_v7  ;;  %5790 = vmatprep.mubr.f32.mxu1 %v8532_v13  ;;  %v8577_v0 = vld [vmem:[#allocation2 + $0xb0] sm:$0xff] }
  0xb6   : > { %6108 = vmatmul.mubr.f32.gmra.mrb[2].mxu0 %v8035_v15  ;;  %v4890_v15 = vld [vmem:[%s9726_s1 + $0x2c8] sm:$0xff]  ;;  %5791 = vmatmul.mubr.f32.gmra.mrb[4].mxu1 %v8535_v14 }
  0xb7   : > { %6110 = vmatprep.mubr.f32.mxu0 %v8040_v17  ;;  %7079 = vmatpush3.bf16.msra.mxu0 %v7076_v7  ;;  %v8546_v17 = vld [vmem:[#allocation2 + $0x68] sm:$0xff]  ;;  %v7088_v7 = vpack.c.bf16 %v4890_v15, %v4889_v59  ;;  %v8591_v59 = vld [vmem:[#allocation2 + $0xd0] sm:$0xff] }
  0xb8   : > { %7081 = vmatprep.subr.bf16.mxu0 %v7080_v45  ;;  %5793 = vmatprep.mubr.f32.mxu1 %v8546_v17 }
  0xba   : > { %6111 = vmatmul.mubr.f32.gmra.mrb[4].mxu0 %v8043_v19  ;;  %v4892_v19 = vld [vmem:[%s9726_s1 + $0x2d8] sm:$0xff]  ;;  %5794 = vmatmul.mubr.f32.gmra.mrb[6].mxu1 %v8549_v58 }
  0xbb   : > { %6113 = vmatprep.mubr.f32.mxu0 %v8047_v20  ;;  %7083 = vmatpush3.bf16.msra.mxu0 %v7080_v45  ;;  %v8560_v20 = vld [vmem:[#allocation2 + $0x88] sm:$0xff]  ;;  %v7092_v12 = vpack.c.bf16 %v4892_v19, %v4891_v5  ;;  %v4893_v45 = vld [vmem:[%s9726_s1 + $0x2e0] sm:$0xff]  ;;  %v8605_v5 = vld [vmem:[#allocation2 + $0xf0] sm:$0xff] }
  0xbc   : > { %7085 = vmatprep.subr.bf16.mxu0 %v7084_v63  ;;  %5796 = vmatprep.mubr.f32.mxu1 %v8560_v20 }
  0xbe   : > { %6114 = vmatmul.mubr.f32.gmra.mrb[6].mxu0 %v8050_v21  ;;  %v4894_v21 = vld [vmem:[%s9726_s1 + $0x2e8] sm:$0xff]  ;;  %5797 = vmatmul.mubr.f32.gmra.mrb[8].mxu1 %v8563_v55 }
  0xbf   : > { %6116 = vmatprep.mubr.f32.mxu0 %v8062_v24  ;;  %7087 = vmatpush3.bf16.msra.mxu0 %v7084_v63  ;;  %v8574_v24 = vld [vmem:[#allocation2 + $0xa8] sm:$0xff]  ;;  %v7096_v1 = vpack.c.bf16 %v4894_v21, %v4893_v45  ;;  %v4895_v63 = vld [vmem:[%s9726_s1 + $0x2f0] sm:$0xff] }
  0xc0   : > { %7089 = vmatprep.subr.bf16.mxu0 %v7088_v7  ;;  %5799 = vmatprep.mubr.f32.mxu1 %v8574_v24  ;;  %v8621_v45 = vld [vmem:[#allocation2 + $0x110] sm:$0xff] }
  0xc2   : > { %6117 = vmatmul.mubr.f32.gmra.mrb[8].mxu0 %v8065_v25  ;;  %v4896_v25 = vld [vmem:[%s9726_s1 + $0x2f8] sm:$0xff]  ;;  %5800 = vmatmul.mubr.f32.gmra.mrb[10].mxu1 %v8577_v0 }
  0xc3   : > { %6119 = vmatprep.mubr.f32.mxu0 %v8069_v26  ;;  %7091 = vmatpush3.bf16.msra.mxu0 %v7088_v7  ;;  %v8588_v26 = vld [vmem:[#allocation2 + $0xc8] sm:$0xff]  ;;  %v7100_v15 = vpack.c.bf16 %v4896_v25, %v4895_v63  ;;  %v4897_v7 = vld [vmem:[%s9726_s1 + $0x300] sm:$0xff]  ;;  %v420_v63 = vld [vmem:[%s9726_s1 + $0x18] sm:$0xff] }
  0xc4   : > { %7093 = vmatprep.subr.bf16.mxu0 %v7092_v12  ;;  %5802 = vmatprep.mubr.f32.mxu1 %v8588_v26  ;;  %v8641_v25 = vld [vmem:[#allocation2 + $0x148] sm:$0xff] }
  0xc6   : > { %6120 = vmatmul.mubr.f32.gmra.mrb[10].mxu0 %v8072_v27  ;;  %v4898_v27 = vld [vmem:[%s9726_s1 + $0x308] sm:$0xff]  ;;  %5803 = vmatmul.mubr.f32.gmra.mrb[12].mxu1 %v8591_v59 }
  0xc7   : > { %6122 = vmatprep.mubr.f32.mxu0 %v8078_v28  ;;  %7095 = vmatpush3.bf16.msra.mxu0 %v7092_v12  ;;  %v8602_v28 = vld [vmem:[#allocation2 + $0xe8] sm:$0xff]  ;;  %v8607_v19 = vpack.c.bf16 %v4898_v27, %v4897_v7  ;;  %v8650_v7 = vld [vmem:[#allocation2 + $0x150] sm:$0xff] }
  0xc8   : > { %7097 = vmatprep.subr.bf16.mxu0 %v7096_v1  ;;  %5805 = vmatprep.mubr.f32.mxu1 %v8602_v28  ;;  %v8612_v12 = vld [vmem:[#allocation2 + $0x108] sm:$0xff] }
  0xca   : > { %6123 = vmatmul.mubr.f32.gmra.mrb[12].mxu0 %v8081_v30  ;;  %5806 = vmatmul.mubr.f32.gmra.mrb[14].mxu1 %v8605_v5  ;;  %v417_v30 = vld [vmem:[%s9726_s1] sm:$0xff] }
  0xcb   : > { %6125 = vmatprep.mubr.f32.mxu0 %v8085_v31  ;;  %7099 = vmatpush3.bf16.msra.mxu0 %v7096_v1  ;;  %v418_v31 = vld [vmem:[%s9726_s1 + $0x8] sm:$0xff]  ;;  %v8630_v1 = vld [vmem:[#allocation2 + $0x130] sm:$0xff] }
  0xcc   : > { %7101 = vmatprep.subr.bf16.mxu0 %v7100_v15  ;;  %v6944_v21 = vpack.c.bf16 %v418_v31, %v417_v30  ;;  %5808 = vmatprep.mubr.f32.mxu1 %v8612_v12  ;;  %v8659_v30 = vld [vmem:[#allocation2 + $0x170] sm:$0xff]  ;;  %v424_v31 = vld [vmem:[%s9726_s1 + $0x38] sm:$0xff] }
  0xce   : > { %6126 = vmatmul.mubr.f32.gmra.mrb[14].mxu0 %v8088_v32  ;;  %6945 = vmatprep.subr.bf16.mxu1 %v6944_v21  ;;  %v8627_v32 = vld [vmem:[#allocation2 + $0x128] sm:$0xff] }
  0xcf   : > { %6128 = vmatprep.mubr.f32.mxu0 %v8100_v35  ;;  %7103 = vmatpush3.bf16.msra.mxu0 %v7100_v15  ;;  %v419_v35 = vld [vmem:[%s9726_s1 + $0x10] sm:$0xff]  ;;  %v422_v15 = vld [vmem:[%s9726_s1 + $0x28] sm:$0xff] }
  0xd0   : > { %7105 = vmatprep.subr.bf16.mxu0 %v8607_v19  ;;  %5809 = vmatmul.mubr.f32.gmra.mrb[16].mxu1 %v8621_v45 }
  0xd1   : > { %6947 = vmatpush3.bf16.msra.mxu1 %v6944_v21  ;;  %5811 = vmatprep.mubr.f32.mxu1 %v8627_v32  ;;  %v8669_v21 = vld [vmem:[#allocation2 + $0x188] sm:$0xff] }
  0xd2   : > { %6129 = vmatmul.mubr.f32.gmra.mrb[16].mxu0 %v8103_v36  ;;  %v6948_v36 = vpack.c.bf16 %v420_v63, %v419_v35  ;;  %v426_v35 = vld [vmem:[%s9726_s1 + $0x48] sm:$0xff]  ;;  %v8678_v63 = vld [vmem:[#allocation2 + $0x190] sm:$0xff] }
  0xd3   : > { %6131 = vmatprep.mubr.f32.mxu0 %v8106_v37  ;;  %v421_v37 = vld [vmem:[%s9726_s1 + $0x20] sm:$0xff] }
  0xd4   : > { %5812 = vmatmul.mubr.f32.gmra.mrb[18].mxu1 %v8630_v1  ;;  %6949 = vmatprep.subr.bf16.mxu1 %v6948_v36  ;;  %v6952_v27 = vpack.c.bf16 %v422_v15, %v421_v37  ;;  %v8687_v37 = vld [vmem:[#allocation2 + $0x1b0] sm:$0xff]  ;;  %v428_v15 = vld [vmem:[%s9726_s1 + $0x58] sm:$0xff] }
  0xd5   : > { %6951 = vmatpush3.bf16.msra.mxu1 %v6948_v36  ;;  %5814 = vmatprep.mubr.f32.mxu1 %v8641_v25 }
  0xd6   : > { %6132 = vmatmul.mubr.f32.gmra.mrb[18].mxu0 %v8118_v41  ;;  %6953 = vmatprep.subr.bf16.mxu1 %v6952_v27  ;;  %v8655_v41 = vld [vmem:[#allocation2 + $0x168] sm:$0xff] }
  0xd7   : > { %6134 = vmatprep.mubr.f32.mxu0 %v8122_v42  ;;  %v423_v42 = vld [vmem:[%s9726_s1 + $0x30] sm:$0xff] }
  0xd8   : > { %5815 = vmatmul.mubr.f32.gmra.mrb[20].mxu1 %v8650_v7 }
  0xd9   : > { %5817 = vmatprep.mubr.f32.mxu1 %v8655_v41  ;;  %6955 = vmatpush3.bf16.msra.mxu1 %v6952_v27  ;;  %v8697_v27 = vld [vmem:[#allocation2 + $0x1c8] sm:$0xff] }
  0xda   : > { %6135 = vmatmul.mubr.f32.gmra.mrb[20].mxu0 %v8132_v46  ;;  %v6956_v46 = vpack.c.bf16 %v424_v31, %v423_v42  ;;  %v430_v42 = vld [vmem:[%s9726_s1 + $0x68] sm:$0xff]  ;;  %v8706_v31 = vld [vmem:[#allocation2 + $0x1d0] sm:$0xff] }
  0xdb   : > { %6137 = vmatprep.mubr.f32.mxu0 %v8135_v47  ;;  %v425_v47 = vld [vmem:[%s9726_s1 + $0x40] sm:$0xff] }
  0xdc   : > { %5818 = vmatmul.mubr.f32.gmra.mrb[22].mxu1 %v8659_v30  ;;  %6957 = vmatprep.subr.bf16.mxu1 %v6956_v46  ;;  %v6960_v36 = vpack.c.bf16 %v426_v35, %v425_v47  ;;  %v8715_v47 = vld [vmem:[#allocation2 + $0x1f0] sm:$0xff]  ;;  %v432_v35 = vld [vmem:[%s9726_s1 + $0x78] sm:$0xff] }
  0xdd   : > { %6959 = vmatpush3.bf16.msra.mxu1 %v6956_v46  ;;  %5820 = vmatprep.mubr.f32.mxu1 %v8669_v21 }
  0xde   : > { %6138 = vmatmul.mubr.f32.gmra.mrb[22].mxu0 %v8139_v48  ;;  %6961 = vmatprep.subr.bf16.mxu1 %v6960_v36  ;;  %v8683_v48 = vld [vmem:[#allocation2 + $0x1a8] sm:$0xff] }
  0xdf   : > { %6140 = vmatprep.mubr.f32.mxu0 %v8144_v49  ;;  %v427_v49 = vld [vmem:[%s9726_s1 + $0x50] sm:$0xff] }
  0xe0   : > { %5821 = vmatmul.mubr.f32.gmra.mrb[24].mxu1 %v8678_v63 }
  0xe1   : > { %5823 = vmatprep.mubr.f32.mxu1 %v8683_v48  ;;  %6963 = vmatpush3.bf16.msra.mxu1 %v6960_v36 }
  0xe2   : > { %6141 = vmatmul.mubr.f32.gmra.mrb[24].mxu0 %v8147_v51  ;;  %v6964_v51 = vpack.c.bf16 %v428_v15, %v427_v49  ;;  %v385_v49 = vld [vmem:[#allocation2 + $0x7] sm:$0xff] }
  0xe3   : > { %6143 = vmatprep.mubr.f32.mxu0 %v8151_v52  ;;  %v429_v52 = vld [vmem:[%s9726_s1 + $0x60] sm:$0xff] }
  0xe4   : > { %5824 = vmatmul.mubr.f32.gmra.mrb[26].mxu1 %v8687_v37  ;;  %6965 = vmatprep.subr.bf16.mxu1 %v6964_v51  ;;  %v6968_v46 = vpack.c.bf16 %v430_v42, %v429_v52  ;;  %v4902_v52 = vld [vmem:[%s9726_s1 + $0x328] sm:$0xff] }
  0xe5   : > { %6967 = vmatpush3.bf16.msra.mxu1 %v6964_v51  ;;  %5826 = vmatprep.mubr.f32.mxu1 %v8697_v27  ;;  %v4901_v51 = vld [vmem:[%s9726_s1 + $0x320] sm:$0xff]  ;;  %v386_v42 = vld [vmem:[#allocation2 + $0xf] sm:$0xff] }
  0xe6   : > { %6144 = vmatmul.mubr.f32.gmra.mrb[26].mxu0 %v8154_v53  ;;  %6969 = vmatprep.subr.bf16.mxu1 %v6968_v46  ;;  %v8711_v53 = vld [vmem:[#allocation2 + $0x1e8] sm:$0xff] }
  0xe7   : > { %6146 = vmatprep.mubr.f32.mxu0 %v8166_v56  ;;  %v431_v56 = vld [vmem:[%s9726_s1 + $0x70] sm:$0xff] }
  0xe8   : > { %5827 = vmatmul.mubr.f32.gmra.mrb[28].mxu1 %v8706_v31  ;;  %v6972_v36 = vpack.c.bf16 %v432_v35, %v431_v56  ;;  %v4904_v56 = vld [vmem:[%s9726_s1 + $0x338] sm:$0xff]  ;;  %v388_v35 = vld [vmem:[#allocation2 + $0x2f] sm:$0xff] }
  0xe9   : > { %5829 = vmatprep.mubr.f32.mxu1 %v8711_v53  ;;  %6971 = vmatpush3.bf16.msra.mxu1 %v6968_v46  ;;  %v4903_v46 = vld [vmem:[%s9726_s1 + $0x330] sm:$0xff] }
  0xea   : > { %6147 = vmatmul.mubr.f32.gmra.mrb[28].mxu0 %v8169_v57  ;;  %v4899_v57 = vld [vmem:[%s9726_s1 + $0x310] sm:$0xff]  ;;  %6973 = vmatprep.subr.bf16.mxu1 %v6972_v36 }
  0xeb   : > { %6149 = vmatprep.mubr.f32.mxu0 %v8223_v34  ;;  %v4900_v34 = vld [vmem:[%s9726_s1 + $0x318] sm:$0xff] }
  0xec   : > { %5830 = vmatmul.mubr.f32.gmra.mrb[30].mxu1 %v8715_v47  ;;  %v7108_v15 = vpack.c.bf16 %v4900_v34, %v4899_v57  ;;  %v4906_v57 = vld [vmem:[%s9726_s1 + $0x348] sm:$0xff] }
  0xed   : > { %6975 = vmatpush3.bf16.msra.mxu1 %v6972_v36  ;;  %5864 = vmatprep.mubr.f32.mxu1 %v385_v49  ;;  %v390_v34 = vld [vmem:[#allocation2 + $0x4f] sm:$0xff]  ;;  %v4908_v49 = vld [vmem:[%s9726_s1 + $0x358] sm:$0xff] }
  0xee   : > { %6150 = vmatmul.mubr.f32.gmra.mrb[30].mxu0 %v8228_v38  ;;  %v7112_v38 = vpack.c.bf16 %v4902_v52, %v4901_v51  ;;  %v4907_v36 = vld [vmem:[%s9726_s1 + $0x350] sm:$0xff]  ;;  %v4909_v51 = vld [vmem:[%s9726_s1 + $0x360] sm:$0xff]  ;;  %v4910_v52 = vld [vmem:[%s9726_s1 + $0x368] sm:$0xff] }
  0xef   : > { %6184 = vmatprep.mubr.f32.mxu0 %v8179_v62  ;;  %v387_v62 = vld [vmem:[#allocation2 + $0x27] sm:$0xff] }
  0xf0   : > { %5865 = vmatmul.mubr.f32.vlgmr.msra.gmra.mrb[0].mxu1 %v386_v42  ;;  %v394_v42 = vld [vmem:[#allocation2 + $0x8f] sm:$0xff] }
  0xf1   : > { %5867 = vmatprep.mubr.f32.mxu1 %v387_v62  ;;  %v4911_v62 = vld [vmem:[%s9726_s1 + $0x370] sm:$0xff] }
  0xf2   : > { %6185 = vmatmul.mubr.f32.vlgmr.msra.gmra.mrb[0].mxu0 %v8188_v2  ;;  %v389_v2 = vld [vmem:[#allocation2 + $0x47] sm:$0xff] }
  0xf3   : > { %7107 = vmatpush3.bf16.msra.mxu0 %v8607_v19  ;;  %6187 = vmatprep.mubr.f32.mxu0 %v8190_v3  ;;  %v7116_v3 = vpack.c.bf16 %v4904_v56, %v4903_v46  ;;  %v4905_v19 = vld [vmem:[%s9726_s1 + $0x340] sm:$0xff]  ;;  %v396_v46 = vld [vmem:[#allocation2 + $0xaf] sm:$0xff] }
  0xf4   : > { %7109 = vmatprep.subr.bf16.mxu0 %v7108_v15  ;;  %5868 = vmatmul.mubr.f32.gmra.mrb[2].mxu1 %v388_v35  ;;  %v4913_v56 = vld [vmem:[%s9726_s1 + $0x380] sm:$0xff]  ;;  %v4914_v35 = vld [vmem:[%s9726_s1 + $0x388] sm:$0xff] }
  0xf5   : > { %5870 = vmatprep.mubr.f32.mxu1 %v389_v2  ;;  %v398_v2 = vld [vmem:[#allocation2 + $0xcf] sm:$0xff] }
  0xf6   : > { %6188 = vmatmul.mubr.f32.gmra.mrb[2].mxu0 %v8200_v8  ;;  %v391_v8 = vld [vmem:[#allocation2 + $0x67] sm:$0xff] }
  0xf7   : > { %6190 = vmatprep.mubr.f32.mxu0 %v8202_v9  ;;  %7111 = vmatpush3.bf16.msra.mxu0 %v7108_v15  ;;  %v7120_v9 = vpack.c.bf16 %v4906_v57, %v4905_v19  ;;  %v392_v15 = vld [vmem:[#allocation2 + $0x6f] sm:$0xff]  ;;  %v401_v19 = vld [vmem:[#allocation2 + $0x107] sm:$0xff] }
  0xf8   : > { %7113 = vmatprep.subr.bf16.mxu0 %v7112_v38  ;;  %5871 = vmatmul.mubr.f32.gmra.mrb[4].mxu1 %v390_v34  ;;  %v404_v57 = vld [vmem:[#allocation2 + $0x12f] sm:$0xff]  ;;  %v9810_v34 = vld [vmem:[#allocation6_spill] sm:$0xff] }
  0xf9   : > { %5873 = vmatprep.mubr.f32.mxu1 %v391_v8  ;;  %v407_v8 = vld [vmem:[#allocation2 + $0x167] sm:$0xff] }
  0xfa   : > { %6191 = vmatmul.mubr.f32.gmra.mrb[4].mxu0 %v8212_v18  ;;  %v393_v18 = vld [vmem:[#allocation2 + $0x87] sm:$0xff] }
  0xfb   : > { %6193 = vmatprep.mubr.f32.mxu0 %v8214_v22  ;;  %7115 = vmatpush3.bf16.msra.mxu0 %v7112_v38  ;;  %v7124_v22 = vpack.c.bf16 %v4908_v49, %v4907_v36  ;;  %v4912_v38 = vld [vmem:[%s9726_s1 + $0x378] sm:$0xff]  ;;  %v409_v36 = vld [vmem:[#allocation2 + $0x187] sm:$0xff] }
  0xfc   : > { %7117 = vmatprep.subr.bf16.mxu0 %v7116_v3  ;;  %5874 = vmatmul.mubr.f32.gmra.mrb[6].mxu1 %v392_v15  ;;  %v9813_v49 = vld [vmem:[#allocation9_spill] sm:$0xff]  ;;  %v411_v15 = vld [vmem:[#allocation2 + $0x1a7] sm:$0xff] }
  0xfd   : > { %5876 = vmatprep.mubr.f32.mxu1 %v393_v18  ;;  %v9815_v18 = vld [vmem:[#allocation11_spill] sm:$0xff] }
  0xfe   : > { %6194 = vmatmul.mubr.f32.gmra.mrb[6].mxu0 %v8231_v39  ;;  %v395_v39 = vld [vmem:[#allocation2 + $0xa7] sm:$0xff] }
  0xff   : > { %6196 = vmatprep.mubr.f32.mxu0 %v8234_v40  ;;  %7119 = vmatpush3.bf16.msra.mxu0 %v7116_v3  ;;  %v7128_v40 = vpack.c.bf16 %v4910_v52, %v4909_v51  ;;  %v400_v3 = vld [vmem:[#allocation2 + $0xef] sm:$0xff]  ;;  %v413_v52 = vld [vmem:[#allocation2 + $0x1c7] sm:$0xff] }
 0x100   : > { %7121 = vmatprep.subr.bf16.mxu0 %v7120_v9  ;;  %5877 = vmatmul.mubr.f32.gmra.mrb[8].mxu1 %v394_v42  ;;  %v9816_v51 = vld [vmem:[#allocation12_spill] sm:$0xff]  ;;  %v9817_v42 = vld [vmem:[#allocation13_spill] sm:$0xff] }
 0x101   : > { %5879 = vmatprep.mubr.f32.mxu1 %v395_v39  ;;  %v8806_v39 = vld [vmem:[#allocation2 + $0x209] sm:$0xff] }
 0x102   : > { %6197 = vmatmul.mubr.f32.gmra.mrb[8].mxu0 %v8244_v50  ;;  %v397_v50 = vld [vmem:[#allocation2 + $0xc7] sm:$0xff] }
 0x103   : > { %6199 = vmatprep.mubr.f32.mxu0 %v8246_v54  ;;  %7123 = vmatpush3.bf16.msra.mxu0 %v7120_v9  ;;  %v7132_v54 = vpack.c.bf16 %v4912_v38, %v4911_v62  ;;  %v9811_v9 = vld [vmem:[#allocation7_spill] sm:$0xff]  ;;  %v9818_v62 = vld [vmem:[#allocation14_spill] sm:$0xff] }
 0x104   : > { %7125 = vmatprep.subr.bf16.mxu0 %v7124_v22  ;;  %5880 = vmatmul.mubr.f32.gmra.mrb[10].mxu1 %v396_v46  ;;  %v415_v38 = vld [vmem:[#allocation2 + $0x1e7] sm:$0xff]  ;;  %v8810_v46 = vld [vmem:[#allocation2 + $0x211] sm:$0xff] }
 0x105   : > { %5882 = vmatprep.mubr.f32.mxu1 %v397_v50  ;;  %v4915_v50 = vld [vmem:[%s9726_s1 + $0x390] sm:$0xff] }
 0x106   : > { %6200 = vmatmul.mubr.f32.gmra.mrb[10].mxu0 %v8256_v60  ;;  %v399_v60 = vld [vmem:[#allocation2 + $0xe7] sm:$0xff] }
 0x107   : > { %6202 = vmatprep.mubr.f32.mxu0 %v8258_v61  ;;  %7127 = vmatpush3.bf16.msra.mxu0 %v7124_v22  ;;  %v8789_v61 = vpack.c.bf16 %v4914_v35, %v4913_v56  ;;  %v412_v22 = vld [vmem:[#allocation2 + $0x1af] sm:$0xff] }
 0x108   : > { %7129 = vmatprep.subr.bf16.mxu0 %v7128_v40  ;;  %5883 = vmatmul.mubr.f32.gmra.mrb[12].mxu1 %v398_v2  ;;  %v416_v56 = vld [vmem:[#allocation2 + $0x1ef] sm:$0xff] }
 0x109   : > { %5885 = vmatprep.mubr.f32.mxu1 %v399_v60  ;;  %v9819_v35 = vld [vmem:[#allocation15_spill] sm:$0xff]  ;;  %v4917_v60 = vld [vmem:[%s9726_s1 + $0x3a0] sm:$0xff] }
 0x10a   : > { %6203 = vmatmul.mubr.f32.gmra.mrb[12].mxu0 %v8268_v4  ;;  %v402_v4 = vld [vmem:[#allocation2 + $0x10f] sm:$0xff] }
 0x10b   : > { %6205 = vmatprep.mubr.f32.mxu0 %v8270_v6  ;;  %7131 = vmatpush3.bf16.msra.mxu0 %v7128_v40  ;;  %v403_v6 = vld [vmem:[#allocation2 + $0x127] sm:$0xff]  ;;  %v414_v40 = vld [vmem:[#allocation2 + $0x1cf] sm:$0xff] }
 0x10c   : > { %7133 = vmatprep.subr.bf16.mxu0 %v7132_v54  ;;  %5886 = vmatmul.mubr.f32.gmra.mrb[14].mxu1 %v400_v3  ;;  %v4918_v3 = vld [vmem:[%s9726_s1 + $0x3a8] sm:$0xff] }
 0x10d   : > { %5888 = vmatprep.mubr.f32.mxu1 %v401_v19  ;;  %v8826_v19 = vld [vmem:[#allocation2 + $0x8] sm:$0xff] }
 0x10e   : > { %6206 = vmatmul.mubr.f32.gmra.mrb[14].mxu0 %v8274_v10  ;;  %v405_v10 = vld [vmem:[#allocation2 + $0x147] sm:$0xff] }
 0x10f   : > { %6208 = vmatprep.mubr.f32.mxu0 %v8276_v11  ;;  %7135 = vmatpush3.bf16.msra.mxu0 %v7132_v54  ;;  %v406_v11 = vld [vmem:[#allocation2 + $0x14f] sm:$0xff]  ;;  %v4916_v54 = vld [vmem:[%s9726_s1 + $0x398] sm:$0xff] }
 0x110   : > { %7137 = vmatprep.subr.bf16.mxu0 %v8789_v61  ;;  %5889 = vmatmul.mubr.f32.gmra.mrb[16].mxu1 %v402_v4  ;;  %v7140_v2 = vpack.c.bf16 %v4916_v54, %v4915_v50  ;;  %v9820_v4 = vld [vmem:[#allocation16_spill] sm:$0xff]  ;;  %v4928_v50 = vld [vmem:[%s9726_s1 + $0x3f8] sm:$0xff]  ;;  %v9830_v54 = vld [vmem:[#allocation26_spill] sm:$0xff] }
 0x111   : > { %5891 = vmatprep.mubr.f32.mxu1 %v403_v6  ;;  %v9821_v6 = vld [vmem:[#allocation17_spill] sm:$0xff] }
 0x112   : > { %6209 = vmatmul.mubr.f32.gmra.mrb[16].mxu0 %v8280_v16  ;;  %v408_v16 = vld [vmem:[#allocation2 + $0x16f] sm:$0xff] }
 0x113   : > { %6211 = vmatprep.mubr.f32.mxu0 %v8282_v23  ;;  %v9812_v23 = vld [vmem:[#allocation8_spill] sm:$0xff] }
 0x114   : > { %5892 = vmatmul.mubr.f32.gmra.mrb[18].mxu1 %v404_v57  ;;  %v7144_v57 = vpack.c.bf16 %v4918_v3, %v4917_v60  ;;  %v4930_v60 = vld [vmem:[%s9726_s1 + $0x408] sm:$0xff]  ;;  %v9832_v3 = vld [vmem:[#allocation28_spill] sm:$0xff] }
 0x115   : > { %5894 = vmatprep.mubr.f32.mxu1 %v405_v10  ;;  %v4919_v10 = vld [vmem:[%s9726_s1 + $0x3b0] sm:$0xff] }
 0x116   : > { %6212 = vmatmul.mubr.f32.gmra.mrb[18].mxu0 %v8286_v29  ;;  %v410_v29 = vld [vmem:[#allocation2 + $0x18f] sm:$0xff] }
 0x117   : > { %6214 = vmatprep.mubr.f32.mxu0 %v8288_v33  ;;  %v9814_v33 = vld [vmem:[#allocation10_spill] sm:$0xff] }
 0x118   : > { %5895 = vmatmul.mubr.f32.gmra.mrb[20].mxu1 %v406_v11  ;;  %v4920_v11 = vld [vmem:[%s9726_s1 + $0x3b8] sm:$0xff] }
 0x119   : > { %5897 = vmatprep.mubr.f32.mxu1 %v407_v8  ;;  %v9823_v8 = vld [vmem:[#allocation19_spill] sm:$0xff] }
 0x11a   : > { %6215 = vmatmul.mubr.f32.gmra.mrb[20].mxu0 %v9810_v34  ;;  %v9822_v34 = vld [vmem:[#allocation18_spill] sm:$0xff] }
 0x11b   : > { %6217 = vmatprep.mubr.f32.mxu0 %v9811_v9  ;;  %v7148_v9 = vpack.c.bf16 %v4920_v11, %v4919_v10  ;;  %v9835_v10 = vld [vmem:[#allocation31_spill] sm:$0xff]  ;;  %v9836_v11 = vld [vmem:[#allocation32_spill] sm:$0xff] }
 0x11c   : > { %5898 = vmatmul.mubr.f32.gmra.mrb[22].mxu1 %v408_v16  ;;  %v4922_v16 = vld [vmem:[%s9726_s1 + $0x3c8] sm:$0xff] }
 0x11d   : > { %5900 = vmatprep.mubr.f32.mxu1 %v409_v36  ;;  %v9825_v36 = vld [vmem:[#allocation21_spill] sm:$0xff] }
 0x11e   : > { %6218 = vmatmul.mubr.f32.gmra.mrb[22].mxu0 %v9812_v23  ;;  %v9824_v23 = vld [vmem:[#allocation20_spill] sm:$0xff] }
 0x11f   : > { %6220 = vmatprep.mubr.f32.mxu0 %v9813_v49 }
 0x120   : > { %5901 = vmatmul.mubr.f32.gmra.mrb[24].mxu1 %v410_v29  ;;  %v4923_v29 = vld [vmem:[%s9726_s1 + $0x3d0] sm:$0xff] }
 0x121   : > { %5903 = vmatprep.mubr.f32.mxu1 %v411_v15  ;;  %v9826_v15 = vld [vmem:[#allocation22_spill] sm:$0xff] }
 0x122   : > { %6221 = vmatmul.mubr.f32.gmra.mrb[24].mxu0 %v9814_v33  ;;  %v4924_v33 = vld [vmem:[%s9726_s1 + $0x3d8] sm:$0xff] }
 0x123   : > { %6223 = vmatprep.mubr.f32.mxu0 %v9815_v18  ;;  %v9827_v18 = vld [vmem:[#allocation23_spill] sm:$0xff] }
 0x124   : > { %5904 = vmatmul.mubr.f32.gmra.mrb[26].mxu1 %v412_v22  ;;  %v7156_v22 = vpack.c.bf16 %v4924_v33, %v4923_v29  ;;  %v9845_v29 = vld [vmem:[#allocation41_spill] sm:$0xff]  ;;  %v2187_v33 = vld [vmem:[#allocation2 + $0x227] sm:$0xff] }
 0x125   : > { %5906 = vmatprep.mubr.f32.mxu1 %v413_v52  ;;  %v4926_v52 = vld [vmem:[%s9726_s1 + $0x3e8] sm:$0xff] }
 0x126   : > { %6224 = vmatmul.mubr.f32.gmra.mrb[26].mxu0 %v9816_v51  ;;  %v4925_v51 = vld [vmem:[%s9726_s1 + $0x3e0] sm:$0xff] }
 0x127   : > { %6226 = vmatprep.mubr.f32.mxu0 %v9817_v42  ;;  %v9828_v42 = vld [vmem:[#allocation24_spill] sm:$0xff] }
 0x128   : > { %5907 = vmatmul.mubr.f32.gmra.mrb[28].mxu1 %v414_v40  ;;  %v9829_v40 = vld [vmem:[#allocation25_spill] sm:$0xff] }
 0x129   : > { %5909 = vmatprep.mubr.f32.mxu1 %v415_v38  ;;  %v4927_v38 = vld [vmem:[%s9726_s1 + $0x3f0] sm:$0xff] }
 0x12a   : > { %6227 = vmatmul.mubr.f32.gmra.mrb[28].mxu0 %v9818_v62  ;;  %v7160_v62 = vpack.c.bf16 %v4926_v52, %v4925_v51  ;;  %v4932_v51 = vld [vmem:[%s9726_s1 + $0x418] sm:$0xff]  ;;  %v4934_v52 = vld [vmem:[%s9726_s1 + $0x428] sm:$0xff] }
 0x12b   : > { %6229 = vmatprep.mubr.f32.mxu0 %v8806_v39 }
 0x12c   : > { %5910 = vmatmul.mubr.f32.gmra.mrb[30].mxu1 %v416_v56  ;;  %v9831_v56 = vld [vmem:[#allocation27_spill] sm:$0xff] }
 0x12d   : > { %6504 = vmatprep.mubr.f32.mxu1 %v8826_v19 }
 0x12e   : > { %6230 = vmatmul.mubr.f32.gmra.mrb[30].mxu0 %v8810_v46 }
 0x12f   : > { %6264 = vmatprep.mubr.f32.mxu0 %v9819_v35  ;;  %v7164_v35 = vpack.c.bf16 %v4928_v50, %v4927_v38  ;;  %v4947_v38 = vld [vmem:[%s9728_s3 + $0x88] sm:$0xff]  ;;  %v4939_v50 = vld [vmem:[%s9726_s1 + $0x450] sm:$0xff] }
 0x132   : > { %6265 = vmatmul.mubr.f32.vlgmr.msra.gmra.mrb[0].mxu0 %v9820_v4  ;;  %v9833_v4 = vld [vmem:[#allocation29_spill] sm:$0xff] }
 0x133   : > { %7139 = vmatpush3.bf16.msra.mxu0 %v8789_v61  ;;  %6267 = vmatprep.mubr.f32.mxu0 %v9821_v6  ;;  %v4921_v61 = vld [vmem:[%s9726_s1 + $0x3c0] sm:$0xff] }
 0x134   : > { %7141 = vmatprep.subr.bf16.mxu0 %v7140_v2  ;;  %v7152_v49 = vpack.c.bf16 %v4922_v16, %v4921_v61  ;;  %v9840_v61 = vld [vmem:[#allocation36_spill] sm:$0xff]  ;;  %v9841_v16 = vld [vmem:[#allocation37_spill] sm:$0xff] }
 0x136   : > { %6268 = vmatmul.mubr.f32.gmra.mrb[2].mxu0 %v9822_v34  ;;  %v9837_v34 = vld [vmem:[#allocation33_spill] sm:$0xff] }
 0x137   : > { %6270 = vmatprep.mubr.f32.mxu0 %v9823_v8  ;;  %7143 = vmatpush3.bf16.msra.mxu0 %v7140_v2  ;;  %v4929_v2 = vld [vmem:[%s9726_s1 + $0x400] sm:$0xff] }
 0x138   : > { %7145 = vmatprep.subr.bf16.mxu0 %v7144_v57  ;;  %v7168_v6 = vpack.c.bf16 %v4930_v60, %v4929_v2  ;;  %v9838_v8 = vld [vmem:[#allocation34_spill] sm:$0xff]  ;;  %v4949_v2 = vld [vmem:[%s9728_s3 + $0x98] sm:$0xff]  ;;  %v4943_v60 = vld [vmem:[%s9726_s1 + $0x470] sm:$0xff] }
 0x13a   : > { %6271 = vmatmul.mubr.f32.gmra.mrb[4].mxu0 %v9824_v23  ;;  %v9842_v23 = vld [vmem:[#allocation38_spill] sm:$0xff] }
 0x13b   : > { %6273 = vmatprep.mubr.f32.mxu0 %v9825_v36  ;;  %7147 = vmatpush3.bf16.msra.mxu0 %v7144_v57  ;;  %v9834_v57 = vld [vmem:[#allocation30_spill] sm:$0xff]  ;;  %v9843_v36 = vld [vmem:[#allocation39_spill] sm:$0xff] }
 0x13c   : > { %7149 = vmatprep.subr.bf16.mxu0 %v7148_v9 }
 0x13e   : > { %6274 = vmatmul.mubr.f32.gmra.mrb[6].mxu0 %v9826_v15  ;;  %v9846_v15 = vld [vmem:[#allocation42_spill] sm:$0xff] }
 0x13f   : > { %6276 = vmatprep.mubr.f32.mxu0 %v9827_v18  ;;  %7151 = vmatpush3.bf16.msra.mxu0 %v7148_v9  ;;  %v9839_v9 = vld [vmem:[#allocation35_spill] sm:$0xff] }
 0x140   : > { %7153 = vmatprep.subr.bf16.mxu0 %v7152_v49  ;;  %v2188_v18 = vld [vmem:[#allocation2 + $0x22f] sm:$0xff] }
 0x142   : > { %6277 = vmatmul.mubr.f32.gmra.mrb[8].mxu0 %v9828_v42 }
 0x143   : > { %6279 = vmatprep.mubr.f32.mxu0 %v9829_v40  ;;  %7155 = vmatpush3.bf16.msra.mxu0 %v7152_v49  ;;  %v9844_v49 = vld [vmem:[#allocation40_spill] sm:$0xff]  ;;  %v4936_v40 = vld [vmem:[%s9726_s1 + $0x438] sm:$0xff] }
 0x144   : > { %7157 = vmatprep.subr.bf16.mxu0 %v7156_v22 }
 0x146   : > { %6280 = vmatmul.mubr.f32.gmra.mrb[10].mxu0 %v9830_v54 }
 0x147   : > { %6282 = vmatprep.mubr.f32.mxu0 %v9831_v56  ;;  %7159 = vmatpush3.bf16.msra.mxu0 %v7156_v22  ;;  %v4931_v22 = vld [vmem:[%s9726_s1 + $0x410] sm:$0xff]  ;;  %v4941_v56 = vld [vmem:[%s9726_s1 + $0x460] sm:$0xff] }
 0x148   : > { %7161 = vmatprep.subr.bf16.mxu0 %v7160_v62 }
 0x14a   : > { %6283 = vmatmul.mubr.f32.gmra.mrb[12].mxu0 %v9832_v3 }
 0x14b   : > { %6285 = vmatprep.mubr.f32.mxu0 %v9833_v4  ;;  %7163 = vmatpush3.bf16.msra.mxu0 %v7160_v62  ;;  %v4938_v62 = vld [vmem:[%s9726_s1 + $0x448] sm:$0xff] }
 0x14c   : > { %7165 = vmatprep.subr.bf16.mxu0 %v7164_v35 }
 0x14e   : > { %6286 = vmatmul.mubr.f32.gmra.mrb[14].mxu0 %v9834_v57 }
 0x14f   : > { %6288 = vmatprep.mubr.f32.mxu0 %v9835_v10  ;;  %7167 = vmatpush3.bf16.msra.mxu0 %v7164_v35  ;;  %v4942_v35 = vld [vmem:[%s9726_s1 + $0x468] sm:$0xff] }
 0x150   : > { %7169 = vmatprep.subr.bf16.mxu0 %v7168_v6  ;;  %v2785_v10 = vld [vmem:[#allocation2 + $0x149] sm:$0xff] }
 0x152   : > { %6289 = vmatmul.mubr.f32.gmra.mrb[16].mxu0 %v9836_v11 }
 0x153   : > { %6291 = vmatprep.mubr.f32.mxu0 %v9837_v34  ;;  %v2786_v34 = vld [vmem:[#allocation2 + $0x151] sm:$0xff] }
 0x156   : > { %6292 = vmatmul.mubr.f32.gmra.mrb[18].mxu0 %v9838_v8 }
 0x157   : > { %6294 = vmatprep.mubr.f32.mxu0 %v9839_v9  ;;  %v2787_v9 = vld [vmem:[#allocation2 + $0x169] sm:$0xff] }
 0x15a   : > { %6295 = vmatmul.mubr.f32.gmra.mrb[20].mxu0 %v9840_v61 }
 0x15b   : > { %6297 = vmatprep.mubr.f32.mxu0 %v9841_v16  ;;  %v2788_v16 = vld [vmem:[#allocation2 + $0x171] sm:$0xff] }
 0x15e   : > { %6298 = vmatmul.mubr.f32.gmra.mrb[22].mxu0 %v9842_v23 }
 0x15f   : > { %6300 = vmatprep.mubr.f32.mxu0 %v9843_v36  ;;  %v2789_v36 = vld [vmem:[#allocation2 + $0x189] sm:$0xff] }
 0x162   : > { %6301 = vmatmul.mubr.f32.gmra.mrb[24].mxu0 %v8478_v44  ;;  %v7172_v44 = vpack.c.bf16 %v4932_v51, %v4931_v22  ;;  %v2792_v22 = vld [vmem:[#allocation2 + $0x1b1] sm:$0xff] }
 0x163   : > { %6303 = vmatprep.mubr.f32.mxu0 %v9844_v49 }
 0x166   : > { %6304 = vmatmul.mubr.f32.gmra.mrb[26].mxu0 %v8493_v43  ;;  %v4933_v43 = vld [vmem:[%s9726_s1 + $0x420] sm:$0xff] }
 0x167   : > { %6306 = vmatprep.mubr.f32.mxu0 %v9845_v29  ;;  %v7176_v42 = vpack.c.bf16 %v4934_v52, %v4933_v43  ;;  %v2790_v29 = vld [vmem:[#allocation2 + $0x191] sm:$0xff] }
 0x168   : > { %v2794_v52 = vld [vmem:[#allocation2 + $0x1d1] sm:$0xff] }
 0x16a   : > { %6307 = vmatmul.mubr.f32.gmra.mrb[28].mxu0 %v9846_v15  ;;  %v2791_v15 = vld [vmem:[#allocation2 + $0x1a9] sm:$0xff] }
 0x16b   : > { %6309 = vmatprep.mubr.f32.mxu0 %v2187_v33 }
 0x16e   : > { %6310 = vmatmul.mubr.f32.gmra.mrb[30].mxu0 %v2188_v18 }
 0x16f   : > { %6344 = vmatprep.mubr.f32.mxu0 %v8532_v13  ;;  %v4935_v13 = vld [vmem:[%s9726_s1 + $0x430] sm:$0xff] }
 0x172   : > { %6345 = vmatmul.mubr.f32.vlgmr.msra.gmra.mrb[0].mxu0 %v8535_v14  ;;  %v7180_v14 = vpack.c.bf16 %v4936_v40, %v4935_v13  ;;  %v2795_v13 = vld [vmem:[#allocation2 + $0x1e9] sm:$0xff] }
 0x173   : > { %7171 = vmatpush3.bf16.msra.mxu0 %v7168_v6  ;;  %6347 = vmatprep.mubr.f32.mxu0 %v8546_v17  ;;  %v4937_v17 = vld [vmem:[%s9726_s1 + $0x440] sm:$0xff]  ;;  %v2784_v6 = vld [vmem:[#allocation2 + $0x131] sm:$0xff] }
 0x174   : > { %7173 = vmatprep.subr.bf16.mxu0 %v7172_v44 }
 0x176   : > { %6348 = vmatmul.mubr.f32.gmra.mrb[2].mxu0 %v8549_v58  ;;  %v7184_v58 = vpack.c.bf16 %v4938_v62, %v4937_v17 }
 0x177   : > { %6350 = vmatprep.mubr.f32.mxu0 %v8560_v20  ;;  %7175 = vmatpush3.bf16.msra.mxu0 %v7172_v44  ;;  %v4946_v20 = vld [vmem:[%s9728_s3 + $0x80] sm:$0xff]  ;;  %v2793_v44 = vld [vmem:[#allocation2 + $0x1c9] sm:$0xff] }
 0x178   : > { %7177 = vmatprep.subr.bf16.mxu0 %v7176_v42 }
 0x17a   : > { %6351 = vmatmul.mubr.f32.gmra.mrb[4].mxu0 %v8563_v55  ;;  %v4940_v55 = vld [vmem:[%s9726_s1 + $0x458] sm:$0xff] }
 0x17b   : > { %6353 = vmatprep.mubr.f32.mxu0 %v8574_v24  ;;  %7179 = vmatpush3.bf16.msra.mxu0 %v7176_v42  ;;  %v7200_v24 = vpack.c.bf16 %v4947_v38, %v4946_v20  ;;  %v7188_v54 = vpack.c.bf16 %v4940_v55, %v4939_v50  ;;  %v2799_v20 = vld [vmem:[#allocation2 + $0x229] sm:$0xff]  ;;  %v2800_v50 = vld [vmem:[#allocation2 + $0x231] sm:$0xff] }
 0x17c   : > { %7181 = vmatprep.subr.bf16.mxu0 %v7180_v14 }
 0x17d   : > { %7201 = vmatprep.subr.bf16.mxu1 %v7200_v24 }
 0x17e   : > { %6354 = vmatmul.mubr.f32.gmra.mrb[6].mxu0 %v8577_v0  ;;  %7203 = vmatpush3.bf16.msra.mxu1 %v7200_v24  ;;  %v7192_v0 = vpack.c.bf16 %v4942_v35, %v4941_v56 }
 0x17f   : > { %6356 = vmatprep.mubr.f32.mxu0 %v8588_v26  ;;  %7183 = vmatpush3.bf16.msra.mxu0 %v7180_v14  ;;  %v4948_v26 = vld [vmem:[%s9728_s3 + $0x90] sm:$0xff] }
 0x180   : > { %7185 = vmatprep.subr.bf16.mxu0 %v7184_v58  ;;  %v2796_v14 = vld [vmem:[#allocation2 + $0x1f1] sm:$0xff] }
 0x182   : > { %6357 = vmatmul.mubr.f32.gmra.mrb[8].mxu0 %v8591_v59  ;;  %v4944_v59 = vld [vmem:[%s9726_s1 + $0x478] sm:$0xff] }
 0x183   : > { %6359 = vmatprep.mubr.f32.mxu0 %v8602_v28  ;;  %7187 = vmatpush3.bf16.msra.mxu0 %v7184_v58  ;;  %v7204_v28 = vpack.c.bf16 %v4949_v2, %v4948_v26  ;;  %v7196_v3 = vpack.c.bf16 %v4944_v59, %v4943_v60 }
 0x184   : > { %7189 = vmatprep.subr.bf16.mxu0 %v7188_v54 }
 0x185   : > { %7205 = vmatprep.subr.bf16.mxu1 %v7204_v28 }
 0x186   : > { %6360 = vmatmul.mubr.f32.gmra.mrb[10].mxu0 %v8605_v5  ;;  %7207 = vmatpush3.bf16.msra.mxu1 %v7204_v28  ;;  %v2491_v5 = vld [vmem:[#allocation2 + $0x208] sm:$0xff] }
 0x187   : > { %6362 = vmatprep.mubr.f32.mxu0 %v8612_v12  ;;  %7191 = vmatpush3.bf16.msra.mxu0 %v7188_v54  ;;  %v2492_v12 = vld [vmem:[#allocation2 + $0x210] sm:$0xff] }
 0x188   : > { %7193 = vmatprep.subr.bf16.mxu0 %v7192_v0 }
 0x18a   : > { %6363 = vmatmul.mubr.f32.gmra.mrb[12].mxu0 %v8621_v45  ;;  %v2769_v45 = vld [vmem:[#allocation2 + $0x49] sm:$0xff] }
 0x18b   : > { %6365 = vmatprep.mubr.f32.mxu0 %v8627_v32  ;;  %7195 = vmatpush3.bf16.msra.mxu0 %v7192_v0  ;;  %v2770_v32 = vld [vmem:[#allocation2 + $0x51] sm:$0xff] }
 0x18c   : > { %7197 = vmatprep.subr.bf16.mxu0 %v7196_v3 }
 0x18e   : > { %6366 = vmatmul.mubr.f32.gmra.mrb[14].mxu0 %v8630_v1  ;;  %v2771_v1 = vld [vmem:[#allocation2 + $0x69] sm:$0xff] }
 0x18f   : > { %6368 = vmatprep.mubr.f32.mxu0 %v8641_v25  ;;  %7199 = vmatpush3.bf16.msra.mxu0 %v7196_v3  ;;  %v2772_v25 = vld [vmem:[#allocation2 + $0x71] sm:$0xff] }
 0x192   : > { %6369 = vmatmul.mubr.f32.gmra.mrb[16].mxu0 %v8650_v7  ;;  %v2773_v7 = vld [vmem:[#allocation2 + $0x89] sm:$0xff] }
 0x193   : > { %6371 = vmatprep.mubr.f32.mxu0 %v8655_v41  ;;  %v2774_v41 = vld [vmem:[#allocation2 + $0x91] sm:$0xff] }
 0x196   : > { %6372 = vmatmul.mubr.f32.gmra.mrb[18].mxu0 %v8659_v30  ;;  %v2775_v30 = vld [vmem:[#allocation2 + $0xa9] sm:$0xff] }
 0x197   : > { %6374 = vmatprep.mubr.f32.mxu0 %v8669_v21  ;;  %v2776_v21 = vld [vmem:[#allocation2 + $0xb1] sm:$0xff] }
 0x19a   : > { %6375 = vmatmul.mubr.f32.gmra.mrb[20].mxu0 %v8678_v63  ;;  %v2777_v63 = vld [vmem:[#allocation2 + $0xc9] sm:$0xff] }
 0x19b   : > { %6377 = vmatprep.mubr.f32.mxu0 %v8683_v48  ;;  %v2778_v48 = vld [vmem:[#allocation2 + $0xd1] sm:$0xff] }
 0x19e   : > { %6378 = vmatmul.mubr.f32.gmra.mrb[22].mxu0 %v8687_v37  ;;  %v2779_v37 = vld [vmem:[#allocation2 + $0xe9] sm:$0xff] }
 0x19f   : > { %6380 = vmatprep.mubr.f32.mxu0 %v8697_v27  ;;  %v2780_v27 = vld [vmem:[#allocation2 + $0xf1] sm:$0xff] }
 0x1a2   : > { %6381 = vmatmul.mubr.f32.gmra.mrb[24].mxu0 %v8706_v31  ;;  %v2781_v31 = vld [vmem:[#allocation2 + $0x109] sm:$0xff] }
 0x1a3   : > { %6383 = vmatprep.mubr.f32.mxu0 %v8711_v53  ;;  %v2782_v53 = vld [vmem:[#allocation2 + $0x111] sm:$0xff] }
 0x1a6   : > { %6384 = vmatmul.mubr.f32.gmra.mrb[26].mxu0 %v8715_v47 }
 0x1a7   : > { %6386 = vmatprep.mubr.f32.mxu0 %v2491_v5  ;;  %v4950_v5 = vld [vmem:[%s9728_s3 + $0xa0] sm:$0xff] }
 0x1aa   : > { %6387 = vmatmul.mubr.f32.gmra.mrb[28].mxu0 %v2492_v12  ;;  %v4951_v12 = vld [vmem:[%s9728_s3 + $0xa8] sm:$0xff] }
 0x1ab   : > { %6389 = vmatprep.mubr.f32.mxu0 %v8826_v19 }
 0x1ae   : > { %6390 = vmatmul.mubr.f32.gmra.mrb[30].mxu0 %v8826_v19  ;;  %v2783_v19 = vld [vmem:[#allocation2 + $0x129] sm:$0xff] }
 0x1af   : > { %6424 = vmatprep.mubr.f32.mxu0 %v2769_v45  ;;  %v7208_v45 = vpack.c.bf16 %v4951_v12, %v4950_v5 }
 0x1b1   : > { %7209 = vmatprep.subr.bf16.mxu1 %v7208_v45 }
 0x1b2   : > { %6425 = vmatmul.mubr.f32.vlgmr.msra.gmra.mrb[0].mxu0 %v2770_v32  ;;  %7211 = vmatpush3.bf16.msra.mxu1 %v7208_v45  ;;  %v4952_v32 = vld [vmem:[%s9728_s3 + $0xb0] sm:$0xff] }
 0x1b3   : > { %6427 = vmatprep.mubr.f32.mxu0 %v2771_v1  ;;  %v4953_v1 = vld [vmem:[%s9728_s3 + $0xb8] sm:$0xff] }
 0x1b6   : > { %6428 = vmatmul.mubr.f32.gmra.mrb[2].mxu0 %v2772_v25  ;;  %v7212_v25 = vpack.c.bf16 %v4953_v1, %v4952_v32 }
 0x1b7   : > { %6430 = vmatprep.mubr.f32.mxu0 %v2773_v7  ;;  %v4954_v7 = vld [vmem:[%s9728_s3 + $0xc0] sm:$0xff] }
 0x1b8   : > { %7213 = vmatprep.subr.bf16.mxu1 %v7212_v25 }
 0x1b9   : > { %7215 = vmatpush3.bf16.msra.mxu1 %v7212_v25 }
 0x1ba   : > { %6431 = vmatmul.mubr.f32.gmra.mrb[4].mxu0 %v2774_v41  ;;  %v4955_v41 = vld [vmem:[%s9728_s3 + $0xc8] sm:$0xff] }
 0x1bb   : > { %6433 = vmatprep.mubr.f32.mxu0 %v2775_v30  ;;  %v7216_v30 = vpack.c.bf16 %v4955_v41, %v4954_v7 }
 0x1bd   : > { %7217 = vmatprep.subr.bf16.mxu1 %v7216_v30 }
 0x1be   : > { %6434 = vmatmul.mubr.f32.gmra.mrb[6].mxu0 %v2776_v21  ;;  %7219 = vmatpush3.bf16.msra.mxu1 %v7216_v30  ;;  %v4956_v21 = vld [vmem:[%s9728_s3 + $0xd0] sm:$0xff] }
 0x1bf   : > { %6436 = vmatprep.mubr.f32.mxu0 %v2777_v63  ;;  %v4957_v63 = vld [vmem:[%s9728_s3 + $0xd8] sm:$0xff] }
 0x1c2   : > { %6437 = vmatmul.mubr.f32.gmra.mrb[8].mxu0 %v2778_v48  ;;  %v7220_v48 = vpack.c.bf16 %v4957_v63, %v4956_v21 }
 0x1c3   : > { %6439 = vmatprep.mubr.f32.mxu0 %v2779_v37  ;;  %v8979_v47 = vpop.f32.mrb[0].mxu1  ;;  %v4958_v37 = vld [vmem:[%s9728_s3 + $0xe0] sm:$0xff] }
 0x1c4   : > { %v8981_v4 = vpop.f32.mrb[1].mxu1  ;;  %7221 = vmatprep.subr.bf16.mxu1 %v7220_v48 }
 0x1c5   : > { %7223 = vmatpush3.bf16.msra.mxu1 %v7220_v48 }
 0x1c6   : > { %6440 = vmatmul.mubr.f32.gmra.mrb[10].mxu0 %v2780_v27  ;;  %v4959_v27 = vld [vmem:[%s9728_s3 + $0xe8] sm:$0xff] }
 0x1c7   : > { %6442 = vmatprep.mubr.f32.mxu0 %v2781_v31  ;;  %v8983_v57 = vpop.f32.mrb[2].mxu1  ;;  %v7224_v31 = vpack.c.bf16 %v4959_v27, %v4958_v37 }
 0x1c8   : > { %v8985_v11 = vpop.f32.mrb[3].mxu1 }
 0x1c9   : > { %7225 = vmatprep.subr.bf16.mxu1 %v7224_v31 }
 0x1ca   : > { %6443 = vmatmul.mubr.f32.gmra.mrb[12].mxu0 %v2782_v53  ;;  %7227 = vmatpush3.bf16.msra.mxu1 %v7224_v31  ;;  %v4960_v53 = vld [vmem:[%s9728_s3 + $0xf0] sm:$0xff] }
 0x1cb   : > { %6445 = vmatprep.mubr.f32.mxu0 %v2783_v19  ;;  %v8987_v8 = vpop.f32.mrb[4].mxu1  ;;  %v4961_v19 = vld [vmem:[%s9728_s3 + $0xf8] sm:$0xff] }
 0x1cc   : > { %v8989_v61 = vpop.f32.mrb[5].mxu1 }
 0x1ce   : > { %6446 = vmatmul.mubr.f32.gmra.mrb[14].mxu0 %v2784_v6  ;;  %v7228_v6 = vpack.c.bf16 %v4961_v19, %v4960_v53 }
 0x1cf   : > { %6448 = vmatprep.mubr.f32.mxu0 %v2785_v10  ;;  %v8991_v23 = vpop.f32.mrb[6].mxu1  ;;  %v3289_v10 = vld [vmem:[%s9728_s3] sm:$0xff] }
 0x1d0   : > { %v8993_v49 = vpop.f32.mrb[7].mxu1  ;;  %7229 = vmatprep.subr.bf16.mxu1 %v7228_v6 }
 0x1d1   : > { %7231 = vmatpush3.bf16.msra.mxu1 %v7228_v6 }
 0x1d2   : > { %6449 = vmatmul.mubr.f32.gmra.mrb[16].mxu0 %v2786_v34  ;;  %v3290_v34 = vld [vmem:[%s9728_s3 + $0x8] sm:$0xff] }
 0x1d3   : > { %6451 = vmatprep.mubr.f32.mxu0 %v2787_v9  ;;  %v8995_v33 = vpop.f32.mrb[8].mxu1  ;;  %v9087_v9 = vpack.c.bf16 %v3290_v34, %v3289_v10 }
 0x1d4   : > { %v8997_v18 = vpop.f32.mrb[9].mxu1 }
 0x1d5   : > { %7233 = vmatprep.subr.bf16.mxu1 %v9087_v9 }
 0x1d6   : > { %6452 = vmatmul.mubr.f32.gmra.mrb[18].mxu0 %v2788_v16 }
 0x1d7   : > { %6454 = vmatprep.mubr.f32.mxu0 %v2789_v36  ;;  %v8999_v51 = vpop.f32.mrb[10].mxu1  ;;  %v9093_v36 = vld [vmem:[%s9727_s2] ss:$0 sm:$0xff] }
 0x1d8   : > { %v9001_v43 = vpop.f32.mrb[11].mxu1 }
 0x1da   : > { %6455 = vmatmul.mubr.f32.gmra.mrb[20].mxu0 %v2790_v29 }
 0x1db   : > { %6457 = vmatprep.mubr.f32.mxu0 %v2791_v15  ;;  %v9003_v42 = vpop.f32.mrb[12].mxu1 }
 0x1dc   : > { %v9005_v40 = vpop.f32.mrb[13].mxu1 }
 0x1de   : > { %6458 = vmatmul.mubr.f32.gmra.mrb[22].mxu0 %v2792_v22 }
 0x1df   : > { %6460 = vmatprep.mubr.f32.mxu0 %v2793_v44  ;;  %v9007_v17 = vpop.f32.mrb[14].mxu1 }
 0x1e0   : > { %v9009_v62 = vpop.f32.mrb[15].mxu1 }
 0x1e2   : > { %6461 = vmatmul.mubr.f32.gmra.mrb[24].mxu0 %v2794_v52 }
 0x1e3   : > { %6463 = vmatprep.mubr.f32.mxu0 %v2795_v13  ;;  %v9012_v58 = vpop.f32.mrb[16].mxu1 }
 0x1e4   : > { %v9014_v38 = vpop.f32.mrb[17].mxu1 }
 0x1e6   : > { %6464 = vmatmul.mubr.f32.gmra.mrb[26].mxu0 %v2796_v14 }
 0x1e7   : > { %6466 = vmatprep.mubr.f32.mxu0 %v8806_v39  ;;  %v9017_v55 = vpop.f32.mrb[18].mxu1 }
 0x1e8   : > { %v9019_v24 = vpop.f32.mrb[19].mxu1 }
 0x1ea   : > { %6467 = vmatmul.mubr.f32.gmra.mrb[28].mxu0 %v8810_v46 }
 0x1eb   : > { %6469 = vmatprep.mubr.f32.mxu0 %v2799_v20  ;;  %v9021_v54 = vpop.f32.mrb[20].mxu1 }
 0x1ec   : > { %v9023_v56 = vpop.f32.mrb[21].mxu1 }
 0x1ee   : > { %6470 = vmatmul.mubr.f32.gmra.mrb[30].mxu0 %v2800_v50 }
 0x1ef   : > { %v9025_v35 = vpop.f32.mrb[22].mxu1 }
 0x1f0   : > { %v9027_v39 = vpop.f32.mrb[23].mxu1 }
 0x1f3   : > { %v9029_v0 = vpop.f32.mrb[24].mxu1 }
 0x1f4   : > { %v9031_v26 = vpop.f32.mrb[25].mxu1 }
 0x1f7   : > { %v9033_v46 = vpop.f32.mrb[26].mxu1 }
 0x1f8   : > { %v9035_v2 = vpop.f32.mrb[27].mxu1 }
 0x1fb   : > { %v9037_v60 = vpop.f32.mrb[28].mxu1 }
 0x1fc   : > { %v9039_v59 = vpop.f32.mrb[29].mxu1 }
 0x1ff   : > { %v9041_v28 = vpop.f32.mrb[30].mxu1 }
 0x200   : > { %v9043_v3 = vpop.f32.mrb[31].mxu1 }
 0x285   : > { %v6426_v16 = vpop.f32.mrb[0].mxu0 }
 0x286   : > { %v7520_v29 = vadd.f32 %v6426_v16, %v8979_v47  ;;  %v2884_v15 = vpop.f32.mrb[1].mxu0 }
 0x287   : > { %v7521_v22 = vadd.f32 %v2884_v15, %v8981_v4 }
 0x288   : > { %v3083_v44 = vadd.f32 %v7520_v29, %v9093_v36 }
 0x289   : > { %v3082_v52 = vadd.f32 %v7521_v22, %v9093_v36  ;;  %v6429_v13 = vpop.f32.mrb[2].mxu0 }
 0x28a   : > { %v7522_v14 = vadd.f32 %v6429_v13, %v8983_v57  ;;  %v2894_v20 = vpop.f32.mrb[3].mxu0  ;;  %v3115_v5 = vmul.f32 0.1, %v3083_v44 }
 0x28b   : > { %v7523_v50 = vadd.f32 %v2894_v20, %v8985_v11  ;;  %v3114_v45 = vmul.f32 0.1, %v3082_v52 }
 0x28c   : > { %v3085_v12 = vadd.f32 %v7522_v14, %v9093_v36  ;;  %v3147_v30 = vmax.f32 %v3083_v44, %v3115_v5 }
 0x28d   : > { %v3084_v32 = vadd.f32 %v7523_v50, %v9093_v36  ;;  %v6432_v47 = vpop.f32.mrb[4].mxu0  ;;  %v3146_v63 = vmax.f32 %v3082_v52, %v3114_v45 }
 0x28e   : > { %v3117_v1 = vmul.f32 0.1, %v3085_v12  ;;  %v7524_v4 = vadd.f32 %v6432_v47, %v8987_v8  ;;  %v2904_v25 = vpop.f32.mrb[5].mxu0 }
 0x28f   : > { %v3116_v7 = vmul.f32 0.1, %v3084_v32  ;;  %v7525_v41 = vadd.f32 %v2904_v25, %v8989_v61 }
 0x290   : > { %v3149_v21 = vmax.f32 %v3085_v12, %v3117_v1  ;;  %v3087_v57 = vadd.f32 %v7524_v4, %v9093_v36 }
 0x291   : > { %v3148_v11 = vmax.f32 %v3084_v32, %v3116_v7  ;;  %v3086_v48 = vadd.f32 %v7525_v41, %v9093_v36  ;;  %v6435_v37 = vpop.f32.mrb[6].mxu0 }
 0x292   : > { %v3179_v27 = vmax.f32 %v3147_v30, %v3149_v21  ;;  %v7526_v31 = vadd.f32 %v6435_v37, %v8991_v23  ;;  %v2914_v53 = vpop.f32.mrb[7].mxu0  ;;  %v3119_v6 = vmul.f32 0.1, %v3087_v57 }
 0x293   : > { %v3178_v19 = vmax.f32 %v3146_v63, %v3148_v11  ;;  %v7527_v8 = vadd.f32 %v2914_v53, %v8993_v49  ;;  %v3118_v10 = vmul.f32 0.1, %v3086_v48 }
 0x294   : > { %3195 = vst [vmem:[#allocation3 + $0x8] sm:$0xff] %v3179_v27  ;;  %v3089_v61 = vadd.f32 %v7526_v31, %v9093_v36  ;;  %v3151_v52 = vmax.f32 %v3087_v57, %v3119_v6  ;;  %v3294_v27 = vld [vmem:[%s9728_s3 + $0x28] sm:$0xff] }
 0x295   : > { %3194 = vst [vmem:[#allocation3] sm:$0xff] %v3178_v19  ;;  %v3088_v34 = vadd.f32 %v7527_v8, %v9093_v36  ;;  %v6438_v16 = vpop.f32.mrb[8].mxu0  ;;  %v3150_v14 = vmax.f32 %v3086_v48, %v3118_v10 }
 0x296   : > { %v3121_v29 = vmul.f32 0.1, %v3089_v61  ;;  %v7528_v15 = vadd.f32 %v6438_v16, %v8995_v33  ;;  %v2924_v22 = vpop.f32.mrb[9].mxu0  ;;  %v3291_v33 = vld [vmem:[%s9728_s3 + $0x10] sm:$0xff] }
 0x297   : > { %v3120_v44 = vmul.f32 0.1, %v3088_v34  ;;  %v7529_v23 = vadd.f32 %v2924_v22, %v8997_v18  ;;  %v3292_v18 = vld [vmem:[%s9728_s3 + $0x18] sm:$0xff]  ;;  %v3295_v22 = vld [vmem:[%s9728_s3 + $0x30] sm:$0xff] }
 0x298   : > { %v3153_v13 = vmax.f32 %v3089_v61, %v3121_v29  ;;  %v3091_v49 = vadd.f32 %v7528_v15, %v9093_v36  ;;  %v7236_v63 = vpack.c.bf16 %v3292_v18, %v3291_v33  ;;  %v3297_v33 = vld [vmem:[%s9728_s3 + $0x40] sm:$0xff]  ;;  %v3298_v18 = vld [vmem:[%s9728_s3 + $0x48] sm:$0xff] }
 0x299   : > { %v3152_v20 = vmax.f32 %v3088_v34, %v3120_v44  ;;  %v3090_v50 = vadd.f32 %v7529_v23, %v9093_v36  ;;  %v6441_v5 = vpop.f32.mrb[10].mxu0  ;;  %v3296_v44 = vld [vmem:[%s9728_s3 + $0x38] sm:$0xff] }
 0x29a   : > { %v3181_v12 = vmax.f32 %v3151_v52, %v3153_v13  ;;  %v7530_v45 = vadd.f32 %v6441_v5, %v8999_v51  ;;  %v2934_v32 = vpop.f32.mrb[11].mxu0  ;;  %v3123_v7 = vmul.f32 0.1, %v3091_v49 }
 0x29b   : > { %v3180_v47 = vmax.f32 %v3150_v14, %v3152_v20  ;;  %v7531_v1 = vadd.f32 %v2934_v32, %v9001_v43  ;;  %v3122_v51 = vmul.f32 0.1, %v3090_v50  ;;  %v3293_v43 = vld [vmem:[%s9728_s3 + $0x20] sm:$0xff] }
 0x29c   : > { %v3210_v4 = vld [vmem:[#allocation3] ss:$2 sm:$0xff]  ;;  %v3226_v25 = vld [vmem:[#allocation3 + $0x1] ss:$2 sm:$0xff]  ;;  %3197 = vst [vmem:[#allocation3 + $0x18] sm:$0xff] %v3181_v12  ;;  %v3093_v41 = vadd.f32 %v7530_v45, %v9093_v36  ;;  %v3155_v19 = vmax.f32 %v3091_v49, %v3123_v7  ;;  %v7240_v16 = vpack.c.bf16 %v3294_v27, %v3293_v43  ;;  %v7244_v12 = vpack.c.bf16 %v3296_v44, %v3295_v22 }
 0x29d   : > { %3196 = vst [vmem:[#allocation3 + $0x10] sm:$0xff] %v3180_v47  ;;  %v3092_v30 = vadd.f32 %v7531_v1, %v9093_v36  ;;  %v6444_v21 = vpop.f32.mrb[12].mxu0  ;;  %v9125_v57 = vmax.f32 %v3210_v4, %v3226_v25  ;;  %v3154_v6 = vmax.f32 %v3090_v50, %v3122_v51 }
 0x29e   : > { %v3125_v11 = vmul.f32 0.1, %v3093_v41  ;;  %v7532_v48 = vadd.f32 %v6444_v21, %v9003_v42  ;;  %v2944_v37 = vpop.f32.mrb[13].mxu0  ;;  %v7248_v21 = vpack.c.bf16 %v3298_v18, %v3297_v33 }
 0x29f   : > { %v3124_v31 = vmul.f32 0.1, %v3092_v30  ;;  %v7533_v53 = vadd.f32 %v2944_v37, %v9005_v40  ;;  %3273 = vst [vmem:[#allocation4 + $0x20] sm:$0xff] %v9125_v57  ;;  %6505 = vmatmul.mubr.f32.vlgmr.msra.gmra.mrb[32].mxu1 %v9125_v57  ;;  %v3300_v37 = vld [vmem:[%s9728_s3 + $0x58] sm:$0xff] }
 0x2a0   : > { %v3157_v8 = vmax.f32 %v3093_v41, %v3125_v11  ;;  %v3095_v42 = vadd.f32 %v7532_v48, %v9093_v36  ;;  %7235 = vmatpush3.bf16.msra.mxu1 %v9087_v9  ;;  %v3299_v48 = vld [vmem:[%s9728_s3 + $0x50] sm:$0xff] }
 0x2a1   : > { %v3156_v61 = vmax.f32 %v3092_v30, %v3124_v31  ;;  %v3094_v10 = vadd.f32 %v7533_v53, %v9093_v36  ;;  %v6447_v34 = vpop.f32.mrb[14].mxu0  ;;  %7237 = vmatprep.subr.bf16.mxu1 %v7236_v63 }
 0x2a2   : > { %v3183_v29 = vmax.f32 %v3155_v19, %v3157_v8  ;;  %v7534_v40 = vadd.f32 %v6447_v34, %v9007_v17  ;;  %v2954_v15 = vpop.f32.mrb[15].mxu0  ;;  %v3127_v52 = vmul.f32 0.1, %v3095_v42 }
 0x2a3   : > { %v3182_v9 = vmax.f32 %v3154_v6, %v3156_v61  ;;  %v7535_v23 = vadd.f32 %v2954_v15, %v9009_v62  ;;  %v3126_v17 = vmul.f32 0.1, %v3094_v10 }
 0x2a4   : > { %3199 = vst [vmem:[#allocation3 + $0x28] sm:$0xff] %v3183_v29  ;;  %v3097_v13 = vadd.f32 %v7534_v40, %v9093_v36  ;;  %v3212_v49 = vld [vmem:[#allocation3 + $0x10] ss:$2 sm:$0xff]  ;;  %v3228_v14 = vld [vmem:[#allocation3 + $0x11] ss:$2 sm:$0xff]  ;;  %7239 = vmatpush3.bf16.msra.mxu1 %v7236_v63  ;;  %v3159_v4 = vmax.f32 %v3095_v42, %v3127_v52  ;;  %v3301_v29 = vld [vmem:[%s9728_s3 + $0x60] sm:$0xff] }
 0x2a5   : > { %3198 = vst [vmem:[#allocation3 + $0x20] sm:$0xff] %v3182_v9  ;;  %v3096_v20 = vadd.f32 %v7535_v23, %v9093_v36  ;;  %v6450_v50 = vpop.f32.mrb[16].mxu0  ;;  %v9150_v5 = vmax.f32 %v3212_v49, %v3228_v14  ;;  %7241 = vmatprep.subr.bf16.mxu1 %v7240_v16  ;;  %v3158_v7 = vmax.f32 %v3094_v10, %v3126_v17  ;;  %v3302_v40 = vld [vmem:[%s9728_s3 + $0x68] sm:$0xff] }
 0x2a6   : > { %v3129_v45 = vmul.f32 0.1, %v3097_v13  ;;  %v7536_v32 = vadd.f32 %v6450_v50, %v9012_v58  ;;  %v2964_v62 = vpop.f32.mrb[17].mxu0  ;;  %v7252_v10 = vpack.c.bf16 %v3300_v37, %v3299_v48  ;;  %v7256_v14 = vpack.c.bf16 %v3302_v40, %v3301_v29  ;;  %v3303_v50 = vld [vmem:[%s9728_s3 + $0x70] sm:$0xff] }
 0x2a7   : > { %v3128_v47 = vmul.f32 0.1, %v3096_v20  ;;  %v7537_v1 = vadd.f32 %v2964_v62, %v9014_v38  ;;  %3274 = vst [vmem:[#allocation4 + $0x38] sm:$0xff] %v9150_v5  ;;  %6507 = vmatprep.mubr.f32.mxu1 %v9150_v5 }
 0x2a8   : > { %v3161_v25 = vmax.f32 %v3097_v13, %v3129_v45  ;;  %v3099_v58 = vadd.f32 %v7536_v32, %v9093_v36  ;;  %7243 = vmatpush3.bf16.msra.mxu1 %v7240_v16 }
 0x2a9   : > { %v3160_v41 = vmax.f32 %v3096_v20, %v3128_v47  ;;  %v3098_v51 = vadd.f32 %v7537_v1, %v9093_v36  ;;  %v6453_v30 = vpop.f32.mrb[18].mxu0  ;;  %7245 = vmatprep.subr.bf16.mxu1 %v7244_v12 }
 0x2aa   : > { %v3185_v63 = vmax.f32 %v3159_v4, %v3161_v25  ;;  %v7538_v11 = vadd.f32 %v6453_v30, %v9017_v55  ;;  %v2974_v38 = vpop.f32.mrb[19].mxu0  ;;  %v3131_v31 = vmul.f32 0.1, %v3099_v58  ;;  %v4963_v30 = vld [vmem:[%s9728_s3 + $0x108] sm:$0xff] }
 0x2ab   : > { %v3184_v43 = vmax.f32 %v3158_v7, %v3160_v41  ;;  %v7539_v27 = vadd.f32 %v2974_v38, %v9019_v24  ;;  %v3130_v55 = vmul.f32 0.1, %v3098_v51 }
 0x2ac   : > { %3201 = vst [vmem:[#allocation3 + $0x38] sm:$0xff] %v3185_v63  ;;  %v3101_v53 = vadd.f32 %v7538_v11, %v9093_v36  ;;  %v3214_v19 = vld [vmem:[#allocation3 + $0x20] ss:$2 sm:$0xff]  ;;  %v3230_v8 = vld [vmem:[#allocation3 + $0x21] ss:$2 sm:$0xff]  ;;  %7247 = vmatpush3.bf16.msra.mxu1 %v7244_v12  ;;  %v3163_v44 = vmax.f32 %v3099_v58, %v3131_v31  ;;  %v3304_v12 = vld [vmem:[%s9728_s3 + $0x78] sm:$0xff] }
 0x2ad   : > { %3200 = vst [vmem:[#allocation3 + $0x30] sm:$0xff] %v3184_v43  ;;  %v3100_v42 = vadd.f32 %v7539_v27, %v9093_v36  ;;  %v6456_v6 = vpop.f32.mrb[20].mxu0  ;;  %v9174_v61 = vmax.f32 %v3214_v19, %v3230_v8  ;;  %7249 = vmatprep.subr.bf16.mxu1 %v7248_v21  ;;  %v3162_v23 = vmax.f32 %v3098_v51, %v3130_v55  ;;  %v4962_v51 = vld [vmem:[%s9728_s3 + $0x100] sm:$0xff] }
 0x2ae   : > { %v3133_v34 = vmul.f32 0.1, %v3101_v53  ;;  %v7540_v16 = vadd.f32 %v6456_v6, %v9021_v54  ;;  %v2984_v24 = vpop.f32.mrb[21].mxu0  ;;  %v7260_v58 = vpack.c.bf16 %v3304_v12, %v3303_v50  ;;  %v9212_v31 = vpack.c.bf16 %v4963_v30, %v4962_v51  ;;  %v4964_v30 = vld [vmem:[%s9728_s3 + $0x110] sm:$0xff] }
 0x2af   : > { %v3132_v15 = vmul.f32 0.1, %v3100_v42  ;;  %v7541_v22 = vadd.f32 %v2984_v24, %v9023_v56  ;;  %3275 = vst [vmem:[#allocation4 + $0x50] sm:$0xff] %v9174_v61  ;;  %6508 = vmatmul.mubr.f32.gmra.mrb[34].mxu1 %v9174_v61 }
 0x2b0   : > { %v3165_v9 = vmax.f32 %v3101_v53, %v3133_v34  ;;  %v3103_v54 = vadd.f32 %v7540_v16, %v9093_v36  ;;  %7251 = vmatpush3.bf16.msra.mxu1 %v7248_v21 }
 0x2b1   : > { %v3164_v52 = vmax.f32 %v3100_v42, %v3132_v15  ;;  %v3102_v13 = vadd.f32 %v7541_v22, %v9093_v36  ;;  %v6459_v49 = vpop.f32.mrb[22].mxu0  ;;  %7253 = vmatprep.subr.bf16.mxu1 %v7252_v10 }
 0x2b2   : > { %v3187_v17 = vmax.f32 %v3163_v44, %v3165_v9  ;;  %v7542_v20 = vadd.f32 %v6459_v49, %v9025_v35  ;;  %v2994_v56 = vpop.f32.mrb[23].mxu0  ;;  %v3135_v62 = vmul.f32 0.1, %v3103_v54 }
 0x2b3   : > { %v3186_v45 = vmax.f32 %v3162_v23, %v3164_v52  ;;  %v7543_v32 = vadd.f32 %v2994_v56, %v9027_v39  ;;  %v3134_v35 = vmul.f32 0.1, %v3102_v13 }
 0x2b4   : > { %3203 = vst [vmem:[#allocation3 + $0x48] sm:$0xff] %v3187_v17  ;;  %v3105_v33 = vadd.f32 %v7542_v20, %v9093_v36  ;;  %v3216_v18 = vld [vmem:[#allocation3 + $0x30] ss:$2 sm:$0xff]  ;;  %v3232_v47 = vld [vmem:[#allocation3 + $0x31] ss:$2 sm:$0xff]  ;;  %7255 = vmatpush3.bf16.msra.mxu1 %v7252_v10  ;;  %v3167_v11 = vmax.f32 %v3103_v54, %v3135_v62 }
 0x2b5   : > { %3202 = vst [vmem:[#allocation3 + $0x40] sm:$0xff] %v3186_v45  ;;  %v3104_v1 = vadd.f32 %v7543_v32, %v9093_v36  ;;  %v6462_v4 = vpop.f32.mrb[24].mxu0  ;;  %v9198_v25 = vmax.f32 %v3216_v18, %v3232_v47  ;;  %7257 = vmatprep.subr.bf16.mxu1 %v7256_v14  ;;  %v3166_v48 = vmax.f32 %v3102_v13, %v3134_v35 }
 0x2b6   : > { %v3137_v7 = vmul.f32 0.1, %v3105_v33  ;;  %v7544_v41 = vadd.f32 %v6462_v4, %v9029_v0  ;;  %v3004_v39 = vpop.f32.mrb[25].mxu0 }
 0x2b7   : > { %v3136_v21 = vmul.f32 0.1, %v3104_v1  ;;  %v7545_v63 = vadd.f32 %v3004_v39, %v9031_v26  ;;  %3276 = vst [vmem:[#allocation4 + $0x68] sm:$0xff] %v9198_v25  ;;  %6510 = vmatprep.mubr.f32.mxu1 %v9198_v25 }
 0x2b8   : > { %v3169_v38 = vmax.f32 %v3105_v33, %v3137_v7  ;;  %v3107_v0 = vadd.f32 %v7544_v41, %v9093_v36  ;;  %7259 = vmatpush3.bf16.msra.mxu1 %v7256_v14 }
 0x2b9   : > { %v3168_v37 = vmax.f32 %v3104_v1, %v3136_v21  ;;  %v3106_v43 = vadd.f32 %v7545_v63, %v9093_v36  ;;  %v6465_v27 = vpop.f32.mrb[26].mxu0  ;;  %7261 = vmatprep.subr.bf16.mxu1 %v7260_v58  ;;  %v4965_v21 = vld [vmem:[%s9728_s3 + $0x118] sm:$0xff] }
 0x2ba   : > { %v3189_v53 = vmax.f32 %v3167_v11, %v3169_v38  ;;  %v7546_v26 = vadd.f32 %v6465_v27, %v9033_v46  ;;  %v3014_v19 = vpop.f32.mrb[27].mxu0  ;;  %v3139_v42 = vmul.f32 0.1, %v3107_v0  ;;  %v7268_v63 = vpack.c.bf16 %v4965_v21, %v4964_v30  ;;  %v9245_v11 = vld [vmem:[#allocation4 + $0x1f] sm:$0xff]  ;;  %v4991_v21 = vld [vmem:[%s9728_s3 + $0x1e8] sm:$0xff] }
 0x2bb   : > { %v3188_v8 = vmax.f32 %v3166_v48, %v3168_v37  ;;  %v7547_v55 = vadd.f32 %v3014_v19, %v9035_v2  ;;  %v3138_v16 = vmul.f32 0.1, %v3106_v43  ;;  %v4966_v38 = vld [vmem:[%s9728_s3 + $0x120] sm:$0xff]  ;;  %v9254_v48 = vld [vmem:[#allocation4 + $0x37] sm:$0xff] }
 0x2bc   : > { %3205 = vst [vmem:[#allocation3 + $0x58] sm:$0xff] %v3189_v53  ;;  %v3109_v6 = vadd.f32 %v7546_v26, %v9093_v36  ;;  %v3218_v10 = vld [vmem:[#allocation3 + $0x40] ss:$2 sm:$0xff]  ;;  %v3234_v34 = vld [vmem:[#allocation3 + $0x41] ss:$2 sm:$0xff]  ;;  %7263 = vmatpush3.bf16.msra.mxu1 %v7260_v58  ;;  %v3171_v9 = vmax.f32 %v3107_v0, %v3139_v42  ;;  %v4968_v19 = vld [vmem:[%s9728_s3 + $0x130] sm:$0xff] }
 0x2bd   : > { %3204 = vst [vmem:[#allocation3 + $0x50] sm:$0xff] %v3188_v8  ;;  %v3108_v24 = vadd.f32 %v7547_v55, %v9093_v36  ;;  %v6468_v29 = vpop.f32.mrb[28].mxu0  ;;  %v9218_v40 = vmax.f32 %v3218_v10, %v3234_v34  ;;  %7265 = vmatprep.subr.bf16.mxu1 %v9212_v31  ;;  %v3170_v52 = vmax.f32 %v3106_v43, %v3138_v16  ;;  %v4967_v0 = vld [vmem:[%s9728_s3 + $0x128] sm:$0xff]  ;;  %v4969_v8 = vld [vmem:[%s9728_s3 + $0x138] sm:$0xff]  ;;  %v4990_v30 = vld [vmem:[%s9728_s3 + $0x1e0] sm:$0xff] }
 0x2be   : > { %v3141_v46 = vmul.f32 0.1, %v3109_v6  ;;  %v7548_v15 = vadd.f32 %v6468_v29, %v9037_v60  ;;  %v3024_v2 = vpop.f32.mrb[29].mxu0  ;;  %v7272_v27 = vpack.c.bf16 %v4967_v0, %v4966_v38  ;;  %v9260_v26 = vld [vmem:[#allocation4 + $0x4f] sm:$0xff]  ;;  %v7276_v55 = vpack.c.bf16 %v4969_v8, %v4968_v19  ;;  %v4997_v8 = vld [vmem:[%s9728_s3 + $0x218] sm:$0xff] }
 0x2bf   : > { %v3140_v22 = vmul.f32 0.1, %v3108_v24  ;;  %v7549_v44 = vadd.f32 %v3024_v2, %v9039_v59  ;;  %3277 = vst [vmem:[#allocation4 + $0x80] sm:$0xff] %v9218_v40  ;;  %6511 = vmatmul.mubr.f32.gmra.mrb[36].mxu1 %v9218_v40  ;;  %v4971_v10 = vld [vmem:[%s9728_s3 + $0x148] sm:$0xff]  ;;  %v4992_v38 = vld [vmem:[%s9728_s3 + $0x1f0] sm:$0xff] }
 0x2c0   : > { %v3173_v54 = vmax.f32 %v3109_v6, %v3141_v46  ;;  %v3111_v23 = vadd.f32 %v7548_v15, %v9093_v36  ;;  %v4970_v6 = vld [vmem:[%s9728_s3 + $0x140] sm:$0xff]  ;;  %v4972_v46 = vld [vmem:[%s9728_s3 + $0x150] sm:$0xff]  ;;  %v4973_v15 = vld [vmem:[%s9728_s3 + $0x158] sm:$0xff] }
 0x2c1   : > { %v3172_v13 = vmax.f32 %v3108_v24, %v3140_v22  ;;  %v3110_v49 = vadd.f32 %v7549_v44, %v9093_v36  ;;  %v6471_v14 = vpop.f32.mrb[30].mxu0  ;;  %v7280_v16 = vpack.c.bf16 %v4971_v10, %v4970_v6  ;;  %v3540_v24 = vld [vmem:[#allocation4 + $0x9] sm:$0xff]  ;;  %v7284_v2 = vpack.c.bf16 %v4973_v15, %v4972_v46  ;;  %v4974_v22 = vld [vmem:[%s9728_s3 + $0x160] sm:$0xff]  ;;  %v5001_v46 = vld [vmem:[%s9728_s3 + $0x238] sm:$0xff] }
 0x2c2   : > { %v3191_v17 = vmax.f32 %v3171_v9, %v3173_v54  ;;  %v7550_v60 = vadd.f32 %v6471_v14, %v9041_v28  ;;  %v3034_v20 = vpop.f32.mrb[31].mxu0  ;;  %v3143_v50 = vmul.f32 0.1, %v3111_v23  ;;  %v4975_v44 = vld [vmem:[%s9728_s3 + $0x168] sm:$0xff]  ;;  %v4976_v54 = vld [vmem:[%s9728_s3 + $0x170] sm:$0xff]  ;;  %v4998_v6 = vld [vmem:[%s9728_s3 + $0x220] sm:$0xff] }
 0x2c3   : > { %v3190_v56 = vmax.f32 %v3170_v52, %v3172_v13  ;;  %v7551_v59 = vadd.f32 %v3034_v20, %v9043_v3  ;;  %v3142_v62 = vmul.f32 0.1, %v3110_v49  ;;  %v7288_v9 = vpack.c.bf16 %v4975_v44, %v4974_v22  ;;  %v4978_v13 = vld [vmem:[%s9728_s3 + $0x180] sm:$0xff]  ;;  %v4996_v19 = vld [vmem:[%s9728_s3 + $0x210] sm:$0xff]  ;;  %v4999_v10 = vld [vmem:[%s9728_s3 + $0x228] sm:$0xff] }
 0x2c4   : > { %3207 = vst [vmem:[#allocation3 + $0x68] sm:$0xff] %v3191_v17  ;;  %v3113_v12 = vadd.f32 %v7550_v60, %v9093_v36  ;;  %v3220_v45 = vld [vmem:[#allocation3 + $0x50] ss:$2 sm:$0xff]  ;;  %v3236_v32 = vld [vmem:[#allocation3 + $0x51] ss:$2 sm:$0xff]  ;;  %v3175_v28 = vmax.f32 %v3111_v23, %v3143_v50  ;;  %v4983_v50 = vld [vmem:[%s9728_s3 + $0x1a8] sm:$0xff] }
 0x2c5   : > { %3206 = vst [vmem:[#allocation3 + $0x60] sm:$0xff] %v3190_v56  ;;  %v3112_v33 = vadd.f32 %v7551_v59, %v9093_v36  ;;  %v9231_v18 = vmax.f32 %v3220_v45, %v3236_v32  ;;  %v3174_v1 = vmax.f32 %v3110_v49, %v3142_v62  ;;  %v3281_v36 = vld [vmem:[#allocation4 + $0x7] sm:$0xff]  ;;  %v4977_v23 = vld [vmem:[%s9728_s3 + $0x178] sm:$0xff]  ;;  %v4980_v17 = vld [vmem:[%s9728_s3 + $0x190] sm:$0xff] }
 0x2c6   : > { %v3145_v47 = vmul.f32 0.1, %v3113_v12  ;;  %v9273_v42 = vld [vmem:[#allocation4 + $0x7f] sm:$0xff]  ;;  %v7292_v52 = vpack.c.bf16 %v4977_v23, %v4976_v54  ;;  %v4979_v49 = vld [vmem:[%s9728_s3 + $0x188] sm:$0xff]  ;;  %v9330_v32 = vld [vmem:[#allocation4 + $0x51] sm:$0xff] }
 0x2c7   : > { %v3144_v35 = vmul.f32 0.1, %v3112_v33  ;;  %3278 = vst [vmem:[#allocation4 + $0x98] sm:$0xff] %v9231_v18  ;;  %6513 = vmatprep.mubr.f32.mxu1 %v9231_v18  ;;  %v7296_v14 = vpack.c.bf16 %v4979_v49, %v4978_v13  ;;  %v4981_v60 = vld [vmem:[%s9728_s3 + $0x198] sm:$0xff]  ;;  %v9318_v56 = vld [vmem:[#allocation4 + $0x21] sm:$0xff]  ;;  %v4984_v62 = vld [vmem:[%s9728_s3 + $0x1b0] sm:$0xff] }
 0x2c8   : > { %v3177_v3 = vmax.f32 %v3113_v12, %v3145_v47  ;;  %v7300_v20 = vpack.c.bf16 %v4981_v60, %v4980_v17  ;;  %v4982_v59 = vld [vmem:[%s9728_s3 + $0x1a0] sm:$0xff]  ;;  %v9339_v47 = vld [vmem:[#allocation4 + $0x69] sm:$0xff]  ;;  %v5005_v23 = vld [vmem:[%s9728_s3 + $0x258] sm:$0xff] }
 0x2c9   : > { %v3176_v4 = vmax.f32 %v3112_v33, %v3144_v35  ;;  %v9327_v12 = vld [vmem:[#allocation4 + $0x39] sm:$0xff]  ;;  %v7304_v45 = vpack.c.bf16 %v4983_v50, %v4982_v59  ;;  %v5003_v22 = vld [vmem:[%s9728_s3 + $0x248] sm:$0xff]  ;;  %v5004_v54 = vld [vmem:[%s9728_s3 + $0x250] sm:$0xff] }
 0x2ca   : > { %v3193_v58 = vmax.f32 %v3175_v28, %v3177_v3  ;;  %v4985_v33 = vld [vmem:[%s9728_s3 + $0x1b8] sm:$0xff]  ;;  %v9342_v28 = vld [vmem:[#allocation4 + $0x81] sm:$0xff]  ;;  %v5008_v17 = vld [vmem:[%s9728_s3 + $0x270] sm:$0xff] }
 0x2cb   : > { %v3192_v7 = vmax.f32 %v3174_v1, %v3176_v4  ;;  %v7308_v35 = vpack.c.bf16 %v4985_v33, %v4984_v62  ;;  %v4986_v3 = vld [vmem:[%s9728_s3 + $0x1c0] sm:$0xff]  ;;  %v4987_v1 = vld [vmem:[%s9728_s3 + $0x1c8] sm:$0xff]  ;;  %v5013_v62 = vld [vmem:[%s9728_s3 + $0x298] sm:$0xff] }
 0x2cc   : > { %3209 = vst [vmem:[#allocation3 + $0x78] sm:$0xff] %v3193_v58  ;;  %v3222_v41 = vld [vmem:[#allocation3 + $0x60] ss:$2 sm:$0xff]  ;;  %v3238_v39 = vld [vmem:[#allocation3 + $0x61] ss:$2 sm:$0xff]  ;;  %v7312_v58 = vpack.c.bf16 %v4987_v1, %v4986_v3 }
 0x2cd   : > { %3208 = vst [vmem:[#allocation3 + $0x70] sm:$0xff] %v3192_v7  ;;  %v9235_v51 = vmax.f32 %v3222_v41, %v3238_v39  ;;  %v4988_v41 = vld [vmem:[%s9728_s3 + $0x1d0] sm:$0xff]  ;;  %v4989_v39 = vld [vmem:[%s9728_s3 + $0x1d8] sm:$0xff]  ;;  %v5006_v13 = vld [vmem:[%s9728_s3 + $0x260] sm:$0xff] }
 0x2ce   : > { %v9282_v34 = vld [vmem:[#allocation4 + $0x97] sm:$0xff]  ;;  %v5007_v49 = vld [vmem:[%s9728_s3 + $0x268] sm:$0xff] }
 0x2cf   : > { %3279 = vst [vmem:[#allocation4 + $0xb0] sm:$0xff] %v9235_v51  ;;  %6514 = vmatmul.mubr.f32.gmra.mrb[38].mxu1 %v9235_v51  ;;  %v9351_v4 = vld [vmem:[#allocation4 + $0x99] sm:$0xff]  ;;  %v5011_v59 = vld [vmem:[%s9728_s3 + $0x288] sm:$0xff] }
 0x2d0   : > { %6548 = vmatprep.mubr.f32.mxu1 %v3281_v36  ;;  %v7316_v36 = vpack.c.bf16 %v4989_v39, %v4988_v41  ;;  %v5015_v3 = vld [vmem:[%s9728_s3 + $0x2a8] sm:$0xff]  ;;  %v5017_v41 = vld [vmem:[%s9728_s3 + $0x2b8] sm:$0xff] }
 0x2d3   : > { %6549 = vmatmul.mubr.f32.vlgmr.msra.gmra.mrb[32].mxu1 %v9245_v11 }
 0x2d4   : > { %7267 = vmatpush3.bf16.msra.mxu1 %v9212_v31  ;;  %6551 = vmatprep.mubr.f32.mxu1 %v9254_v48  ;;  %v3224_v37 = vld [vmem:[#allocation3 + $0x70] ss:$2 sm:$0xff]  ;;  %v3240_v43 = vld [vmem:[#allocation3 + $0x71] ss:$2 sm:$0xff]  ;;  %v9269_v31 = vld [vmem:[#allocation4 + $0x67] sm:$0xff] }
 0x2d5   : > { %7269 = vmatprep.subr.bf16.mxu1 %v7268_v63  ;;  %v9258_v53 = vmax.f32 %v3224_v37, %v3240_v43  ;;  %v4994_v37 = vld [vmem:[%s9728_s3 + $0x200] sm:$0xff]  ;;  %v4995_v43 = vld [vmem:[%s9728_s3 + $0x208] sm:$0xff] }
 0x2d6   : > { %v9285_v29 = vld [vmem:[#allocation4 + $0xaf] sm:$0xff] }
 0x2d7   : > { %6552 = vmatmul.mubr.f32.gmra.mrb[34].mxu1 %v9260_v26  ;;  %3280 = vst [vmem:[#allocation4 + $0xc8] sm:$0xff] %v9258_v53  ;;  %v9354_v7 = vld [vmem:[#allocation4 + $0xb1] sm:$0xff] }
 0x2d8   : > { %7271 = vmatpush3.bf16.msra.mxu1 %v7268_v63  ;;  %6554 = vmatprep.mubr.f32.mxu1 %v9269_v31  ;;  %v7320_v63 = vpack.c.bf16 %v4991_v21, %v4990_v30  ;;  %v5019_v30 = vld [vmem:[%s9728_s3 + $0x2c8] sm:$0xff] }
 0x2d9   : > { %7273 = vmatprep.subr.bf16.mxu1 %v7272_v27 }
 0x2db   : > { %6555 = vmatmul.mubr.f32.gmra.mrb[36].mxu1 %v9273_v42 }
 0x2dc   : > { %7275 = vmatpush3.bf16.msra.mxu1 %v7272_v27  ;;  %6557 = vmatprep.mubr.f32.mxu1 %v9282_v34  ;;  %v7328_v27 = vpack.c.bf16 %v4995_v43, %v4994_v37  ;;  %v5023_v37 = vld [vmem:[%s9728_s3 + $0x2e8] sm:$0xff] }
 0x2dd   : > { %7277 = vmatprep.subr.bf16.mxu1 %v7276_v55 }
 0x2df   : > { %6558 = vmatmul.mubr.f32.gmra.mrb[38].mxu1 %v9285_v29 }
 0x2e0   : > { %7279 = vmatpush3.bf16.msra.mxu1 %v7276_v55  ;;  %6592 = vmatprep.mubr.f32.mxu1 %v3540_v24  ;;  %v7332_v55 = vpack.c.bf16 %v4997_v8, %v4996_v19  ;;  %v5000_v24 = vld [vmem:[%s9728_s3 + $0x230] sm:$0xff]  ;;  %v5026_v8 = vld [vmem:[%s9728_s3 + $0x300] sm:$0xff] }
 0x2e1   : > { %7281 = vmatprep.subr.bf16.mxu1 %v7280_v16  ;;  %v7340_v15 = vpack.c.bf16 %v5001_v46, %v5000_v24  ;;  %v5030_v46 = vld [vmem:[%s9728_s3 + $0x320] sm:$0xff] }
 0x2e4   : > { %7283 = vmatpush3.bf16.msra.mxu1 %v7280_v16  ;;  %v7336_v16 = vpack.c.bf16 %v4999_v10, %v4998_v6  ;;  %v5028_v10 = vld [vmem:[%s9728_s3 + $0x310] sm:$0xff] }
 0x2e5   : > { %7285 = vmatprep.subr.bf16.mxu1 %v7284_v2 }
 0x2e8   : > { %7287 = vmatpush3.bf16.msra.mxu1 %v7284_v2  ;;  %v5002_v2 = vld [vmem:[%s9728_s3 + $0x240] sm:$0xff] }
 0x2e9   : > { %7289 = vmatprep.subr.bf16.mxu1 %v7288_v9  ;;  %v7344_v44 = vpack.c.bf16 %v5003_v22, %v5002_v2  ;;  %v5032_v22 = vld [vmem:[%s9728_s3 + $0x330] sm:$0xff] }
 0x2ec   : > { %7291 = vmatpush3.bf16.msra.mxu1 %v7288_v9  ;;  %v9412_v9 = vld [vmem:[#allocation4 + $0xc7] sm:$0xff] }
 0x2ed   : > { %7293 = vmatprep.subr.bf16.mxu1 %v7292_v52 }
 0x2f0   : > { %7295 = vmatpush3.bf16.msra.mxu1 %v7292_v52  ;;  %v7348_v52 = vpack.c.bf16 %v5005_v23, %v5004_v54  ;;  %v5034_v23 = vld [vmem:[%s9728_s3 + $0x340] sm:$0xff] }
 0x2f1   : > { %7297 = vmatprep.subr.bf16.mxu1 %v7296_v14 }
 0x2f3   : > { %6593 = vmatmul.mubr.f32.vlgmr.msra.gmra.mrb[32].mxu1 %v9318_v56 }
 0x2f4   : > { %6595 = vmatprep.mubr.f32.mxu1 %v9327_v12  ;;  %7299 = vmatpush3.bf16.msra.mxu1 %v7296_v14  ;;  %v7352_v14 = vpack.c.bf16 %v5007_v49, %v5006_v13  ;;  %v9526_v49 = vld [vmem:[#allocation4 + $0xc9] sm:$0xff] }
 0x2f5   : > { %7301 = vmatprep.subr.bf16.mxu1 %v7300_v20 }
 0x2f7   : > { %6596 = vmatmul.mubr.f32.gmra.mrb[34].mxu1 %v9330_v32 }
 0x2f8   : > { %6598 = vmatprep.mubr.f32.mxu1 %v9339_v47  ;;  %7303 = vmatpush3.bf16.msra.mxu1 %v7300_v20  ;;  %v5010_v20 = vld [vmem:[%s9728_s3 + $0x280] sm:$0xff] }
 0x2f9   : > { %7305 = vmatprep.subr.bf16.mxu1 %v7304_v45  ;;  %v7360_v50 = vpack.c.bf16 %v5011_v59, %v5010_v20  ;;  %v5039_v20 = vld [vmem:[%s9728_s3 + $0x368] sm:$0xff] }
 0x2fb   : > { %6599 = vmatmul.mubr.f32.gmra.mrb[36].mxu1 %v9342_v28 }
 0x2fc   : > { %6601 = vmatprep.mubr.f32.mxu1 %v9351_v4  ;;  %7307 = vmatpush3.bf16.msra.mxu1 %v7304_v45  ;;  %v5012_v45 = vld [vmem:[%s9728_s3 + $0x290] sm:$0xff] }
 0x2fd   : > { %7309 = vmatprep.subr.bf16.mxu1 %v7308_v35  ;;  %v7364_v33 = vpack.c.bf16 %v5013_v62, %v5012_v45  ;;  %v5042_v62 = vld [vmem:[%s9728_s3 + $0x380] sm:$0xff] }
 0x2ff   : > { %6602 = vmatmul.mubr.f32.gmra.mrb[38].mxu1 %v9354_v7 }
 0x300   : > { %7311 = vmatpush3.bf16.msra.mxu1 %v7308_v35  ;;  %6636 = vmatprep.mubr.f32.mxu1 %v9245_v11  ;;  %v4993_v11 = vld [vmem:[%s9728_s3 + $0x1f8] sm:$0xff]  ;;  %v5014_v35 = vld [vmem:[%s9728_s3 + $0x2a0] sm:$0xff] }
 0x301   : > { %7313 = vmatprep.subr.bf16.mxu1 %v7312_v58  ;;  %v7324_v0 = vpack.c.bf16 %v4993_v11, %v4992_v38  ;;  %v7368_v1 = vpack.c.bf16 %v5015_v3, %v5014_v35  ;;  %v5021_v38 = vld [vmem:[%s9728_s3 + $0x2d8] sm:$0xff]  ;;  %v5044_v3 = vld [vmem:[%s9728_s3 + $0x390] sm:$0xff] }
 0x304   : > { %7315 = vmatpush3.bf16.msra.mxu1 %v7312_v58  ;;  %v5016_v58 = vld [vmem:[%s9728_s3 + $0x2b0] sm:$0xff] }
 0x305   : > { %7317 = vmatprep.subr.bf16.mxu1 %v7316_v36  ;;  %v7372_v39 = vpack.c.bf16 %v5017_v41, %v5016_v58  ;;  %v5046_v41 = vld [vmem:[%s9728_s3 + $0x3a0] sm:$0xff] }
 0x308   : > { %7319 = vmatpush3.bf16.msra.mxu1 %v7316_v36  ;;  %v5018_v36 = vld [vmem:[%s9728_s3 + $0x2c0] sm:$0xff] }
 0x309   : > { %7321 = vmatprep.subr.bf16.mxu1 %v7320_v63  ;;  %v7376_v21 = vpack.c.bf16 %v5019_v30, %v5018_v36  ;;  %v5048_v30 = vld [vmem:[%s9728_s3 + $0x3b0] sm:$0xff] }
 0x30c   : > { %7323 = vmatpush3.bf16.msra.mxu1 %v7320_v63  ;;  %v5020_v63 = vld [vmem:[%s9728_s3 + $0x2d0] sm:$0xff] }
 0x30d   : > { %7325 = vmatprep.subr.bf16.mxu1 %v7324_v0  ;;  %v7380_v11 = vpack.c.bf16 %v5021_v38, %v5020_v63  ;;  %v5051_v63 = vld [vmem:[%s9728_s3 + $0x3c8] sm:$0xff]  ;;  %v4100_v38 = vld [vmem:[#allocation4 + $0xdf] sm:$0xff] }
 0x310   : > { %7327 = vmatpush3.bf16.msra.mxu1 %v7324_v0  ;;  %v5022_v0 = vld [vmem:[%s9728_s3 + $0x2e0] sm:$0xff] }
 0x311   : > { %7329 = vmatprep.subr.bf16.mxu1 %v7328_v27  ;;  %v7384_v43 = vpack.c.bf16 %v5023_v37, %v5022_v0  ;;  %v5055_v0 = vld [vmem:[%s9728_s3 + $0x3e8] sm:$0xff] }
 0x313   : > { %6637 = vmatmul.mubr.f32.vlgmr.msra.gmra.mrb[32].mxu1 %v9254_v48 }
 0x314   : > { %6639 = vmatprep.mubr.f32.mxu1 %v9260_v26  ;;  %7331 = vmatpush3.bf16.msra.mxu1 %v7328_v27  ;;  %v5024_v27 = vld [vmem:[%s9728_s3 + $0x2f0] sm:$0xff] }
 0x315   : > { %7333 = vmatprep.subr.bf16.mxu1 %v7332_v55 }
 0x317   : > { %6640 = vmatmul.mubr.f32.gmra.mrb[34].mxu1 %v9269_v31 }
 0x318   : > { %6642 = vmatprep.mubr.f32.mxu1 %v9273_v42  ;;  %7335 = vmatpush3.bf16.msra.mxu1 %v7332_v55  ;;  %v5027_v55 = vld [vmem:[%s9728_s3 + $0x308] sm:$0xff] }
 0x319   : > { %7337 = vmatprep.subr.bf16.mxu1 %v7336_v16  ;;  %v7392_v6 = vpack.c.bf16 %v5027_v55, %v5026_v8  ;;  %v5060_v55 = vld [vmem:[%s9728_s3 + $0x410] sm:$0xff] }
 0x31b   : > { %6643 = vmatmul.mubr.f32.gmra.mrb[36].mxu1 %v9282_v34 }
 0x31c   : > { %6645 = vmatprep.mubr.f32.mxu1 %v9285_v29  ;;  %7339 = vmatpush3.bf16.msra.mxu1 %v7336_v16  ;;  %v5029_v16 = vld [vmem:[%s9728_s3 + $0x318] sm:$0xff] }
 0x31d   : > { %7341 = vmatprep.subr.bf16.mxu1 %v7340_v15  ;;  %v7396_v24 = vpack.c.bf16 %v5029_v16, %v5028_v10  ;;  %v5062_v16 = vld [vmem:[%s9728_s3 + $0x420] sm:$0xff] }
 0x31f   : > { %6646 = vmatmul.mubr.f32.gmra.mrb[38].mxu1 %v9412_v9 }
 0x320   : > { %7343 = vmatpush3.bf16.msra.mxu1 %v7340_v15  ;;  %6680 = vmatprep.mubr.f32.mxu1 %v9125_v57  ;;  %v5009_v57 = vld [vmem:[%s9728_s3 + $0x278] sm:$0xff]  ;;  %v5031_v15 = vld [vmem:[%s9728_s3 + $0x328] sm:$0xff] }
 0x321   : > { %7345 = vmatprep.subr.bf16.mxu1 %v7344_v44  ;;  %v7356_v60 = vpack.c.bf16 %v5009_v57, %v5008_v17  ;;  %v7400_v2 = vpack.c.bf16 %v5031_v15, %v5030_v46  ;;  %v5037_v17 = vld [vmem:[%s9728_s3 + $0x358] sm:$0xff]  ;;  %v5064_v15 = vld [vmem:[%s9728_s3 + $0x430] sm:$0xff] }
 0x324   : > { %7347 = vmatpush3.bf16.msra.mxu1 %v7344_v44  ;;  %v5033_v44 = vld [vmem:[%s9728_s3 + $0x338] sm:$0xff] }
 0x325   : > { %7349 = vmatprep.subr.bf16.mxu1 %v7348_v52  ;;  %v7404_v54 = vpack.c.bf16 %v5033_v44, %v5032_v22  ;;  %v5067_v22 = vld [vmem:[%s9728_s3 + $0x448] sm:$0xff]  ;;  %v5069_v44 = vld [vmem:[%s9728_s3 + $0x458] sm:$0xff] }
 0x328   : > { %7351 = vmatpush3.bf16.msra.mxu1 %v7348_v52  ;;  %v5035_v52 = vld [vmem:[%s9728_s3 + $0x348] sm:$0xff] }
 0x329   : > { %7353 = vmatprep.subr.bf16.mxu1 %v7352_v14  ;;  %v7408_v13 = vpack.c.bf16 %v5035_v52, %v5034_v23  ;;  %v5071_v23 = vld [vmem:[%s9728_s3 + $0x468] sm:$0xff] }
 0x32c   : > { %7355 = vmatpush3.bf16.msra.mxu1 %v7352_v14  ;;  %v5036_v14 = vld [vmem:[%s9728_s3 + $0x350] sm:$0xff] }
 0x32d   : > { %7357 = vmatprep.subr.bf16.mxu1 %v7356_v60  ;;  %v7412_v57 = vpack.c.bf16 %v5037_v17, %v5036_v14  ;;  %v4617_v17 = vld [vmem:[%s9730_s5] sm:$0xff] }
 0x330   : > { %7359 = vmatpush3.bf16.msra.mxu1 %v7356_v60  ;;  %v5038_v60 = vld [vmem:[%s9728_s3 + $0x360] sm:$0xff] }
 0x331   : > { %7361 = vmatprep.subr.bf16.mxu1 %v7360_v50  ;;  %v7416_v59 = vpack.c.bf16 %v5039_v20, %v5038_v60  ;;  %v4619_v20 = vld [vmem:[%s9730_s5 + $0x10] sm:$0xff] }
 0x333   : > { %6681 = vmatmul.mubr.f32.vlgmr.msra.gmra.mrb[32].mxu1 %v9150_v5 }
 0x334   : > { %6683 = vmatprep.mubr.f32.mxu1 %v9174_v61  ;;  %7363 = vmatpush3.bf16.msra.mxu1 %v7360_v50  ;;  %v5040_v50 = vld [vmem:[%s9728_s3 + $0x370] sm:$0xff] }
 0x335   : > { %7365 = vmatprep.subr.bf16.mxu1 %v7364_v33 }
 0x337   : > { %6684 = vmatmul.mubr.f32.gmra.mrb[34].mxu1 %v9198_v25 }
 0x338   : > { %6686 = vmatprep.mubr.f32.mxu1 %v9218_v40  ;;  %7367 = vmatpush3.bf16.msra.mxu1 %v7364_v33  ;;  %v5043_v33 = vld [vmem:[%s9728_s3 + $0x388] sm:$0xff] }
 0x339   : > { %7369 = vmatprep.subr.bf16.mxu1 %v7368_v1  ;;  %v7424_v35 = vpack.c.bf16 %v5043_v33, %v5042_v62  ;;  %v4626_v62 = vld [vmem:[%s9730_s5 + $0x48] sm:$0xff] }
 0x33b   : > { %6687 = vmatmul.mubr.f32.gmra.mrb[36].mxu1 %v9231_v18 }
 0x33c   : > { %6689 = vmatprep.mubr.f32.mxu1 %v9235_v51  ;;  %7371 = vmatpush3.bf16.msra.mxu1 %v7368_v1  ;;  %v5045_v1 = vld [vmem:[%s9728_s3 + $0x398] sm:$0xff] }
 0x33d   : > { %7373 = vmatprep.subr.bf16.mxu1 %v7372_v39  ;;  %v7428_v58 = vpack.c.bf16 %v5045_v1, %v5044_v3  ;;  %v4628_v3 = vld [vmem:[%s9730_s5 + $0x58] sm:$0xff] }
 0x33f   : > { %6690 = vmatmul.mubr.f32.gmra.mrb[38].mxu1 %v9258_v53 }
 0x340   : > { %7375 = vmatpush3.bf16.msra.mxu1 %v7372_v39  ;;  %6724 = vmatprep.mubr.f32.mxu1 %v9318_v56  ;;  %v5025_v56 = vld [vmem:[%s9728_s3 + $0x2f8] sm:$0xff]  ;;  %v5047_v39 = vld [vmem:[%s9728_s3 + $0x3a8] sm:$0xff] }
 0x341   : > { %7377 = vmatprep.subr.bf16.mxu1 %v7376_v21  ;;  %v7388_v19 = vpack.c.bf16 %v5025_v56, %v5024_v27  ;;  %v7432_v36 = vpack.c.bf16 %v5047_v39, %v5046_v41  ;;  %v5058_v56 = vld [vmem:[%s9728_s3 + $0x400] sm:$0xff]  ;;  %v4630_v41 = vld [vmem:[%s9730_s5 + $0x68] sm:$0xff] }
 0x344   : > { %7379 = vmatpush3.bf16.msra.mxu1 %v7376_v21  ;;  %v5049_v21 = vld [vmem:[%s9728_s3 + $0x3b8] sm:$0xff] }
 0x345   : > { %7381 = vmatprep.subr.bf16.mxu1 %v7380_v11 }
 0x348   : > { %7383 = vmatpush3.bf16.msra.mxu1 %v7380_v11  ;;  %v5053_v11 = vld [vmem:[%s9728_s3 + $0x3d8] sm:$0xff] }
 0x349   : > { %7385 = vmatprep.subr.bf16.mxu1 %v7384_v43 }
 0x34c   : > { %7387 = vmatpush3.bf16.msra.mxu1 %v7384_v43  ;;  %v5056_v43 = vld [vmem:[%s9728_s3 + $0x3f0] sm:$0xff] }
 0x34d   : > { %7389 = vmatprep.subr.bf16.mxu1 %v7388_v19 }
 0x350   : > { %7391 = vmatpush3.bf16.msra.mxu1 %v7388_v19  ;;  %v5059_v19 = vld [vmem:[%s9728_s3 + $0x408] sm:$0xff] }
 0x351   : > { %7393 = vmatprep.subr.bf16.mxu1 %v7392_v6  ;;  %v7456_v8 = vpack.c.bf16 %v5059_v19, %v5058_v56 }
 0x353   : > { %6725 = vmatmul.mubr.f32.vlgmr.msra.gmra.mrb[32].mxu1 %v9327_v12 }
 0x354   : > { %6727 = vmatprep.mubr.f32.mxu1 %v9330_v32  ;;  %7395 = vmatpush3.bf16.msra.mxu1 %v7392_v6  ;;  %v5061_v6 = vld [vmem:[%s9728_s3 + $0x418] sm:$0xff] }
 0x355   : > { %7397 = vmatprep.subr.bf16.mxu1 %v7396_v24  ;;  %v7460_v10 = vpack.c.bf16 %v5061_v6, %v5060_v55 }
 0x357   : > { %6728 = vmatmul.mubr.f32.gmra.mrb[34].mxu1 %v9339_v47 }
 0x358   : > { %6730 = vmatprep.mubr.f32.mxu1 %v9342_v28  ;;  %7399 = vmatpush3.bf16.msra.mxu1 %v7396_v24  ;;  %v5063_v24 = vld [vmem:[%s9728_s3 + $0x428] sm:$0xff] }
 0x359   : > { %7401 = vmatprep.subr.bf16.mxu1 %v7400_v2  ;;  %v7464_v46 = vpack.c.bf16 %v5063_v24, %v5062_v16 }
 0x35b   : > { %6731 = vmatmul.mubr.f32.gmra.mrb[36].mxu1 %v9351_v4 }
 0x35c   : > { %6733 = vmatprep.mubr.f32.mxu1 %v9354_v7  ;;  %7403 = vmatpush3.bf16.msra.mxu1 %v7400_v2  ;;  %v5065_v2 = vld [vmem:[%s9728_s3 + $0x438] sm:$0xff] }
 0x35d   : > { %7405 = vmatprep.subr.bf16.mxu1 %v7404_v54 }
 0x35f   : > { %6734 = vmatmul.mubr.f32.gmra.mrb[38].mxu1 %v9526_v49 }
 0x360   : > { %7407 = vmatpush3.bf16.msra.mxu1 %v7404_v54  ;;  %6768 = vmatprep.mubr.f32.mxu1 %v9254_v48  ;;  %v5041_v48 = vld [vmem:[%s9728_s3 + $0x378] sm:$0xff]  ;;  %v7850_v54 = vld [vmem:[#allocation2 + $0x8] sm:$0xff] }
 0x361   : > { %7409 = vmatprep.subr.bf16.mxu1 %v7408_v13  ;;  %v7420_v45 = vpack.c.bf16 %v5041_v48, %v5040_v50  ;;  %v4376_v48 = vld [vmem:[#allocation4 + $0xe1] sm:$0xff] }
 0x364   : > { %7411 = vmatpush3.bf16.msra.mxu1 %v7408_v13  ;;  %v5072_v13 = vld [vmem:[%s9728_s3 + $0x470] sm:$0xff] }
 0x365   : > { %7413 = vmatprep.subr.bf16.mxu1 %v7412_v57 }
 0x368   : > { %7415 = vmatpush3.bf16.msra.mxu1 %v7412_v57  ;;  %v4618_v57 = vld [vmem:[%s9730_s5 + $0x8] sm:$0xff] }
 0x369   : > { %7417 = vmatprep.subr.bf16.mxu1 %v7416_v59  ;;  %v7488_v60 = vpack.c.bf16 %v4618_v57, %v4617_v17 }
 0x36c   : > { %7419 = vmatpush3.bf16.msra.mxu1 %v7416_v59  ;;  %v4620_v59 = vld [vmem:[%s9730_s5 + $0x18] sm:$0xff] }
 0x36d   : > { %7421 = vmatprep.subr.bf16.mxu1 %v7420_v45  ;;  %v7492_v50 = vpack.c.bf16 %v4620_v59, %v4619_v20 }
 0x370   : > { %7423 = vmatpush3.bf16.msra.mxu1 %v7420_v45  ;;  %v4621_v45 = vld [vmem:[%s9730_s5 + $0x20] sm:$0xff] }
 0x371   : > { %7425 = vmatprep.subr.bf16.mxu1 %v7424_v35 }
 0x373   : > { %6769 = vmatmul.mubr.f32.vlgmr.msra.gmra.mrb[32].mxu1 %v9260_v26  ;;  %v7436_v26 = vpack.c.bf16 %v5049_v21, %v5048_v30  ;;  %v4632_v30 = vld [vmem:[%s9730_s5 + $0x78] sm:$0xff] }
 0x374   : > { %6771 = vmatprep.mubr.f32.mxu1 %v9269_v31  ;;  %7427 = vmatpush3.bf16.msra.mxu1 %v7424_v35  ;;  %v5050_v31 = vld [vmem:[%s9728_s3 + $0x3c0] sm:$0xff]  ;;  %v4627_v35 = vld [vmem:[%s9730_s5 + $0x50] sm:$0xff] }
 0x375   : > { %7429 = vmatprep.subr.bf16.mxu1 %v7428_v58  ;;  %v7508_v1 = vpack.c.bf16 %v4628_v3, %v4627_v35 }
 0x377   : > { %6772 = vmatmul.mubr.f32.gmra.mrb[34].mxu1 %v9273_v42  ;;  %v7440_v42 = vpack.c.bf16 %v5051_v63, %v5050_v31 }
 0x378   : > { %6774 = vmatprep.mubr.f32.mxu1 %v9282_v34  ;;  %7431 = vmatpush3.bf16.msra.mxu1 %v7428_v58  ;;  %v5052_v34 = vld [vmem:[%s9728_s3 + $0x3d0] sm:$0xff]  ;;  %v4629_v58 = vld [vmem:[%s9730_s5 + $0x60] sm:$0xff] }
 0x379   : > { %7433 = vmatprep.subr.bf16.mxu1 %v7432_v36  ;;  %v7512_v39 = vpack.c.bf16 %v4630_v41, %v4629_v58 }
 0x37b   : > { %6775 = vmatmul.mubr.f32.gmra.mrb[36].mxu1 %v9285_v29  ;;  %v7444_v29 = vpack.c.bf16 %v5053_v11, %v5052_v34 }
 0x37c   : > { %6777 = vmatprep.mubr.f32.mxu1 %v9412_v9  ;;  %7435 = vmatpush3.bf16.msra.mxu1 %v7432_v36  ;;  %v5054_v9 = vld [vmem:[%s9728_s3 + $0x3e0] sm:$0xff]  ;;  %v4631_v36 = vld [vmem:[%s9730_s5 + $0x70] sm:$0xff] }
 0x37d   : > { %7437 = vmatprep.subr.bf16.mxu1 %v7436_v26  ;;  %v7448_v37 = vpack.c.bf16 %v5055_v0, %v5054_v9  ;;  %v7516_v21 = vpack.c.bf16 %v4632_v30, %v4631_v36 }
 0x37f   : > { %6778 = vmatmul.mubr.f32.gmra.mrb[38].mxu1 %v4100_v38 }
 0x380   : > { %7439 = vmatpush3.bf16.msra.mxu1 %v7436_v26  ;;  %6812 = vmatprep.mubr.f32.mxu1 %v9150_v5  ;;  %v5057_v5 = vld [vmem:[%s9728_s3 + $0x3f8] sm:$0xff]  ;;  %v5074_v26 = vld [vmem:[%s9729_s4] ss:$0 sm:$0xff] }
 0x381   : > { %7441 = vmatprep.subr.bf16.mxu1 %v7440_v42  ;;  %v7452_v27 = vpack.c.bf16 %v5057_v5, %v5056_v43 }
 0x384   : > { %7443 = vmatpush3.bf16.msra.mxu1 %v7440_v42 }
 0x385   : > { %7445 = vmatprep.subr.bf16.mxu1 %v7444_v29 }
 0x388   : > { %7447 = vmatpush3.bf16.msra.mxu1 %v7444_v29 }
 0x389   : > { %7449 = vmatprep.subr.bf16.mxu1 %v7448_v37 }
 0x38c   : > { %7451 = vmatpush3.bf16.msra.mxu1 %v7448_v37 }
 0x38d   : > { %7453 = vmatprep.subr.bf16.mxu1 %v7452_v27 }
 0x390   : > { %7455 = vmatpush3.bf16.msra.mxu1 %v7452_v27 }
 0x391   : > { %7457 = vmatprep.subr.bf16.mxu1 %v7456_v8 }
 0x393   : > { %6813 = vmatmul.mubr.f32.vlgmr.msra.gmra.mrb[32].mxu1 %v9174_v61  ;;  %v7468_v61 = vpack.c.bf16 %v5065_v2, %v5064_v15 }
 0x394   : > { %6815 = vmatprep.mubr.f32.mxu1 %v9198_v25  ;;  %7459 = vmatpush3.bf16.msra.mxu1 %v7456_v8  ;;  %v5066_v25 = vld [vmem:[%s9728_s3 + $0x440] sm:$0xff] }
 0x395   : > { %7461 = vmatprep.subr.bf16.mxu1 %v7460_v10 }
 0x397   : > { %6816 = vmatmul.mubr.f32.gmra.mrb[34].mxu1 %v9218_v40  ;;  %v7472_v40 = vpack.c.bf16 %v5067_v22, %v5066_v25 }
 0x398   : > { %6818 = vmatprep.mubr.f32.mxu1 %v9231_v18  ;;  %7463 = vmatpush3.bf16.msra.mxu1 %v7460_v10  ;;  %v5068_v18 = vld [vmem:[%s9728_s3 + $0x450] sm:$0xff] }
 0x399   : > { %7465 = vmatprep.subr.bf16.mxu1 %v7464_v46 }
 0x39b   : > { %6819 = vmatmul.mubr.f32.gmra.mrb[36].mxu1 %v9235_v51  ;;  %v7476_v51 = vpack.c.bf16 %v5069_v44, %v5068_v18 }
 0x39c   : > { %6821 = vmatprep.mubr.f32.mxu1 %v9258_v53  ;;  %7467 = vmatpush3.bf16.msra.mxu1 %v7464_v46  ;;  %v5070_v53 = vld [vmem:[%s9728_s3 + $0x460] sm:$0xff] }
 0x39d   : > { %7469 = vmatprep.subr.bf16.mxu1 %v7468_v61  ;;  %v7480_v52 = vpack.c.bf16 %v5071_v23, %v5070_v53 }
 0x39f   : > { %6822 = vmatmul.mubr.f32.gmra.mrb[38].mxu1 %v7850_v54 }
 0x3a0   : > { %7471 = vmatpush3.bf16.msra.mxu1 %v7468_v61  ;;  %6856 = vmatprep.mubr.f32.mxu1 %v9327_v12  ;;  %v5073_v12 = vld [vmem:[%s9728_s3 + $0x478] sm:$0xff] }
 0x3a1   : > { %7473 = vmatprep.subr.bf16.mxu1 %v7472_v40  ;;  %v7484_v14 = vpack.c.bf16 %v5073_v12, %v5072_v13 }
 0x3a4   : > { %7475 = vmatpush3.bf16.msra.mxu1 %v7472_v40 }
 0x3a5   : > { %7477 = vmatprep.subr.bf16.mxu1 %v7476_v51 }
 0x3a8   : > { %7479 = vmatpush3.bf16.msra.mxu1 %v7476_v51 }
 0x3a9   : > { %7481 = vmatprep.subr.bf16.mxu1 %v7480_v52 }
 0x3ac   : > { %7483 = vmatpush3.bf16.msra.mxu1 %v7480_v52 }
 0x3ad   : > { %7485 = vmatprep.subr.bf16.mxu1 %v7484_v14 }
 0x3b0   : > { %7487 = vmatpush3.bf16.msra.mxu1 %v7484_v14 }
 0x3b1   : > { %7489 = vmatprep.subr.bf16.mxu1 %v7488_v60 }
 0x3b3   : > { %6857 = vmatmul.mubr.f32.vlgmr.msra.gmra.mrb[32].mxu1 %v9330_v32  ;;  %v4622_v32 = vld [vmem:[%s9730_s5 + $0x28] sm:$0xff] }
 0x3b4   : > { %6859 = vmatprep.mubr.f32.mxu1 %v9339_v47  ;;  %7491 = vmatpush3.bf16.msra.mxu1 %v7488_v60  ;;  %v7496_v47 = vpack.c.bf16 %v4622_v32, %v4621_v45 }
 0x3b5   : > { %7493 = vmatprep.subr.bf16.mxu1 %v7492_v50 }
 0x3b7   : > { %6860 = vmatmul.mubr.f32.gmra.mrb[34].mxu1 %v9342_v28  ;;  %v4623_v28 = vld [vmem:[%s9730_s5 + $0x30] sm:$0xff] }
 0x3b8   : > { %6862 = vmatprep.mubr.f32.mxu1 %v9351_v4  ;;  %7495 = vmatpush3.bf16.msra.mxu1 %v7492_v50  ;;  %v4624_v4 = vld [vmem:[%s9730_s5 + $0x38] sm:$0xff] }
 0x3b9   : > { %7497 = vmatprep.subr.bf16.mxu1 %v7496_v47 }
 0x3bb   : > { %6863 = vmatmul.mubr.f32.gmra.mrb[36].mxu1 %v9354_v7  ;;  %v7500_v7 = vpack.c.bf16 %v4624_v4, %v4623_v28 }
 0x3bc   : > { %6865 = vmatprep.mubr.f32.mxu1 %v9526_v49  ;;  %7499 = vmatpush3.bf16.msra.mxu1 %v7496_v47  ;;  %v4625_v49 = vld [vmem:[%s9730_s5 + $0x40] sm:$0xff] }
 0x3bd   : > { %7501 = vmatprep.subr.bf16.mxu1 %v7500_v7  ;;  %v7504_v33 = vpack.c.bf16 %v4626_v62, %v4625_v49 }
 0x3bf   : > { %6866 = vmatmul.mubr.f32.gmra.mrb[38].mxu1 %v4376_v48 }
 0x3c0   : > { %7503 = vmatpush3.bf16.msra.mxu1 %v7500_v7 }
 0x3c1   : > { %7505 = vmatprep.subr.bf16.mxu1 %v7504_v33 }
 0x3c4   : > { %7507 = vmatpush3.bf16.msra.mxu1 %v7504_v33 }
 0x3c5   : > { %7509 = vmatprep.subr.bf16.mxu1 %v7508_v1 }
 0x3c8   : > { %7511 = vmatpush3.bf16.msra.mxu1 %v7508_v1 }
 0x3c9   : > { %7513 = vmatprep.subr.bf16.mxu1 %v7512_v39 }
 0x3cc   : > { %7515 = vmatpush3.bf16.msra.mxu1 %v7512_v39  ;;  %v5075_v39 = vld [vmem:[%s9731_s6] ss:$0 sm:$0xff] }
 0x3cd   : > { %7517 = vmatprep.subr.bf16.mxu1 %v7516_v21 }
 0x3d0   : > { %7519 = vmatpush3.bf16.msra.mxu1 %v7516_v21 }
 0x486   : > { %v6858_v31 = vpop.f32.mrb[32].mxu1 }
 0x487   : > { %v4515_v63 = vadd.f32 %v6858_v31, %v5074_v26  ;;  %v4460_v38 = vpop.f32.mrb[33].mxu1 }
 0x488   : > { %v4514_v42 = vadd.f32 %v5074_v26, %v4460_v38 }
 0x489   : > { %v4523_v34 = vmul.f32 0.1, %v4515_v63 }
 0x48a   : > { %v4522_v11 = vmul.f32 0.1, %v4514_v42  ;;  %v6861_v29 = vpop.f32.mrb[34].mxu1 }
 0x48b   : > { %v4531_v9 = vmax.f32 %v4515_v63, %v4523_v34  ;;  %v4517_v0 = vadd.f32 %v6861_v29, %v5074_v26  ;;  %v4470_v37 = vpop.f32.mrb[35].mxu1 }
 0x48c   : > { %v4530_v43 = vmax.f32 %v4514_v42, %v4522_v11  ;;  %v4516_v5 = vadd.f32 %v5074_v26, %v4470_v37 }
 0x48d   : > { %4539 = vst [vmem:[#allocation5 + $0x10] sm:$0xff] %v4531_v9  ;;  %4547 = vst [vmem:[#allocation5 + $0x11] sm:$0x80] %v4531_v9  ;;  %v4525_v27 = vmul.f32 0.1, %v4517_v0 }
 0x48e   : > { %4538 = vst [vmem:[#allocation5] sm:$0xff] %v4530_v43  ;;  %4546 = vst [vmem:[#allocation5 + $0x1] sm:$0x80] %v4530_v43  ;;  %v4524_v56 = vmul.f32 0.1, %v4516_v5  ;;  %v6864_v19 = vpop.f32.mrb[36].mxu1 }
 0x48f   : > { %v4533_v8 = vmax.f32 %v4517_v0, %v4525_v27  ;;  %v4519_v55 = vadd.f32 %v6864_v19, %v5074_v26  ;;  %v4480_v6 = vpop.f32.mrb[37].mxu1 }
 0x490   : > { %v4532_v10 = vmax.f32 %v4516_v5, %v4524_v56  ;;  %v4518_v16 = vadd.f32 %v5074_v26, %v4480_v6 }
 0x491   : > { %4541 = vst [vmem:[#allocation5 + $0x30] sm:$0xff] %v4533_v8  ;;  %4549 = vst [vmem:[#allocation5 + $0x31] sm:$0x80] %v4533_v8  ;;  %v4527_v24 = vmul.f32 0.1, %v4519_v55 }
 0x492   : > { %4540 = vst [vmem:[#allocation5 + $0x20] sm:$0xff] %v4532_v10  ;;  %4548 = vst [vmem:[#allocation5 + $0x21] sm:$0x80] %v4532_v10  ;;  %v4526_v46 = vmul.f32 0.1, %v4518_v16  ;;  %v6867_v15 = vpop.f32.mrb[38].mxu1 }
 0x493   : > { %v4535_v2 = vmax.f32 %v4519_v55, %v4527_v24  ;;  %v4521_v61 = vadd.f32 %v6867_v15, %v5074_v26  ;;  %v4490_v25 = vpop.f32.mrb[39].mxu1 }
 0x494   : > { %v4534_v22 = vmax.f32 %v4518_v16, %v4526_v46  ;;  %v4520_v40 = vadd.f32 %v5074_v26, %v4490_v25  ;;  %v4585_v18 = vld [vmem:[#allocation5 + $0x11] sm:$0xff] }
 0x495   : > { %4543 = vst [vmem:[#allocation5 + $0x50] sm:$0xff] %v4535_v2  ;;  %4551 = vst [vmem:[#allocation5 + $0x51] sm:$0x80] %v4535_v2  ;;  %v4529_v44 = vmul.f32 0.1, %v4521_v61  ;;  %v4568_v54 = vld [vmem:[#allocation5 + $0x1] sm:$0xff]  ;;  %v4601_v51 = vmax.f32 %v4531_v9, %v4585_v18 }
 0x496   : > { %4542 = vst [vmem:[#allocation5 + $0x40] sm:$0xff] %v4534_v22  ;;  %4550 = vst [vmem:[#allocation5 + $0x41] sm:$0x80] %v4534_v22  ;;  %v4528_v53 = vmul.f32 0.1, %v4520_v40  ;;  %v4593_v23 = vmax.f32 %v4530_v43, %v4568_v54 }
 0x497   : > { %v4537_v52 = vmax.f32 %v4521_v61, %v4529_v44 }
 0x498   : > { %v4536_v13 = vmax.f32 %v4520_v40, %v4528_v53  ;;  %v4609_v12 = vmax.f32 %v4593_v23, %v4601_v51  ;;  %v4587_v14 = vld [vmem:[#allocation5 + $0x31] sm:$0xff] }
 0x499   : > { %4545 = vst [vmem:[#allocation5 + $0x70] sm:$0xff] %v4537_v52  ;;  %4553 = vst [vmem:[#allocation5 + $0x71] sm:$0x80] %v4537_v52  ;;  %v4586_v17 = vld [vmem:[#allocation5 + $0x21] sm:$0xff]  ;;  %v4603_v57 = vmax.f32 %v4533_v8, %v4587_v14 }
 0x49a   : > { %4558 = vst [vmem:[#allocation5 + $0x80] sm:$0xff] %v4537_v52  ;;  %4544 = vst [vmem:[#allocation5 + $0x60] sm:$0xff] %v4536_v13  ;;  %6900 = vmatprep.mubr.f32.mxu1 %v4609_v12  ;;  %v4602_v60 = vmax.f32 %v4532_v10, %v4586_v17 }
 0x49b   : > { %4552 = vst [vmem:[#allocation5 + $0x61] sm:$0x80] %v4536_v13 }
 0x49c   : > { %v4610_v20 = vmax.f32 %v4601_v51, %v4602_v60  ;;  %v4611_v59 = vmax.f32 %v4602_v60, %v4603_v57  ;;  %v4589_v50 = vld [vmem:[#allocation5 + $0x51] sm:$0xff] }
 0x49d   : > { %v4588_v48 = vld [vmem:[#allocation5 + $0x41] sm:$0xff]  ;;  %v4605_v45 = vmax.f32 %v4535_v2, %v4589_v50 }
 0x49e   : > { %6901 = vmatmul.mubr.f32.vlgmr.msra.gmra.mrb[40].mxu1 %v4610_v20  ;;  %v4604_v32 = vmax.f32 %v4534_v22, %v4588_v48 }
 0x49f   : > { %6903 = vmatprep.mubr.f32.mxu1 %v4611_v59 }
 0x4a0   : > { %v4556_v47 = vld [vmem:[#allocation5 + $0x78] sm:$0x1]  ;;  %v4612_v28 = vmax.f32 %v4603_v57, %v4604_v32  ;;  %v4613_v4 = vmax.f32 %v4604_v32, %v4605_v45 }
 0x4a1   : > { %v4591_v7 = vld [vmem:[#allocation5 + $0x71] sm:$0xff]  ;;  %4559 = vst [vmem:[#allocation5 + $0x88] sm:$0x1] %v4556_v47 }
 0x4a2   : > { %v4590_v49 = vld [vmem:[#allocation5 + $0x61] sm:$0xff]  ;;  %v4607_v62 = vmax.f32 %v4537_v52, %v4591_v7  ;;  %6904 = vmatmul.mubr.f32.gmra.mrb[42].mxu1 %v4612_v28 }
 0x4a3   : > { %v4606_v33 = vmax.f32 %v4536_v13, %v4590_v49  ;;  %6906 = vmatprep.mubr.f32.mxu1 %v4613_v4 }
 0x4a5   : > { %v4614_v35 = vmax.f32 %v4605_v45, %v4606_v33  ;;  %v4615_v3 = vmax.f32 %v4606_v33, %v4607_v62 }
 0x4a7   : > { %6907 = vmatmul.mubr.f32.gmra.mrb[44].mxu1 %v4614_v35 }
 0x4a8   : > { %6909 = vmatprep.mubr.f32.mxu1 %v4615_v3  ;;  %v4592_v1 = vld [vmem:[#allocation5 + $0x81] sm:$0xff] }
 0x4a9   : > { %v4608_v58 = vmax.f32 %v4537_v52, %v4592_v1 }
 0x4ab   : > { %v4616_v41 = vmax.f32 %v4607_v62, %v4608_v58 }
 0x4ad   : > { %6910 = vmatmul.mubr.f32.gmra.mrb[46].mxu1 %v4616_v41 }
 0x571   : > { %v6902_v36 = vpop.f32.mrb[40].mxu1 }
 0x572   : > { %v4712_v30 = vadd.f32 %v6902_v36, %v5075_v39  ;;  %v4706_v21 = vpop.f32.mrb[41].mxu1 }
 0x573   : > { %v4707_v26 = vadd.f32 %v5075_v39, %v4706_v21 }
 0x574   : > { %4746 = vst [vmem:[%s278_s17 + $0x8] sm:$0xff] %v4712_v30 }
 0x575   : > { %4745 = vst [vmem:[%s278_s17] sm:$0xff] %v4707_v26  ;;  %v6905_v31 = vpop.f32.mrb[42].mxu1 }
 0x576   : > { %v4722_v63 = vadd.f32 %v6905_v31, %v5075_v39  ;;  %v4716_v38 = vpop.f32.mrb[43].mxu1 }
 0x577   : > { %v4717_v42 = vadd.f32 %v5075_v39, %v4716_v38 }
 0x578   : > { %4748 = vst [vmem:[%s278_s17 + $0x18] sm:$0xff] %v4722_v63 }
 0x579   : > { %4747 = vst [vmem:[%s278_s17 + $0x10] sm:$0xff] %v4717_v42 }
 0x57a   : > { %v6908_v34 = vpop.f32.mrb[44].mxu1 }
 0x57b   : > { %v4732_v11 = vadd.f32 %v6908_v34, %v5075_v39  ;;  %v4726_v29 = vpop.f32.mrb[45].mxu1 }
 0x57c   : > { %v4727_v9 = vadd.f32 %v5075_v39, %v4726_v29 }
 0x57d   : > { %4750 = vst [vmem:[%s278_s17 + $0x28] sm:$0xff] %v4732_v11 }
 0x57e   : > { %4749 = vst [vmem:[%s278_s17 + $0x20] sm:$0xff] %v4727_v9 }
 0x580   : > { %v6911_v0 = vpop.f32.mrb[46].mxu1 }
 0x581   : > { %v4742_v37 = vadd.f32 %v6911_v0, %v5075_v39  ;;  %v4736_v43 = vpop.f32.mrb[47].mxu1 }
 0x582   : > { %v4737_v5 = vadd.f32 %v5075_v39, %v4736_v43 }
 0x583   : > { %4752 = vst [vmem:[%s278_s17 + $0x38] sm:$0xff] %v4742_v37 }
 0x584   : > { %4751 = vst [vmem:[%s278_s17 + $0x30] sm:$0xff] %v4737_v5 }
 0x585 PF: > { %s17_s24 = sadd.s32 1, %s7857_s24  }
 0x586   : > { %p14_p4 = scmp.ge.s32.totalorder %s17_s24, 4  }
 0x588   :  { %16 = sbr.rel (!%p14_p4) target bundleno = 1 (0x1), region = 118 }

</bundles_post_ra>
